<compile_context>
chip_gen: v7x
topology: tpu7x:2x2x1
jax: 0.10.0
libtpu: 0.0.40
codegen_flags: <defaults>
</compile_context>

<pallas_src>
import functools

import jax
import jax.numpy as jnp
from jax.experimental import pallas as pl
from jax.experimental.pallas import tpu as pltpu

INPUT_DIM = 2
OUTPUT_DIM = 3
HIDDEN = 30
NET_DEEP = 7            # total number of Linear layers
PAD = 128               # lane-padded feature width
TM_DEFAULT = 1024       # batch tile (multiple of 8); sweep 1024/2048


def _round_up(x, m):
    return ((x + m - 1) // m) * m


@functools.lru_cache(maxsize=1)
def _device_kind():
    try:
        return jax.devices()[0].device_kind.lower()
    except Exception:  # pragma: no cover - e.g. no backend at import time
        return ""


def _use_bf16_elementwise():
    # v6e / v7x have bf16 VPU + EUP: bf16 bias-add/tanh halves the binding
    # EUP/VPU vreg pushes. v5e (and older) lack bf16 elementwise units, so
    # keep those in f32 (bf16 there would only add converts).
    k = _device_kind()
    return ("v6" in k) or ("v7" in k)


def _tensorcores_per_chip():
    # v7x has 2 TensorCores per chip; keep >= 2 grid steps there so the
    # ("parallel",) grid axis actually shards across both cores.
    return 2 if "v7" in _device_kind() else 1


def _mlp_kernel(x_ref, w_ref, b_ref, o_ref, *, n_layers, bf16_elementwise):
    """Whole MLP for one batch tile.

    x_ref: (TM, INPUT_DIM)        raw (un-padded) input tile, f32
    w_ref: (n_layers, PAD, PAD)   stacked zero-padded weights, bf16, (in, out)
    b_ref: (n_layers, 1, PAD)     stacked zero-padded biases, f32
    o_ref: (TM, OUTPUT_DIM)       output tile, f32
    """
    act_dtype = jnp.bfloat16 if bf16_elementwise else jnp.float32

    x = x_ref[...].astype(jnp.float32)                       # (TM, 2)

    # ---- Layer 1: in_dim = 2 -> two broadcast FMAs on the VPU ----
    # (avoids 128-lane HBM padding of x and a wasted K=2 MXU pass).
    # TODO(synk): profile-gated alternative: fold this onto the MXU with
    # lax.dot_general once lower_as_mlir confirms the broadcast isn't already
    # a cheap vbcst (MXU slot has slack; VPU carries casts/bias adds).
    w0 = w_ref[0][:INPUT_DIM, :].astype(jnp.float32)          # (2, PAD)
    z = b_ref[0]                                              # (1, PAD) f32
    for d in range(INPUT_DIM):                                # static unroll
        z = z + x[:, d:d + 1] * w0[d:d + 1, :]                # (TM, PAD) f32
    h = jnp.tanh(z.astype(act_dtype))

    # ---- Layers 2..n: 128x128 MXU matmuls, bf16 inputs / f32 accumulate.
    # Bias add stays in the f32 accumulator dtype; tanh + hidden state are
    # bf16 on v6e/v7x (bf16 EUP/VPU), f32 on v5e.
    for layer in range(1, n_layers):                          # static unroll
        acc = jnp.dot(h.astype(jnp.bfloat16), w_ref[layer],
                      preferred_element_type=jnp.float32)     # (TM, PAD) f32
        z = acc + b_ref[layer]                                # f32 bias add
        if layer < n_layers - 1:
            h = jnp.tanh(z.astype(act_dtype))
        else:
            h = z                                             # final: keep f32

    # Narrow (3-lane) store; output carries no padding lanes to HBM.
    # TODO(synk): if xprof ever shows the masked-vst / writeback path binding,
    # switch to a lane-dense transposed (OUTPUT_DIM, n_pad) out_spec.
    o_ref[...] = h[:, :OUTPUT_DIM].astype(o_ref.dtype)


def init_pinn_params(key, input_dim=INPUT_DIM, output_dim=OUTPUT_DIM,
                     net_deep=NET_DEEP, hidden=HIDDEN):
    """nn.Linear-style init: U(-1/sqrt(fan_in), 1/sqrt(fan_in)).

    Returns stacked, zero-padded params (f32 master copies; the forward
    wrapper casts weights to bf16 at call time):
      W: (net_deep, PAD, PAD) f32, W[l][:in_l, :out_l] is the (in, out) weight
      b: (net_deep, 1, PAD)   f32, b[l][0, :out_l] is the bias
    """
    dims = [input_dim] + [hidden] * (net_deep - 1) + [output_dim]
    W = jnp.zeros((net_deep, PAD, PAD), jnp.float32)
    b = jnp.zeros((net_deep, 1, PAD), jnp.float32)
    keys = jax.random.split(key, 2 * net_deep)
    for l in range(net_deep):
        fan_in, fan_out = dims[l], dims[l + 1]
        bound = 1.0 / jnp.sqrt(jnp.float32(fan_in))
        w_l = jax.random.uniform(keys[2 * l], (fan_in, fan_out), jnp.float32,
                                 minval=-bound, maxval=bound)
        b_l = jax.random.uniform(keys[2 * l + 1], (fan_out,), jnp.float32,
                                 minval=-bound, maxval=bound)
        W = W.at[l, :fan_in, :fan_out].set(w_l)
        b = b.at[l, 0, :fan_out].set(b_l)
    return W, b


@jax.jit
def pinn_forward(x, W, b):
    """x: (N, INPUT_DIM) f32 -> (N, OUTPUT_DIM) f32."""
    n, d = x.shape
    n_layers = W.shape[0]

    bf16_elem = _use_bf16_elementwise()
    n_cores = _tensorcores_per_chip()

    # Batch tile: as large as practical (per-step pipeline overhead ~0.35us),
    # but keep at least `n_cores` grid steps so v7x's 2 TCs both get work.
    n8 = _round_up(n, 8)
    tm = min(TM_DEFAULT, n8)
    if n_cores > 1:
        tm = min(tm, _round_up(pl.cdiv(n8, n_cores), 8))
    tm = max(tm, 8)
    n_pad = _round_up(n, tm)
    x_p = x if n_pad == n else jnp.pad(x, ((0, n_pad - n), (0, 0)))

    W_bf = W.astype(jnp.bfloat16)   # f32 master params, bf16 at the MXU

    kernel = functools.partial(_mlp_kernel, n_layers=n_layers,
                               bf16_elementwise=bf16_elem)

    flops = 2 * n_pad * INPUT_DIM * PAD + 2 * (n_layers - 1) * n_pad * PAD * PAD
    transc = (n_layers - 1) * n_pad * PAD
    bytes_acc = (n_pad * d * 4 + W_bf.size * 2 + b.size * 4
                 + n_pad * OUTPUT_DIM * 4)

    out = pl.pallas_call(
        kernel,
        out_shape=jax.ShapeDtypeStruct((n_pad, OUTPUT_DIM), jnp.float32),
        grid_spec=pltpu.PrefetchScalarGridSpec(
            num_scalar_prefetch=0,
            grid=(n_pad // tm,),
            in_specs=[
                # (tm, 2): last dim equals the full array dim -> legal block.
                pl.BlockSpec((tm, INPUT_DIM), lambda i: (i, 0)),
                # Grid-invariant weights / biases: constant index_map, no
                # re-DMA across grid steps.
                # TODO(synk): pipeline_mode=pl.Buffered(1) would drop the
                # redundant second weight buffer (~230 KiB); enable once the
                # MLIR/trace confirms no per-step DMA regression (perf-neutral
                # at this size).
                pl.BlockSpec((n_layers, PAD, PAD), lambda i: (0, 0, 0)),
                pl.BlockSpec((n_layers, 1, PAD), lambda i: (0, 0, 0)),
            ],
            out_specs=pl.BlockSpec((tm, OUTPUT_DIM), lambda i: (i, 0)),
        ),
        compiler_params=pltpu.CompilerParams(
            dimension_semantics=("parallel",)),
        cost_estimate=pl.CostEstimate(
            flops=int(flops),
            transcendentals=int(transc),
            bytes_accessed=int(bytes_acc),
        ),
    )(x_p, W_bf, b)

    return out[:n]


def _reference_forward(x, W, b):
    """Pure-JAX reference matching the kernel's numerics (bf16 MXU inputs,
    f32 accumulation/bias, bf16 tanh+hidden state on v6e/v7x, f32 on v5e)."""
    n_layers = W.shape[0]
    act = jnp.bfloat16 if _use_bf16_elementwise() else jnp.float32
    Wb = W.astype(jnp.bfloat16)
    h = x.astype(jnp.float32) @ Wb[0, :INPUT_DIM, :].astype(jnp.float32) + b[0]
    h = jnp.tanh(h.astype(act))
    for l in range(1, n_layers):
        acc = jnp.dot(h.astype(jnp.bfloat16), Wb[l],
                      preferred_element_type=jnp.float32)
        z = acc + b[l]
        h = jnp.tanh(z.astype(act)) if l < n_layers - 1 else z
    return h[:, :OUTPUT_DIM]


if __name__ == "__main__":
    key = jax.random.PRNGKey(0)
    k_param, k_x = jax.random.split(key)

    W, b = init_pinn_params(k_param)

    # Small batch of PINN collocation points: (N, input_dim=2).
    # N = 500 exercises batch-row padding (and 2-TC tiling on v7x).
    N = 500
    x = jax.random.uniform(k_x, (N, INPUT_DIM), jnp.float32,
                           minval=-1.0, maxval=1.0)

    out = pinn_forward(x, W, b)
    jax.block_until_ready(out)

    ref = _reference_forward(x, W, b)
    assert out.shape == (N, OUTPUT_DIM), out.shape
    # bf16 MXU inputs (+ bf16 tanh/hidden on v6e/v7x) -> looser tolerance than
    # pure f32, but tight enough that a structural bug (wrong layer / bias /
    # padding) produces O(0.1+) errors and trips it.
    tol = 2e-2 if _use_bf16_elementwise() else 5e-3
    assert jnp.allclose(out, ref, atol=tol, rtol=tol), "mismatch vs reference"

    # TODO(synk): PINNFree._basic_equation / loss_residual / loss_ic / loss_bc
    # are abstract no-op stubs -- nothing to lower. Training a PINN would also
    # need a custom VJP (du/dx, d2u/dx2, parameter grads); this kernel is
    # forward-only, matching the module's forward().

    print("KERNEL_OK")
</pallas_src>

<mosaic_0001>
module attributes {stable_mosaic.version = 11 : i64} {
  func.func @_mlp_kernel(%arg0: i32, %arg1: memref<504x2xf32, #tpu.memory_space<vmem>>, %arg2: memref<7x128x128xbf16, #tpu.memory_space<vmem>>, %arg3: memref<7x1x128xf32, #tpu.memory_space<vmem>>, %arg4: memref<504x3xf32, #tpu.memory_space<vmem>>) attributes {dimension_semantics = [#tpu.dimension_semantics<parallel>], iteration_bounds = array<i64: 1>, scalar_prefetch = 0 : i64, scratch_operands = 0 : i64, tpu.core_type = #tpu.core_type<tc>, window_params = [{transform_indices = @transform_0, window_bounds = array<i64: 504, 2>}, {pipeline_mode = #tpu.pipeline_mode<synchronous>, transform_indices = @transform_1, window_bounds = array<i64: 7, 128, 128>}, {pipeline_mode = #tpu.pipeline_mode<synchronous>, transform_indices = @transform_2, window_bounds = array<i64: 7, 1, 128>}, {transform_indices = @transform_3, window_bounds = array<i64: 504, 3>}]} {
    %c0 = arith.constant 0 : index
    %c0_0 = arith.constant 0 : index
    %0 = vector.load %arg1[%c0, %c0_0] : memref<504x2xf32, #tpu.memory_space<vmem>>, vector<504x2xf32>
    %c0_1 = arith.constant 0 : index
    %c0_2 = arith.constant 0 : index
    %c0_3 = arith.constant 0 : index
    %1 = vector.load %arg2[%c0_1, %c0_2, %c0_3] : memref<7x128x128xbf16, #tpu.memory_space<vmem>>, vector<1x128x128xbf16>
    %2 = vector.shape_cast %1 : vector<1x128x128xbf16> to vector<128x128xbf16>
    %3 = vector.extract_strided_slice %2 {offsets = [0, 0], sizes = [2, 128], strides = [1, 1]} : vector<128x128xbf16> to vector<2x128xbf16>
    %4 = arith.extf %3 : vector<2x128xbf16> to vector<2x128xf32>
    %c0_4 = arith.constant 0 : index
    %c0_5 = arith.constant 0 : index
    %c0_6 = arith.constant 0 : index
    %5 = vector.load %arg3[%c0_4, %c0_5, %c0_6] : memref<7x1x128xf32, #tpu.memory_space<vmem>>, vector<1x1x128xf32>
    %6 = vector.shape_cast %5 : vector<1x1x128xf32> to vector<1x128xf32>
    %7 = vector.extract_strided_slice %0 {offsets = [0, 0], sizes = [504, 1], strides = [1, 1]} : vector<504x2xf32> to vector<504x1xf32>
    %8 = vector.extract_strided_slice %4 {offsets = [0, 0], sizes = [1, 128], strides = [1, 1]} : vector<2x128xf32> to vector<1x128xf32>
    %9 = vector.broadcast %7 : vector<504x1xf32> to vector<504x128xf32>
    %10 = vector.broadcast %8 : vector<1x128xf32> to vector<504x128xf32>
    %11 = arith.mulf %9, %10 : vector<504x128xf32>
    %12 = vector.broadcast %6 : vector<1x128xf32> to vector<504x128xf32>
    %13 = arith.addf %12, %11 : vector<504x128xf32>
    %14 = vector.extract_strided_slice %0 {offsets = [0, 1], sizes = [504, 1], strides = [1, 1]} : vector<504x2xf32> to vector<504x1xf32>
    %15 = vector.extract_strided_slice %4 {offsets = [1, 0], sizes = [1, 128], strides = [1, 1]} : vector<2x128xf32> to vector<1x128xf32>
    %16 = vector.broadcast %14 : vector<504x1xf32> to vector<504x128xf32>
    %17 = vector.broadcast %15 : vector<1x128xf32> to vector<504x128xf32>
    %18 = arith.mulf %16, %17 : vector<504x128xf32>
    %19 = arith.addf %13, %18 : vector<504x128xf32>
    %20 = math.tanh %19 : vector<504x128xf32>
    %21 = arith.truncf %20 : vector<504x128xf32> to vector<504x128xbf16>
    %c1 = arith.constant 1 : index
    %c0_7 = arith.constant 0 : index
    %c0_8 = arith.constant 0 : index
    %22 = vector.load %arg2[%c1, %c0_7, %c0_8] : memref<7x128x128xbf16, #tpu.memory_space<vmem>>, vector<1x128x128xbf16>
    %23 = vector.shape_cast %22 : vector<1x128x128xbf16> to vector<128x128xbf16>
    %cst = arith.constant dense<0.000000e+00> : vector<504x128xf32>
    %24 = tpu.matmul %21, %23, %cst {dimension_numbers = #tpu.dot_dimension_numbers<[1], [0], [0], [1], [0, 0, 1, 1], [], []>} : vector<504x128xbf16>, vector<128x128xbf16>, vector<504x128xf32> -> vector<504x128xf32>
    %c1_9 = arith.constant 1 : index
    %c0_10 = arith.constant 0 : index
    %c0_11 = arith.constant 0 : index
    %25 = vector.load %arg3[%c1_9, %c0_10, %c0_11] : memref<7x1x128xf32, #tpu.memory_space<vmem>>, vector<1x1x128xf32>
    %26 = vector.shape_cast %25 : vector<1x1x128xf32> to vector<1x128xf32>
    %27 = vector.broadcast %26 : vector<1x128xf32> to vector<504x128xf32>
    %28 = arith.addf %24, %27 : vector<504x128xf32>
    %29 = math.tanh %28 : vector<504x128xf32>
    %30 = arith.truncf %29 : vector<504x128xf32> to vector<504x128xbf16>
    %c2 = arith.constant 2 : index
    %c0_12 = arith.constant 0 : index
    %c0_13 = arith.constant 0 : index
    %31 = vector.load %arg2[%c2, %c0_12, %c0_13] : memref<7x128x128xbf16, #tpu.memory_space<vmem>>, vector<1x128x128xbf16>
    %32 = vector.shape_cast %31 : vector<1x128x128xbf16> to vector<128x128xbf16>
    %cst_14 = arith.constant dense<0.000000e+00> : vector<504x128xf32>
    %33 = tpu.matmul %30, %32, %cst_14 {dimension_numbers = #tpu.dot_dimension_numbers<[1], [0], [0], [1], [0, 0, 1, 1], [], []>} : vector<504x128xbf16>, vector<128x128xbf16>, vector<504x128xf32> -> vector<504x128xf32>
    %c2_15 = arith.constant 2 : index
    %c0_16 = arith.constant 0 : index
    %c0_17 = arith.constant 0 : index
    %34 = vector.load %arg3[%c2_15, %c0_16, %c0_17] : memref<7x1x128xf32, #tpu.memory_space<vmem>>, vector<1x1x128xf32>
    %35 = vector.shape_cast %34 : vector<1x1x128xf32> to vector<1x128xf32>
    %36 = vector.broadcast %35 : vector<1x128xf32> to vector<504x128xf32>
    %37 = arith.addf %33, %36 : vector<504x128xf32>
    %38 = math.tanh %37 : vector<504x128xf32>
    %39 = arith.truncf %38 : vector<504x128xf32> to vector<504x128xbf16>
    %c3 = arith.constant 3 : index
    %c0_18 = arith.constant 0 : index
    %c0_19 = arith.constant 0 : index
    %40 = vector.load %arg2[%c3, %c0_18, %c0_19] : memref<7x128x128xbf16, #tpu.memory_space<vmem>>, vector<1x128x128xbf16>
    %41 = vector.shape_cast %40 : vector<1x128x128xbf16> to vector<128x128xbf16>
    %cst_20 = arith.constant dense<0.000000e+00> : vector<504x128xf32>
    %42 = tpu.matmul %39, %41, %cst_20 {dimension_numbers = #tpu.dot_dimension_numbers<[1], [0], [0], [1], [0, 0, 1, 1], [], []>} : vector<504x128xbf16>, vector<128x128xbf16>, vector<504x128xf32> -> vector<504x128xf32>
    %c3_21 = arith.constant 3 : index
    %c0_22 = arith.constant 0 : index
    %c0_23 = arith.constant 0 : index
    %43 = vector.load %arg3[%c3_21, %c0_22, %c0_23] : memref<7x1x128xf32, #tpu.memory_space<vmem>>, vector<1x1x128xf32>
    %44 = vector.shape_cast %43 : vector<1x1x128xf32> to vector<1x128xf32>
    %45 = vector.broadcast %44 : vector<1x128xf32> to vector<504x128xf32>
    %46 = arith.addf %42, %45 : vector<504x128xf32>
    %47 = math.tanh %46 : vector<504x128xf32>
    %48 = arith.truncf %47 : vector<504x128xf32> to vector<504x128xbf16>
    %c4 = arith.constant 4 : index
    %c0_24 = arith.constant 0 : index
    %c0_25 = arith.constant 0 : index
    %49 = vector.load %arg2[%c4, %c0_24, %c0_25] : memref<7x128x128xbf16, #tpu.memory_space<vmem>>, vector<1x128x128xbf16>
    %50 = vector.shape_cast %49 : vector<1x128x128xbf16> to vector<128x128xbf16>
    %cst_26 = arith.constant dense<0.000000e+00> : vector<504x128xf32>
    %51 = tpu.matmul %48, %50, %cst_26 {dimension_numbers = #tpu.dot_dimension_numbers<[1], [0], [0], [1], [0, 0, 1, 1], [], []>} : vector<504x128xbf16>, vector<128x128xbf16>, vector<504x128xf32> -> vector<504x128xf32>
    %c4_27 = arith.constant 4 : index
    %c0_28 = arith.constant 0 : index
    %c0_29 = arith.constant 0 : index
    %52 = vector.load %arg3[%c4_27, %c0_28, %c0_29] : memref<7x1x128xf32, #tpu.memory_space<vmem>>, vector<1x1x128xf32>
    %53 = vector.shape_cast %52 : vector<1x1x128xf32> to vector<1x128xf32>
    %54 = vector.broadcast %53 : vector<1x128xf32> to vector<504x128xf32>
    %55 = arith.addf %51, %54 : vector<504x128xf32>
    %56 = math.tanh %55 : vector<504x128xf32>
    %57 = arith.truncf %56 : vector<504x128xf32> to vector<504x128xbf16>
    %c5 = arith.constant 5 : index
    %c0_30 = arith.constant 0 : index
    %c0_31 = arith.constant 0 : index
    %58 = vector.load %arg2[%c5, %c0_30, %c0_31] : memref<7x128x128xbf16, #tpu.memory_space<vmem>>, vector<1x128x128xbf16>
    %59 = vector.shape_cast %58 : vector<1x128x128xbf16> to vector<128x128xbf16>
    %cst_32 = arith.constant dense<0.000000e+00> : vector<504x128xf32>
    %60 = tpu.matmul %57, %59, %cst_32 {dimension_numbers = #tpu.dot_dimension_numbers<[1], [0], [0], [1], [0, 0, 1, 1], [], []>} : vector<504x128xbf16>, vector<128x128xbf16>, vector<504x128xf32> -> vector<504x128xf32>
    %c5_33 = arith.constant 5 : index
    %c0_34 = arith.constant 0 : index
    %c0_35 = arith.constant 0 : index
    %61 = vector.load %arg3[%c5_33, %c0_34, %c0_35] : memref<7x1x128xf32, #tpu.memory_space<vmem>>, vector<1x1x128xf32>
    %62 = vector.shape_cast %61 : vector<1x1x128xf32> to vector<1x128xf32>
    %63 = vector.broadcast %62 : vector<1x128xf32> to vector<504x128xf32>
    %64 = arith.addf %60, %63 : vector<504x128xf32>
    %65 = math.tanh %64 : vector<504x128xf32>
    %66 = arith.truncf %65 : vector<504x128xf32> to vector<504x128xbf16>
    %c6 = arith.constant 6 : index
    %c0_36 = arith.constant 0 : index
    %c0_37 = arith.constant 0 : index
    %67 = vector.load %arg2[%c6, %c0_36, %c0_37] : memref<7x128x128xbf16, #tpu.memory_space<vmem>>, vector<1x128x128xbf16>
    %68 = vector.shape_cast %67 : vector<1x128x128xbf16> to vector<128x128xbf16>
    %cst_38 = arith.constant dense<0.000000e+00> : vector<504x128xf32>
    %69 = tpu.matmul %66, %68, %cst_38 {dimension_numbers = #tpu.dot_dimension_numbers<[1], [0], [0], [1], [0, 0, 1, 1], [], []>} : vector<504x128xbf16>, vector<128x128xbf16>, vector<504x128xf32> -> vector<504x128xf32>
    %c6_39 = arith.constant 6 : index
    %c0_40 = arith.constant 0 : index
    %c0_41 = arith.constant 0 : index
    %70 = vector.load %arg3[%c6_39, %c0_40, %c0_41] : memref<7x1x128xf32, #tpu.memory_space<vmem>>, vector<1x1x128xf32>
    %71 = vector.shape_cast %70 : vector<1x1x128xf32> to vector<1x128xf32>
    %72 = vector.broadcast %71 : vector<1x128xf32> to vector<504x128xf32>
    %73 = arith.addf %69, %72 : vector<504x128xf32>
    %74 = vector.extract_strided_slice %73 {offsets = [0, 0], sizes = [504, 3], strides = [1, 1]} : vector<504x128xf32> to vector<504x3xf32>
    %c0_42 = arith.constant 0 : index
    %c0_43 = arith.constant 0 : index
    %75 = vector.load %arg4[%c0_42, %c0_43] : memref<504x3xf32, #tpu.memory_space<vmem>>, vector<504x3xf32>
    tpu.vector_store %arg4[%c0_42, %c0_43], %74 {strides = array<i32>} : memref<504x3xf32, #tpu.memory_space<vmem>>, vector<504x3xf32>,
    return
  }
  func.func @transform_0(%arg0: i32) -> (i32, i32) {
    %c0_i32 = arith.constant 0 : i32
    %c0_i32_0 = arith.constant 0 : i32
    return %arg0, %c0_i32 : i32, i32
  }
  func.func @transform_1(%arg0: i32) -> (i32, i32, i32) {
    %c0_i32 = arith.constant 0 : i32
    %c0_i32_0 = arith.constant 0 : i32
    %c0_i32_1 = arith.constant 0 : i32
    %c0_i32_2 = arith.constant 0 : i32
    return %c0_i32, %c0_i32_0, %c0_i32_1 : i32, i32, i32
  }
  func.func @transform_2(%arg0: i32) -> (i32, i32, i32) {
    %c0_i32 = arith.constant 0 : i32
    %c0_i32_0 = arith.constant 0 : i32
    %c0_i32_1 = arith.constant 0 : i32
    %c0_i32_2 = arith.constant 0 : i32
    return %c0_i32, %c0_i32_0, %c0_i32_1 : i32, i32, i32
  }
  func.func @transform_3(%arg0: i32) -> (i32, i32) {
    %c0_i32 = arith.constant 0 : i32
    %c0_i32_0 = arith.constant 0 : i32
    return %arg0, %c0_i32 : i32, i32
  }
}

</mosaic_0001>

<bundles_post_ra>
// kernel: pinn_forward.1
= control target key start
LH: loop header
LB: loop body
LE: loop exit
PB: predicated region body
PF: predicated region fallthrough
CT: control target
= control target key end

     0   :  { %v5439_v0 = vmov 0   ;;  %v5440_v6 = vmov 1   ;;  %vm3650_vm0 = vcmask 23552   ;;  %s6911_s0 = inlined_call_operand.vmem [shape: f32[504,2], index: 0, kind: input, shape index: {}]   ;;  %s6912_s1 = inlined_call_operand.vmem [shape: bf16[7,128,128], index: 1, kind: input, shape index: {}]   ;;  %s6913_s2 = inlined_call_operand.vmem [shape: f32[7,1,128], index: 2, kind: input, shape index: {}]   ;;  %s6914_s3 = inlined_call_operand.vmem [shape: f32[504,3], index: 3, kind: output, shape index: {}]  }
   0x1   :  { %4598 = vset.pattern.permute.xlu1 %v5439_v0  ;;  %4597 = vset.pattern.permute.xlu0 %v5439_v0  ;;  %v17_v1 = vld [vmem:[%s6911_s0 + $0x10] sm:$0xff]  ;;  %v5469_v2 = vld [vmem:[%s6911_s0] sm:$0xff]  ;;  %v5475_v3 = vld [vmem:[%s6911_s0 + $0x18] sm:$0xff] }
   0x2   :  { %93 = vperm.xlu1 %4598, %v17_v1   ;;  %83 = vperm.xlu0 %4597, %v5469_v2   ;;  %v16_v4 = vld [vmem:[%s6911_s0 + $0x8] sm:$0xff]  ;;  %v5496_v9 = vld [vmem:[%s6911_s0 + $0x20] sm:$0xff]  ;;  %v21_v11 = vld [vmem:[%s6911_s0 + $0x30] sm:$0xff] }
   0x3   :  { %v20_v5 = vld [vmem:[%s6911_s0 + $0x28] sm:$0xff]  ;;  %v22_v13 = vld [vmem:[%s6911_s0 + $0x38] sm:$0xff]  ;;  %v23_v17 = vld [vmem:[%s6911_s0 + $0x40] sm:$0xff] }
   0x4   :  { %v24_v7 = vld [vmem:[%s6911_s0 + $0x48] sm:$0xff]  ;;  %v25_v19 = vld [vmem:[%s6911_s0 + $0x50] sm:$0xff]  ;;  %v26_v21 = vld [vmem:[%s6911_s0 + $0x58] sm:$0xff] }
   0x5   :  { %v5491_v8 = vld [vmem:[%s6911_s0 + $0x68] sm:$0xff]  ;;  %v4633_v23 = vld [vmem:[%s6912_s1 + $0x40] sm:$0xff]   ;;  %v4635_v27 = vld [vmem:[%s6912_s1 + $0x50] sm:$0xff]  }
   0x6   :  { %98 = vperm.xlu1 %4598, %v5475_v3   ;;  %88 = vperm.xlu0 %4597, %v16_v4   ;;  %v5501_v10 = vld [vmem:[%s6911_s0 + $0x88] sm:$0xff]  ;;  %v27_v28 = vld [vmem:[%s6911_s0 + $0x60] sm:$0xff]  ;;  %v4636_v29 = vld [vmem:[%s6912_s1 + $0x58] sm:$0xff]  }
   0x7   :  { %v5512_v12 = vld [vmem:[%s6911_s0 + $0xa8] sm:$0xff]  ;;  %4115 = vmatprep.subr.bf16.mxu0 %v4633_v23  ;;  %v29_v30 = vld [vmem:[%s6911_s0 + $0x70] sm:$0xff]  ;;  %v4637_v31 = vld [vmem:[%s6912_s1 + $0x60] sm:$0xff]  }
   0x8   :  { %v5522_v14 = vld [vmem:[%s6911_s0 + $0xc8] sm:$0xff]  ;;  %4116 = vmatpush3.bf16.msra.mxu0 %v4633_v23  ;;  %v30_v32 = vld [vmem:[%s6911_s0 + $0x78] sm:$0xff]  ;;  %v4639_v34 = vld [vmem:[%s6912_s1 + $0x70] sm:$0xff]  }
   0x9   :  { %v5527_v15 = vld [vmem:[%s6911_s0 + $0xe8] sm:$0xff]  ;;  %v4640_v35 = vld [vmem:[%s6912_s1 + $0x78] sm:$0xff]   ;;  %v31_v36 = vld [vmem:[%s6911_s0 + $0x80] sm:$0xff] }
   0xa   :  { %4599 = vset.pattern.permute.xlu1 %v5440_v6  ;;  %108 = vperm.xlu0 %4597, %v20_v5   ;;  %v5534_v16 = vld [vmem:[%s6911_s0 + $0x108] sm:$0xff]  ;;  %v33_v37 = vld [vmem:[%s6911_s0 + $0x90] sm:$0xff]  ;;  %v34_v38 = vld [vmem:[%s6911_s0 + $0x98] sm:$0xff] }
   0xb   :  { %537 = vperm.xlu1 %4599, %v16_v4   ;;  %v5543_v18 = vld [vmem:[%s6911_s0 + $0x128] sm:$0xff]  ;;  %v35_v39 = vld [vmem:[%s6911_s0 + $0xa0] sm:$0xff]  ;;  %v38_v40 = vld [vmem:[%s6911_s0 + $0xb8] sm:$0xff] }
   0xc   :  { %v5553_v20 = vld [vmem:[%s6911_s0 + $0x148] sm:$0xff]  ;;  %v37_v41 = vld [vmem:[%s6911_s0 + $0xb0] sm:$0xff]  ;;  %v39_v42 = vld [vmem:[%s6911_s0 + $0xc0] sm:$0xff] }
   0xd   :  { %v5562_v22 = vld [vmem:[%s6911_s0 + $0x168] sm:$0xff]  ;;  %v42_v43 = vld [vmem:[%s6911_s0 + $0xd8] sm:$0xff]  ;;  %v43_v44 = vld [vmem:[%s6911_s0 + $0xe0] sm:$0xff] }
   0xe   :  { %128 = vperm.xlu0 %4597, %v24_v7   ;;  %v5572_v24 = vld [vmem:[%s6911_s0 + $0x188] sm:$0xff]  ;;  %v46_v45 = vld [vmem:[%s6911_s0 + $0xf8] sm:$0xff]  ;;  %v5658_v46 = vld [vmem:[%s6911_s0 + $0x100] sm:$0xff] }
   0xf   :  { %541 = vperm.xlu1 %4599, %v17_v1   ;;  %v4634_v25 = vld [vmem:[%s6912_s1 + $0x48] sm:$0xff]   ;;  %v5664_v47 = vld [vmem:[%s6911_s0 + $0x118] sm:$0xff]  ;;  %v41_v50 = vld [vmem:[%s6911_s0 + $0xd0] sm:$0xff] }
  0x10   :  { %v5582_v26 = vld [vmem:[%s6911_s0 + $0x1a8] sm:$0xff]  ;;  %4117 = vmatprep.subr.bf16.mxu0 %v4634_v25  ;;  %v5678_v51 = vld [vmem:[%s6911_s0 + $0x120] sm:$0xff]  ;;  %v5688_v54 = vld [vmem:[%s6911_s0 + $0x138] sm:$0xff] }
  0x11   :  { %4118 = vmatpush3.bf16.msra.mxu0 %v4634_v25  ;;  %v4638_v33 = vld [vmem:[%s6912_s1 + $0x68] sm:$0xff]   ;;  %v5698_v57 = vld [vmem:[%s6911_s0 + $0x140] sm:$0xff]  ;;  %v5710_v60 = vld [vmem:[%s6911_s0 + $0x158] sm:$0xff] }
  0x12   :  { %148 = vperm.xlu0 %4597, %v5491_v8   ;;  %4119 = vmatprep.subr.bf16.mxu0 %v4635_v27  ;;  %v5720_v63 = vld [vmem:[%s6911_s0 + $0x160] sm:$0xff] }
  0x13   :  { %4600 = vset.pattern.permute.xlu1 %v5439_v0 }
  0x14   :  { %103 = vperm.xlu1 %4600, %v5496_v9  }
  0x15   :  { %4120 = vmatpush3.bf16.msra.mxu0 %v4635_v27 }
  0x16   :  { %168 = vperm.xlu0 %4597, %v5501_v10   ;;  %4121 = vmatprep.subr.bf16.mxu0 %v4636_v29 }
  0x18   :  { %113 = vperm.xlu1 %4600, %v21_v11  }
  0x19   :  { %4122 = vmatpush3.bf16.msra.mxu0 %v4636_v29 }
  0x1a   :  { %188 = vperm.xlu0 %4597, %v5512_v12   ;;  %4123 = vmatprep.subr.bf16.mxu0 %v4637_v31 }
  0x1c   :  { %118 = vperm.xlu1 %4600, %v22_v13  }
  0x1d   :  { %4124 = vmatpush3.bf16.msra.mxu0 %v4637_v31  ;;  %v49_v31 = vld [vmem:[%s6911_s0 + $0x110] sm:$0xff] }
  0x1e   :  { %208 = vperm.xlu0 %4597, %v5522_v14   ;;  %4125 = vmatprep.subr.bf16.mxu0 %v4638_v33 }
  0x20   :  { %4601 = vset.pattern.permute.xlu1 %v5440_v6 }
  0x21   :  { %553 = vperm.xlu1 %4601, %v20_v5   ;;  %4126 = vmatpush3.bf16.msra.mxu0 %v4638_v33  ;;  %v45_v5 = vld [vmem:[%s6911_s0 + $0xf0] sm:$0xff] }
  0x22   :  { %228 = vperm.xlu0 %4597, %v5527_v15   ;;  %4127 = vmatprep.subr.bf16.mxu0 %v4639_v34 }
  0x25   :  { %557 = vperm.xlu1 %4601, %v21_v11   ;;  %4128 = vmatpush3.bf16.msra.mxu0 %v4639_v34  ;;  %v5754_v11 = vld [vmem:[%s6911_s0 + $0x198] sm:$0xff] }
  0x26   :  { %248 = vperm.xlu0 %4597, %v5534_v16   ;;  %4129 = vmatprep.subr.bf16.mxu0 %v4640_v35  ;;  %v5802_v34 = vld [vmem:[%s6911_s0 + $0x1d8] sm:$0xff] }
  0x29   :  { %4602 = vset.pattern.permute.xlu1 %v5439_v0  ;;  %4130 = vmatpush3.bf16.msra.mxu0 %v4640_v35 }
  0x2a   :  { %123 = vperm.xlu1 %4602, %v23_v17   ;;  %268 = vperm.xlu0 %4597, %v5543_v18  }
  0x2e   :  { %133 = vperm.xlu1 %4602, %v25_v19   ;;  %288 = vperm.xlu0 %4597, %v5553_v20  }
  0x32   :  { %138 = vperm.xlu1 %4602, %v26_v21   ;;  %308 = vperm.xlu0 %4597, %v5562_v22  }
  0x36   :  { %4603 = vset.pattern.permute.xlu1 %v5440_v6  ;;  %328 = vperm.xlu0 %4597, %v5572_v24  }
  0x37   :  { %569 = vperm.xlu1 %4603, %v24_v7  }
  0x3a   :  { %348 = vperm.xlu0 %4597, %v5582_v26  }
  0x3b   :  { %573 = vperm.xlu1 %4603, %v25_v19   ;;  %v396_v19 = vlaneseq }
  0x3d   :  { %v397_v27 = vshrl.u32 %v396_v19, 7 }
  0x3e   :  { %4625 = vset.pattern.permute.xlu0 %v5440_v6 }
  0x3f   :  { %4604 = vset.pattern.permute.xlu1 %v5439_v0  ;;  %533 = vperm.xlu0 %4625, %v5469_v2   ;;  %v398_v33 = vsub.s32 0, %v397_v27 }
  0x40   :  { %143 = vperm.xlu1 %4604, %v27_v28  }
  0x43   :  { %545 = vperm.xlu0 %4625, %v5475_v3   ;;  %v5731_v3 = vld [vmem:[%s6911_s0 + $0x178] sm:$0xff] }
  0x44   :  { %153 = vperm.xlu1 %4604, %v29_v30  }
  0x47   :  { %549 = vperm.xlu0 %4625, %v5496_v9  }
  0x48   :  { %158 = vperm.xlu1 %4604, %v30_v32  }
  0x4b   :  { %561 = vperm.xlu0 %4625, %v22_v13  }
  0x4c   :  { %4605 = vset.pattern.permute.xlu1 %v5440_v6 }
  0x4d   :  { %585 = vperm.xlu1 %4605, %v5491_v8   ;;  %v5744_v8 = vld [vmem:[%s6911_s0 + $0x180] sm:$0xff] }
  0x4f   :  { %565 = vperm.xlu0 %4625, %v23_v17  }
  0x51   :  { %589 = vperm.xlu1 %4605, %v29_v30  }
  0x53   :  { %577 = vperm.xlu0 %4625, %v26_v21   ;;  %v5774_v21 = vld [vmem:[%s6911_s0 + $0x1b8] sm:$0xff] }
  0x55   :  { %4606 = vset.pattern.permute.xlu1 %v5439_v0 }
  0x56   :  { %163 = vperm.xlu1 %4606, %v31_v36  }
  0x57   :  { %581 = vperm.xlu0 %4625, %v27_v28   ;;  %v78_v28 = vld [vmem:[%s6912_s1] sm:$0xf] }
  0x5a   :  { %173 = vperm.xlu1 %4606, %v33_v37  }
  0x5b   :  { %593 = vperm.xlu0 %4625, %v30_v32   ;;  %v79_v32 = vunpack.c.l.bf16 %v78_v28 }
  0x5e   :  { %178 = vperm.xlu1 %4606, %v34_v38  }
  0x5f   :  { %597 = vperm.xlu0 %4625, %v31_v36  }
  0x62   :  { %4607 = vset.pattern.permute.xlu1 %v5440_v6 }
  0x63   :  { %601 = vperm.xlu1 %4607, %v5501_v10   ;;  %609 = vperm.xlu0 %4625, %v34_v38   ;;  %v5809_v38 = vrot.slane %v79_v32, %v398_v33 }
  0x67   :  { %605 = vperm.xlu1 %4607, %v33_v37   ;;  %613 = vperm.xlu0 %4625, %v35_v39   ;;  %v786_v37 = vsub.s32 1, %v397_v27 }
  0x6b   :  { %4608 = vset.pattern.permute.xlu1 %v5439_v0  ;;  %625 = vperm.xlu0 %4625, %v38_v40  }
  0x6c   :  { %183 = vperm.xlu1 %4608, %v35_v39  }
  0x6f   :  { %629 = vperm.xlu0 %4625, %v39_v42  }
  0x70   :  { %193 = vperm.xlu1 %4608, %v37_v41  }
  0x73   :  { %641 = vperm.xlu0 %4625, %v42_v43  }
  0x74   :  { %198 = vperm.xlu1 %4608, %v38_v40  }
  0x77   :  { %645 = vperm.xlu0 %4625, %v43_v44  }
  0x78   :  { %4609 = vset.pattern.permute.xlu1 %v5440_v6 }
  0x79   :  { %617 = vperm.xlu1 %4609, %v5512_v12  }
  0x7b   :  { %657 = vperm.xlu0 %4625, %v46_v45  }
  0x7d   :  { %621 = vperm.xlu1 %4609, %v37_v41   ;;  %v5815_v41 = vrot.slane %v79_v32, %v786_v37 }
  0x7f   :  { %661 = vperm.xlu0 %4625, %v5658_v46  }
  0x81   :  { %v5666_v48 = vpop.permute.xlu1 %93  ;;  %4610 = vset.pattern.permute.xlu1 %v5439_v0  ;;  %v5669_v49 = vpop.permute.xlu0 %83 }
  0x82   :  { %203 = vperm.xlu1 %4610, %v39_v42  }
  0x83   :  { %673 = vperm.xlu0 %4625, %v5664_v47  }
  0x85   :  { %v5680_v52 = vpop.permute.xlu1 %98  ;;  %v5682_v53 = vpop.permute.xlu0 %88 }
  0x86   :  { %213 = vperm.xlu1 %4610, %v41_v50   ;;  %v401_v40 = vmul.f32 %v5809_v38, %v5682_v53  ;;  %v402_v53 = vmul.f32 %v5809_v38, %v5666_v48 }
  0x87   :  { %677 = vperm.xlu0 %4625, %v5678_v51  }
  0x89   :  { %v5690_v55 = vpop.permute.xlu0 %108 }
  0x8a   :  { %218 = vperm.xlu1 %4610, %v42_v43   ;;  %v5692_v56 = vpop.permute.xlu1 %537  ;;  %v5822_v43 = vld [vmem:[%s6913_s2] ss:$0 sm:$0xff] }
  0x8b   :  { %689 = vperm.xlu0 %4625, %v5688_v54   ;;  %v471_v33 = vadd.f32 %v5822_v43, %v402_v53 }
  0x8d   :  { %v5700_v58 = vpop.permute.xlu0 %128 }
  0x8e   :  { %4611 = vset.pattern.permute.xlu1 %v5440_v6  ;;  %v5703_v59 = vpop.permute.xlu1 %541 }
  0x8f   :  { %633 = vperm.xlu1 %4611, %v5522_v14   ;;  %693 = vperm.xlu0 %4625, %v5698_v57   ;;  %v5765_v14 = vld [vmem:[%s6911_s0 + $0x1a0] sm:$0xff]  ;;  %v790_v27 = vmul.f32 %v5815_v41, %v5703_v59 }
  0x91   :  { %v5712_v61 = vpop.permute.xlu0 %148 }
  0x93   :  { %637 = vperm.xlu1 %4611, %v41_v50   ;;  %v5714_v62 = vpop.permute.xlu1 %103  ;;  %705 = vperm.xlu0 %4625, %v5710_v60   ;;  %v789_v50 = vmul.f32 %v5815_v41, %v5692_v56  ;;  %v405_v56 = vmul.f32 %v5809_v38, %v5690_v55 }
  0x95   :  { %v5722_v1 = vpop.permute.xlu0 %168  ;;  %v474_v55 = vadd.f32 %v5822_v43, %v405_v56 }
  0x97   :  { %4612 = vset.pattern.permute.xlu1 %v5439_v0  ;;  %v5725_v2 = vpop.permute.xlu1 %113  ;;  %709 = vperm.xlu0 %4625, %v5720_v63  }
  0x98   :  { %223 = vperm.xlu1 %4612, %v43_v44   ;;  %v400_v44 = vmul.f32 %v5809_v38, %v5669_v49  ;;  %v5841_v49 = vld [vmem:[%s6911_s0 + $0x1c8] sm:$0xff]  ;;  %v406_v53 = vmul.f32 %v5809_v38, %v5725_v2 }
  0x99   :  { %v5733_v4 = vpop.permute.xlu0 %188 }
  0x9b   :  { %v5738_v7 = vpop.permute.xlu1 %118  ;;  %721 = vperm.xlu0 %4625, %v5731_v3  }
  0x9c   :  { %233 = vperm.xlu1 %4612, %v45_v5  }
  0x9d   :  { %v5746_v9 = vpop.permute.xlu0 %208 }
  0x9f   :  { %725 = vperm.xlu0 %4625, %v5744_v8  }
  0xa0   :  { %238 = vperm.xlu1 %4612, %v46_v45   ;;  %v5749_v10 = vpop.permute.xlu1 %553 }
  0xa1   :  { %v5756_v12 = vpop.permute.xlu0 %228  ;;  %v793_v59 = vmul.f32 %v5815_v41, %v5749_v10  ;;  %v5870_v10 = vld [vmem:[%s6911_s0 + $0x130] sm:$0xff] }
  0xa3   :  { %737 = vperm.xlu0 %4625, %v5754_v11  }
  0xa4   :  { %4613 = vset.pattern.permute.xlu1 %v5440_v6  ;;  %v5760_v13 = vpop.permute.xlu1 %557 }
  0xa5   :  { %649 = vperm.xlu1 %4613, %v5527_v15   ;;  %v5768_v17 = vpop.permute.xlu0 %248  ;;  %v5784_v15 = vld [vmem:[%s6911_s0 + $0x1c0] sm:$0xff]  ;;  %v794_v56 = vmul.f32 %v5815_v41, %v5760_v13 }
  0xa7   :  { %741 = vperm.xlu0 %4625, %v5765_v14  }
  0xa9   :  { %653 = vperm.xlu1 %4613, %v45_v5   ;;  %v5776_v23 = vpop.permute.xlu1 %123  ;;  %v5778_v25 = vpop.permute.xlu0 %268  ;;  %v469_v5 = vadd.f32 %v5822_v43, %v400_v44 }
  0xab   :  { %753 = vperm.xlu0 %4625, %v5774_v21  }
  0xad   :  { %4614 = vset.pattern.permute.xlu1 %v5439_v0  ;;  %v5790_v29 = vpop.permute.xlu1 %133  ;;  %v5792_v30 = vpop.permute.xlu0 %288 }
  0xae   :  { %243 = vperm.xlu1 %4614, %v5658_v46   ;;  %v470_v46 = vadd.f32 %v5822_v43, %v401_v40  ;;  %v853_v40 = vadd.f32 %v790_v27, %v471_v33 }
  0xaf   :  { %757 = vperm.xlu0 %4625, %v5784_v15  }
  0xb0   :  { %v852_v19 = vadd.f32 %v789_v50, %v470_v46 }
  0xb1   :  { %v5804_v35 = vpop.permute.xlu1 %138  ;;  %v5806_v36 = vpop.permute.xlu0 %308 }
  0xb2   :  { %253 = vperm.xlu1 %4614, %v49_v31   ;;  %4681 = vtanh.f32 %v852_v19  ;;  %v856_v19 = vadd.f32 %v793_v59, %v474_v55  ;;  %v408_v59 = vmul.f32 %v5809_v38, %v5776_v23 }
  0xb3   :  { %769 = vperm.xlu0 %4625, %v5802_v34  }
  0xb5   :  { %v5811_v39 = vpop.permute.xlu0 %328 }
  0xb6   :  { %258 = vperm.xlu1 %4614, %v5664_v47   ;;  %v570_v42 = vpop.permute.xlu1 %569 }
  0xb7   :  { %4629 = vset.pattern.permute.xlu0 %v5439_v0 }
  0xb8   :  { %368 = vperm.xlu0 %4629, %v5841_v49  }
  0xb9   :  { %v5826_v45 = vpop.permute.xlu0 %348 }
  0xba   :  { %4615 = vset.pattern.permute.xlu1 %v5440_v6  ;;  %v5832_v47 = vpop.permute.xlu1 %573 }
  0xbb   :  { %665 = vperm.xlu1 %4615, %v5534_v16   ;;  %v403_v16 = vmul.f32 %v5809_v38, %v5680_v52  ;;  %v404_v52 = vmul.f32 %v5809_v38, %v5714_v62  ;;  %v409_v62 = vmul.f32 %v5809_v38, %v5700_v58  ;;  %v475_v58 = vadd.f32 %v5822_v43, %v406_v53 }
  0xbd   :  { %v472_v46 = vadd.f32 %v5822_v43, %v403_v16  ;;  %v478_v33 = vadd.f32 %v5822_v43, %v409_v62  ;;  %v798_v62 = vmul.f32 %v5815_v41, %v5832_v47 }
  0xbe   :  { %v534_v28 = vpop.permute.xlu0 %533 }
  0xbf   :  { %v788_v48 = vmul.f32 %v5815_v41, %v534_v28  ;;  %669 = vperm.xlu1 %4615, %v49_v31   ;;  %v5851_v32 = vpop.permute.xlu1 %143  ;;  %v473_v28 = vadd.f32 %v5822_v43, %v404_v52  ;;  %v410_v52 = vmul.f32 %v5809_v38, %v5790_v29  ;;  %v477_v29 = vadd.f32 %v5822_v43, %v408_v59 }
  0xc1   :  { %v851_v37 = vadd.f32 %v788_v48, %v469_v5  ;;  %v76_v48 = vld [vmem:[%s6911_s0 + $0x1e8] sm:$0xff] }
  0xc2   :  { %v546_v44 = vpop.permute.xlu0 %545  ;;  %388 = vperm.xlu0 %4629, %v76_v48  }
  0xc3   :  { %4683 = vtanh.f32 %v851_v37  ;;  %v791_v31 = vmul.f32 %v5815_v41, %v546_v44  ;;  %4616 = vset.pattern.permute.xlu1 %v5439_v0  ;;  %v5862_v50 = vpop.permute.xlu1 %153  ;;  %v857_v37 = vadd.f32 %v794_v56, %v475_v58 }
  0xc4   :  { %263 = vperm.xlu1 %4616, %v5678_v51   ;;  %4685 = vtanh.f32 %v853_v40  ;;  %v407_v51 = vmul.f32 %v5809_v38, %v5738_v7  ;;  %v797_v7 = vmul.f32 %v5815_v41, %v570_v42  ;;  %v413_v42 = vmul.f32 %v5809_v38, %v5712_v61 }
  0xc5   :  { %v854_v5 = vadd.f32 %v791_v31, %v472_v46  ;;  %v4682_v46 = vpop.eup %4681  ;;  %v479_v61 = vadd.f32 %v5822_v43, %v410_v52  ;;  %v414_v59 = vmul.f32 %v5809_v38, %v5862_v50 }
  0xc6   :  { %v550_v27 = vpop.permute.xlu0 %549  ;;  %v476_v40 = vadd.f32 %v5822_v43, %v407_v51  ;;  %4632 = vset.pattern.permute.xlu0 %v5440_v6  ;;  %v860_v23 = vadd.f32 %v797_v7, %v478_v33  ;;  %v482_v47 = vadd.f32 %v5822_v43, %v413_v42  ;;  %v412_v7 = vmul.f32 %v5809_v38, %v5851_v32 }
  0xc7   :  { %4687 = vtanh.f32 %v854_v5  ;;  %v792_v2 = vmul.f32 %v5815_v41, %v550_v27  ;;  %v5880_v16 = vpop.permute.xlu1 %158  ;;  %777 = vperm.xlu0 %4632, %v76_v48   ;;  %v861_v58 = vadd.f32 %v798_v62, %v479_v61  ;;  %v483_v62 = vadd.f32 %v5822_v43, %v414_v59  ;;  %v57_v61 = vld [vmem:[%s6911_s0 + $0x150] sm:$0xff] }
  0xc8   :  { %273 = vperm.xlu1 %4616, %v5870_v10   ;;  %4689 = vtanh.f32 %v856_v19  ;;  %v481_v32 = vadd.f32 %v5822_v43, %v412_v7 }
  0xc9   :  { %v855_v13 = vadd.f32 %v792_v2, %v473_v28 }
  0xca   :  { %v562_v55 = vpop.permute.xlu0 %561 }
  0xcb   :  { %4691 = vtanh.f32 %v855_v13  ;;  %v795_v44 = vmul.f32 %v5815_v41, %v562_v55 }
  0xcc   :  { %278 = vperm.xlu1 %4616, %v5688_v54   ;;  %v586_v31 = vpop.permute.xlu1 %585  ;;  %4693 = vtanh.f32 %v857_v37  ;;  %v411_v54 = vmul.f32 %v5809_v38, %v5804_v35 }
  0xcd   :  { %v4684_v53 = vpop.eup %4683  ;;  %v858_v5 = vadd.f32 %v795_v44, %v476_v40  ;;  %v801_v35 = vmul.f32 %v5815_v41, %v586_v31 }
  0xce   :  { %v566_v19 = vpop.permute.xlu0 %565  ;;  %v977_v56 = vpack.c.bf16 %v4682_v46, %v4684_v53  ;;  %v4686_v28 = vpop.eup %4685  ;;  %v480_v37 = vadd.f32 %v5822_v43, %v411_v54 }
  0xcf   :  { %4695 = vtanh.f32 %v858_v5  ;;  %v796_v27 = vmul.f32 %v5815_v41, %v566_v19  ;;  %v864_v52 = vadd.f32 %v801_v35, %v482_v47  ;;  %v415_v5 = vmul.f32 %v5809_v38, %v5880_v16 }
  0xd0   :  { %4617 = vset.pattern.permute.xlu1 %v5440_v6  ;;  %v590_v51 = vpop.permute.xlu1 %589  ;;  %4131 = vmatprep.mubr.bf16.mxu0 %v977_v56  ;;  %4697 = vtanh.f32 %v860_v23 }
  0xd1   :  { %v4688_v2 = vpop.eup %4687  ;;  %v859_v48 = vadd.f32 %v796_v27, %v477_v29  ;;  %681 = vperm.xlu1 %4617, %v5543_v18   ;;  %v802_v31 = vmul.f32 %v5815_v41, %v590_v51  ;;  %v484_v16 = vadd.f32 %v5822_v43, %v415_v5 }
  0xd2   :  { %v578_v13 = vpop.permute.xlu0 %577  ;;  %v978_v33 = vpack.c.bf16 %v4688_v2, %v4686_v28  ;;  %v4690_v40 = vpop.eup %4689 }
  0xd3   :  { %4699 = vtanh.f32 %v859_v48  ;;  %v799_v55 = vmul.f32 %v5815_v41, %v578_v13  ;;  %v865_v29 = vadd.f32 %v802_v31, %v483_v62  ;;  %v417_v48 = vmul.f32 %v5809_v38, %v5722_v1 }
  0xd4   :  { %4132 = vmatmul.mubr.bf16.vlgmr.msra.gmra.mrb[0].mxu0 %v978_v33  ;;  %4701 = vtanh.f32 %v861_v58 }
  0xd5   :  { %v4692_v18 = vpop.eup %4691  ;;  %v862_v44 = vadd.f32 %v799_v55, %v480_v37  ;;  %685 = vperm.xlu1 %4617, %v5870_v10   ;;  %v164_v46 = vpop.permute.xlu1 %163  ;;  %v486_v59 = vadd.f32 %v5822_v43, %v417_v48  ;;  %v61_v48 = vld [vmem:[%s6911_s0 + $0x170] sm:$0xff] }
  0xd6   :  { %v582_v53 = vpop.permute.xlu0 %581  ;;  %v979_v42 = vpack.c.bf16 %v4690_v40, %v4692_v18  ;;  %v4694_v23 = vpop.eup %4693  ;;  %v416_v2 = vmul.f32 %v5809_v38, %v164_v46 }
  0xd7   :  { %4703 = vtanh.f32 %v862_v44  ;;  %v800_v50 = vmul.f32 %v5815_v41, %v582_v53 }
  0xd8   :  { %4135 = vmatprep.mubr.bf16.mxu0 %v979_v42  ;;  %4705 = vtanh.f32 %v864_v52  ;;  %v485_v7 = vadd.f32 %v5822_v43, %v416_v2 }
  0xd9   :  { %v4696_v10 = vpop.eup %4695  ;;  %v863_v19 = vadd.f32 %v800_v50, %v481_v32  ;;  %4618 = vset.pattern.permute.xlu1 %v5439_v0  ;;  %v174_v56 = vpop.permute.xlu1 %173 }
  0xda   :  { %283 = vperm.xlu1 %4618, %v5698_v57   ;;  %v594_v54 = vpop.permute.xlu0 %593  ;;  %v980_v27 = vpack.c.bf16 %v4696_v10, %v4694_v23  ;;  %v4698_v51 = vpop.eup %4697  ;;  %v418_v52 = vmul.f32 %v5809_v38, %v174_v56 }
  0xdb   :  { %4707 = vtanh.f32 %v863_v19  ;;  %v803_v28 = vmul.f32 %v5815_v41, %v594_v54 }
  0xdc   :  { %4136 = vmatmul.mubr.bf16.gmra.mrb[4].mxu0 %v980_v27  ;;  %4709 = vtanh.f32 %v865_v29  ;;  %v487_v10 = vadd.f32 %v5822_v43, %v418_v52 }
  0xdd   :  { %v4700_v47 = vpop.eup %4699  ;;  %v866_v57 = vadd.f32 %v803_v28, %v484_v16  ;;  %v179_v58 = vpop.permute.xlu1 %178 }
  0xde   :  { %293 = vperm.xlu1 %4618, %v57_v61   ;;  %v598_v35 = vpop.permute.xlu0 %597  ;;  %v981_v13 = vpack.c.bf16 %v4698_v51, %v4700_v47  ;;  %v4702_v37 = vpop.eup %4701  ;;  %v419_v55 = vmul.f32 %v5809_v38, %v179_v58 }
  0xdf   :  { %4711 = vtanh.f32 %v866_v57  ;;  %v804_v33 = vmul.f32 %v5815_v41, %v598_v35 }
  0xe0   :  { %4139 = vmatprep.mubr.bf16.mxu0 %v981_v13  ;;  %v488_v32 = vadd.f32 %v5822_v43, %v419_v55 }
  0xe1   :  { %v4704_v40 = vpop.eup %4703  ;;  %v867_v18 = vadd.f32 %v804_v33, %v485_v7 }
  0xe2   :  { %298 = vperm.xlu1 %4618, %v5710_v60   ;;  %v602_v1 = vpop.permute.xlu1 %601  ;;  %v610_v44 = vpop.permute.xlu0 %609  ;;  %v982_v46 = vpack.c.bf16 %v4704_v40, %v4702_v37 }
  0xe3   :  { %v805_v31 = vmul.f32 %v5815_v41, %v602_v1  ;;  %v807_v53 = vmul.f32 %v5815_v41, %v610_v44  ;;  %v4706_v42 = vpop.eup %4705  ;;  %4713 = vtanh.f32 %v867_v18 }
  0xe4   :  { %4140 = vmatmul.mubr.bf16.gmra.mrb[8].mxu0 %v982_v46 }
  0xe5   :  { %v4708_v5 = vpop.eup %4707  ;;  %v868_v50 = vadd.f32 %v805_v31, %v486_v59  ;;  %v870_v23 = vadd.f32 %v807_v53, %v488_v32 }
  0xe6   :  { %4619 = vset.pattern.permute.xlu1 %v5440_v6  ;;  %v606_v60 = vpop.permute.xlu1 %605  ;;  %v983_v62 = vpack.c.bf16 %v4706_v42, %v4708_v5  ;;  %v4710_v56 = vpop.eup %4709 }
  0xe7   :  { %4715 = vtanh.f32 %v868_v50  ;;  %v806_v19 = vmul.f32 %v5815_v41, %v606_v60  ;;  %697 = vperm.xlu1 %4619, %v5553_v20   ;;  %v614_v20 = vpop.permute.xlu0 %613 }
  0xe8   :  { %4143 = vmatprep.mubr.bf16.mxu0 %v983_v62  ;;  %4717 = vtanh.f32 %v870_v23  ;;  %v808_v33 = vmul.f32 %v5815_v41, %v614_v20 }
  0xe9   :  { %v4712_v29 = vpop.eup %4711  ;;  %v869_v54 = vadd.f32 %v806_v19, %v487_v10  ;;  %v65_v19 = vld [vmem:[%s6911_s0 + $0x190] sm:$0xff] }
  0xea   :  { %v984_v27 = vpack.c.bf16 %v4712_v29, %v4710_v56  ;;  %v425_v56 = vmul.f32 %v5809_v38, %v5746_v9 }
  0xeb   :  { %4719 = vtanh.f32 %v869_v54  ;;  %701 = vperm.xlu1 %4619, %v57_v61   ;;  %v184_v16 = vpop.permute.xlu1 %183  ;;  %v421_v61 = vmul.f32 %v5809_v38, %v5733_v4  ;;  %v626_v7 = vpop.permute.xlu0 %625 }
  0xec   :  { %4144 = vmatmul.mubr.bf16.gmra.mrb[12].mxu0 %v984_v27  ;;  %v420_v2 = vmul.f32 %v5809_v38, %v184_v16  ;;  %v811_v4 = vmul.f32 %v5815_v41, %v626_v7 }
  0xed   :  { %v4714_v51 = vpop.eup %4713  ;;  %v490_v40 = vadd.f32 %v5822_v43, %v421_v61 }
  0xee   :  { %v489_v13 = vadd.f32 %v5822_v43, %v420_v2 }
  0xef   :  { %4620 = vset.pattern.permute.xlu1 %v5439_v0  ;;  %v194_v28 = vpop.permute.xlu1 %193  ;;  %v630_v10 = vpop.permute.xlu0 %629 }
  0xf0   :  { %303 = vperm.xlu1 %4620, %v5720_v63   ;;  %v871_v59 = vadd.f32 %v808_v33, %v489_v13  ;;  %v422_v44 = vmul.f32 %v5809_v38, %v194_v28  ;;  %v812_v16 = vmul.f32 %v5815_v41, %v630_v10 }
  0xf1   :  { %v4716_v47 = vpop.eup %4715 }
  0xf2   :  { %v985_v57 = vpack.c.bf16 %v4716_v47, %v4714_v51  ;;  %v4718_v35 = vpop.eup %4717  ;;  %4721 = vtanh.f32 %v871_v59  ;;  %v491_v42 = vadd.f32 %v5822_v43, %v422_v44  ;;  %v494_v47 = vadd.f32 %v5822_v43, %v425_v56 }
  0xf3   :  { %v199_v58 = vpop.permute.xlu1 %198  ;;  %v642_v51 = vpop.permute.xlu0 %641 }
  0xf4   :  { %v423_v37 = vmul.f32 %v5809_v38, %v199_v58  ;;  %313 = vperm.xlu1 %4620, %v61_v48   ;;  %4147 = vmatprep.mubr.bf16.mxu0 %v985_v57  ;;  %v815_v9 = vmul.f32 %v5815_v41, %v642_v51  ;;  %v4645_v51 = vld [vmem:[%s6912_s1 + $0xa0] sm:$0xff]  }
  0xf5   :  { %v4720_v63 = vpop.eup %4719 }
  0xf6   :  { %v986_v55 = vpack.c.bf16 %v4718_v35, %v4720_v63  ;;  %v492_v18 = vadd.f32 %v5822_v43, %v423_v37 }
  0xf8   :  { %318 = vperm.xlu1 %4620, %v5731_v3   ;;  %v618_v1 = vpop.permute.xlu1 %617  ;;  %4148 = vmatmul.mubr.bf16.gmra.mrb[16].mxu0 %v986_v55  ;;  %v874_v31 = vadd.f32 %v811_v4, %v492_v18  ;;  %v4641_v55 = vld [vmem:[%s6912_s1 + $0x80] sm:$0xff]  }
  0xf9   :  { %v809_v46 = vmul.f32 %v5815_v41, %v618_v1  ;;  %4195 = vmatprep.subr.bf16.mxu1 %v4641_v55  ;;  %v69_v1 = vld [vmem:[%s6911_s0 + $0x1b0] sm:$0xff] }
  0xfa   :  { %4196 = vmatpush3.bf16.msra.mxu1 %v4641_v55  ;;  %v4648_v55 = vld [vmem:[%s6912_s1 + $0xb8] sm:$0xff]  }
  0xfb   :  { %v872_v52 = vadd.f32 %v809_v46, %v490_v40  ;;  %v4642_v46 = vld [vmem:[%s6912_s1 + $0x88] sm:$0xff]  }
  0xfc   :  { %4621 = vset.pattern.permute.xlu1 %v5440_v6  ;;  %v622_v53 = vpop.permute.xlu1 %621  ;;  %v4722_v23 = vpop.eup %4721  ;;  %4197 = vmatprep.subr.bf16.mxu1 %v4642_v46 }
  0xfd   :  { %4723 = vtanh.f32 %v872_v52  ;;  %v810_v32 = vmul.f32 %v5815_v41, %v622_v53  ;;  %713 = vperm.xlu1 %4621, %v5562_v22  }
  0xfe   :  { %4725 = vtanh.f32 %v874_v31  ;;  %4198 = vmatpush3.bf16.msra.mxu1 %v4642_v46 }
  0xff   :  { %v873_v3 = vadd.f32 %v810_v32, %v491_v42 }
 0x101   :  { %4727 = vtanh.f32 %v873_v3  ;;  %717 = vperm.xlu1 %4621, %v61_v48   ;;  %v204_v5 = vpop.permute.xlu1 %203  ;;  %v429_v3 = vmul.f32 %v5809_v38, %v5756_v12 }
 0x102   :  { %v424_v60 = vmul.f32 %v5809_v38, %v204_v5 }
 0x104   :  { %v493_v27 = vadd.f32 %v5822_v43, %v424_v60 }
 0x105   :  { %4622 = vset.pattern.permute.xlu1 %v5439_v0  ;;  %v214_v50 = vpop.permute.xlu1 %213 }
 0x106   :  { %323 = vperm.xlu1 %4622, %v5744_v8   ;;  %v875_v20 = vadd.f32 %v812_v16, %v493_v27  ;;  %v426_v61 = vmul.f32 %v5809_v38, %v214_v50  ;;  %v4643_v50 = vld [vmem:[%s6912_s1 + $0x90] sm:$0xff]  }
 0x107   :  { %v4724_v62 = vpop.eup %4723  ;;  %4199 = vmatprep.subr.bf16.mxu1 %v4643_v50 }
 0x108   :  { %v987_v22 = vpack.c.bf16 %v4724_v62, %v4722_v23  ;;  %v4726_v54 = vpop.eup %4725  ;;  %4729 = vtanh.f32 %v875_v20  ;;  %v495_v37 = vadd.f32 %v5822_v43, %v426_v61  ;;  %4200 = vmatpush3.bf16.msra.mxu1 %v4643_v50  ;;  %v73_v61 = vld [vmem:[%s6911_s0 + $0x1d0] sm:$0xff] }
 0x109   :  { %v219_v29 = vpop.permute.xlu1 %218 }
 0x10a   :  { %v427_v28 = vmul.f32 %v5809_v38, %v219_v29  ;;  %333 = vperm.xlu1 %4622, %v65_v19   ;;  %4151 = vmatprep.mubr.bf16.mxu0 %v987_v22  ;;  %v498_v22 = vadd.f32 %v5822_v43, %v429_v3  ;;  %v4644_v29 = vld [vmem:[%s6912_s1 + $0x98] sm:$0xff]   ;;  %v75_v3 = vld [vmem:[%s6911_s0 + $0x1e0] sm:$0xff] }
 0x10b   :  { %v4728_v8 = vpop.eup %4727  ;;  %4201 = vmatprep.subr.bf16.mxu1 %v4644_v29 }
 0x10c   :  { %v988_v2 = vpack.c.bf16 %v4726_v54, %v4728_v8  ;;  %v496_v48 = vadd.f32 %v5822_v43, %v427_v28  ;;  %4202 = vmatpush3.bf16.msra.mxu1 %v4644_v29 }
 0x10d   :  { %4203 = vmatprep.subr.bf16.mxu1 %v4645_v51 }
 0x10e   :  { %338 = vperm.xlu1 %4622, %v5754_v11   ;;  %v634_v57 = vpop.permute.xlu1 %633  ;;  %4152 = vmatmul.mubr.bf16.gmra.mrb[20].mxu0 %v988_v2  ;;  %v878_v13 = vadd.f32 %v815_v9, %v496_v48 }
 0x10f   :  { %v813_v58 = vmul.f32 %v5815_v41, %v634_v57 }
 0x110   :  { %4204 = vmatpush3.bf16.msra.mxu1 %v4645_v51 }
 0x111   :  { %v876_v35 = vadd.f32 %v813_v58, %v494_v47  ;;  %v4646_v47 = vld [vmem:[%s6912_s1 + $0xa8] sm:$0xff]   ;;  %v4647_v58 = vld [vmem:[%s6912_s1 + $0xb0] sm:$0xff]  }
 0x112   :  { %4623 = vset.pattern.permute.xlu1 %v5440_v6  ;;  %v638_v33 = vpop.permute.xlu1 %637  ;;  %v4730_v59 = vpop.eup %4729  ;;  %4205 = vmatprep.subr.bf16.mxu1 %v4646_v47 }
 0x113   :  { %4731 = vtanh.f32 %v876_v35  ;;  %v814_v63 = vmul.f32 %v5815_v41, %v638_v33  ;;  %729 = vperm.xlu1 %4623, %v5572_v24   ;;  %v646_v24 = vpop.permute.xlu0 %645 }
 0x114   :  { %4733 = vtanh.f32 %v878_v13  ;;  %v816_v53 = vmul.f32 %v5815_v41, %v646_v24  ;;  %4206 = vmatpush3.bf16.msra.mxu1 %v4646_v47 }
 0x115   :  { %v877_v11 = vadd.f32 %v814_v63, %v495_v37  ;;  %4207 = vmatprep.subr.bf16.mxu1 %v4647_v58 }
 0x117   :  { %4735 = vtanh.f32 %v877_v11  ;;  %733 = vperm.xlu1 %4623, %v65_v19   ;;  %v224_v7 = vpop.permute.xlu1 %223  ;;  %v658_v23 = vpop.permute.xlu0 %657 }
 0x118   :  { %v428_v18 = vmul.f32 %v5809_v38, %v224_v7  ;;  %v819_v62 = vmul.f32 %v5815_v41, %v658_v23  ;;  %v433_v7 = vmul.f32 %v5809_v38, %v5768_v17  ;;  %4208 = vmatpush3.bf16.msra.mxu1 %v4647_v58 }
 0x119   :  { %4209 = vmatprep.subr.bf16.mxu1 %v4648_v55 }
 0x11a   :  { %v497_v42 = vadd.f32 %v5822_v43, %v428_v18 }
 0x11b   :  { %4624 = vset.pattern.permute.xlu1 %v5439_v0  ;;  %v234_v40 = vpop.permute.xlu1 %233  ;;  %v662_v57 = vpop.permute.xlu0 %661 }
 0x11c   :  { %343 = vperm.xlu1 %4624, %v5765_v14   ;;  %v879_v60 = vadd.f32 %v816_v53, %v497_v42  ;;  %v430_v12 = vmul.f32 %v5809_v38, %v234_v40  ;;  %v820_v37 = vmul.f32 %v5815_v41, %v662_v57  ;;  %4210 = vmatpush3.bf16.msra.mxu1 %v4648_v55 }
 0x11d   :  { %v4732_v4 = vpop.eup %4731 }
 0x11e   :  { %v989_v44 = vpack.c.bf16 %v4732_v4, %v4730_v59  ;;  %v4734_v31 = vpop.eup %4733  ;;  %4737 = vtanh.f32 %v879_v60  ;;  %v499_v16 = vadd.f32 %v5822_v43, %v430_v12 }
 0x11f   :  { %v239_v52 = vpop.permute.xlu1 %238  ;;  %v674_v59 = vpop.permute.xlu0 %673 }
 0x120   :  { %v431_v14 = vmul.f32 %v5809_v38, %v239_v52  ;;  %353 = vperm.xlu1 %4624, %v69_v1   ;;  %4155 = vmatprep.mubr.bf16.mxu0 %v989_v44  ;;  %v823_v18 = vmul.f32 %v5815_v41, %v674_v59  ;;  %v502_v44 = vadd.f32 %v5822_v43, %v433_v7 }
 0x121   :  { %v4736_v32 = vpop.eup %4735  ;;  %v441_v59 = vmul.f32 %v5809_v38, %v5792_v30 }
 0x122   :  { %v990_v5 = vpack.c.bf16 %v4734_v31, %v4736_v32  ;;  %v500_v10 = vadd.f32 %v5822_v43, %v431_v14 }
 0x124   :  { %358 = vperm.xlu1 %4624, %v5774_v21   ;;  %v650_v19 = vpop.permute.xlu1 %649  ;;  %4156 = vmatmul.mubr.bf16.gmra.mrb[24].mxu0 %v990_v5  ;;  %v882_v27 = vadd.f32 %v819_v62, %v500_v10  ;;  %v678_v62 = vpop.permute.xlu0 %677 }
 0x125   :  { %v817_v56 = vmul.f32 %v5815_v41, %v650_v19  ;;  %v824_v12 = vmul.f32 %v5815_v41, %v678_v62 }
 0x127   :  { %v880_v54 = vadd.f32 %v817_v56, %v498_v22 }
 0x128   :  { %4626 = vset.pattern.permute.xlu1 %v5440_v6  ;;  %v654_v21 = vpop.permute.xlu1 %653 }
 0x129   :  { %4739 = vtanh.f32 %v880_v54  ;;  %v818_v28 = vmul.f32 %v5815_v41, %v654_v21  ;;  %745 = vperm.xlu1 %4626, %v5582_v26   ;;  %v4738_v26 = vpop.eup %4737  ;;  %v437_v54 = vmul.f32 %v5809_v38, %v5778_v25  ;;  %v690_v21 = vpop.permute.xlu0 %689 }
 0x12a   :  { %4741 = vtanh.f32 %v882_v27 }
 0x12b   :  { %v881_v8 = vadd.f32 %v818_v28, %v499_v16  ;;  %v827_v16 = vmul.f32 %v5815_v41, %v690_v21 }
 0x12d   :  { %4743 = vtanh.f32 %v881_v8  ;;  %749 = vperm.xlu1 %4626, %v69_v1   ;;  %v244_v2 = vpop.permute.xlu1 %243 }
 0x12e   :  { %v432_v48 = vmul.f32 %v5809_v38, %v244_v2  ;;  %v506_v2 = vadd.f32 %v5822_v43, %v437_v54 }
 0x130   :  { %v501_v63 = vadd.f32 %v5822_v43, %v432_v48 }
 0x131   :  { %4627 = vset.pattern.permute.xlu1 %v5439_v0  ;;  %v254_v20 = vpop.permute.xlu1 %253 }
 0x132   :  { %363 = vperm.xlu1 %4627, %v5784_v15   ;;  %v883_v4 = vadd.f32 %v820_v37, %v501_v63  ;;  %v434_v17 = vmul.f32 %v5809_v38, %v254_v20  ;;  %v694_v63 = vpop.permute.xlu0 %693 }
 0x133   :  { %v4740_v9 = vpop.eup %4739 }
 0x134   :  { %v991_v35 = vpack.c.bf16 %v4740_v9, %v4738_v26  ;;  %v4742_v33 = vpop.eup %4741  ;;  %4745 = vtanh.f32 %v883_v4  ;;  %v503_v42 = vadd.f32 %v5822_v43, %v434_v17  ;;  %v510_v17 = vadd.f32 %v5822_v43, %v441_v59 }
 0x135   :  { %v259_v13 = vpop.permute.xlu1 %258 }
 0x136   :  { %v435_v15 = vmul.f32 %v5809_v38, %v259_v13  ;;  %373 = vperm.xlu1 %4627, %v73_v61   ;;  %4159 = vmatprep.mubr.bf16.mxu0 %v991_v35 }
 0x137   :  { %v4744_v11 = vpop.eup %4743 }
 0x138   :  { %v992_v40 = vpack.c.bf16 %v4742_v33, %v4744_v11  ;;  %v504_v24 = vadd.f32 %v5822_v43, %v435_v15 }
 0x13a   :  { %378 = vperm.xlu1 %4627, %v5802_v34   ;;  %v666_v1 = vpop.permute.xlu1 %665  ;;  %4160 = vmatmul.mubr.bf16.gmra.mrb[28].mxu0 %v992_v40  ;;  %v886_v31 = vadd.f32 %v823_v18, %v504_v24  ;;  %v828_v18 = vmul.f32 %v5815_v41, %v694_v63 }
 0x13b   :  { %v821_v46 = vmul.f32 %v5815_v41, %v666_v1 }
 0x13d   :  { %v884_v52 = vadd.f32 %v821_v46, %v502_v44  ;;  %v706_v46 = vpop.permute.xlu0 %705 }
 0x13e   :  { %4628 = vset.pattern.permute.xlu1 %v5440_v6  ;;  %v670_v53 = vpop.permute.xlu1 %669  ;;  %v4746_v50 = vpop.eup %4745 }
 0x13f   :  { %4747 = vtanh.f32 %v884_v52  ;;  %v822_v34 = vmul.f32 %v5815_v41, %v670_v53  ;;  %761 = vperm.xlu1 %4628, %v5841_v49   ;;  %v77_v49 = vld [vmem:[%s6911_s0 + $0x1f0] sm:$0xff]  ;;  %v831_v53 = vmul.f32 %v5815_v41, %v706_v46 }
 0x140   :  { %4749 = vtanh.f32 %v886_v31 }
 0x141   :  { %v885_v14 = vadd.f32 %v822_v34, %v503_v42 }
 0x143   :  { %4751 = vtanh.f32 %v885_v14  ;;  %765 = vperm.xlu1 %4628, %v73_v61   ;;  %v264_v32 = vpop.permute.xlu1 %263 }
 0x144   :  { %v436_v23 = vmul.f32 %v5809_v38, %v264_v32 }
 0x146   :  { %v505_v56 = vadd.f32 %v5822_v43, %v436_v23 }
 0x147   :  { %4630 = vset.pattern.permute.xlu1 %v5439_v0  ;;  %v274_v5 = vpop.permute.xlu1 %273 }
 0x148   :  { %383 = vperm.xlu1 %4630, %v75_v3   ;;  %v887_v28 = vadd.f32 %v824_v12, %v505_v56  ;;  %v438_v47 = vmul.f32 %v5809_v38, %v274_v5 }
 0x149   :  { %v4748_v60 = vpop.eup %4747 }
 0x14a   :  { %v993_v10 = vpack.c.bf16 %v4748_v60, %v4746_v50  ;;  %v4750_v22 = vpop.eup %4749  ;;  %4753 = vtanh.f32 %v887_v28  ;;  %v507_v9 = vadd.f32 %v5822_v43, %v438_v47 }
 0x14b   :  { %v279_v19 = vpop.permute.xlu1 %278 }
 0x14c   :  { %v439_v0 = vmul.f32 %v5809_v38, %v279_v19  ;;  %393 = vperm.xlu1 %4630, %v77_v49   ;;  %4163 = vmatprep.mubr.bf16.mxu0 %v993_v10  ;;  %v710_v10 = vpop.permute.xlu0 %709 }
 0x14d   :  { %v4752_v29 = vpop.eup %4751  ;;  %v832_v54 = vmul.f32 %v5815_v41, %v710_v10 }
 0x14e   :  { %v994_v27 = vpack.c.bf16 %v4750_v22, %v4752_v29  ;;  %v508_v8 = vadd.f32 %v5822_v43, %v439_v0  ;;  %v445_v29 = vmul.f32 %v5809_v38, %v5806_v36 }
 0x150   :  { %4631 = vset.pattern.permute.xlu1 %v5440_v6  ;;  %v682_v51 = vpop.permute.xlu1 %681  ;;  %4164 = vmatmul.mubr.bf16.gmra.mrb[32].mxu0 %v994_v27  ;;  %v890_v25 = vadd.f32 %v827_v16, %v508_v8  ;;  %v514_v8 = vadd.f32 %v5822_v43, %v445_v29  ;;  %v6128_v29 = vld [vmem:[%s6913_s2 + $0x1] ss:$0 sm:$0xff] }
 0x151   :  { %v825_v20 = vmul.f32 %v5815_v41, %v682_v51  ;;  %773 = vperm.xlu1 %4631, %v75_v3   ;;  %v722_v51 = vpop.permute.xlu0 %721 }
 0x153   :  { %v888_v26 = vadd.f32 %v825_v20, %v506_v2  ;;  %v835_v20 = vmul.f32 %v5815_v41, %v722_v51 }
 0x154   :  { %v686_v48 = vpop.permute.xlu1 %685  ;;  %v4754_v35 = vpop.eup %4753 }
 0x155   :  { %4755 = vtanh.f32 %v888_v26  ;;  %v826_v57 = vmul.f32 %v5815_v41, %v686_v48  ;;  %781 = vperm.xlu1 %4631, %v77_v49  }
 0x156   :  { %4757 = vtanh.f32 %v890_v25 }
 0x157   :  { %v889_v6 = vadd.f32 %v826_v57, %v507_v9 }
 0x159   :  { %4759 = vtanh.f32 %v889_v6  ;;  %v284_v61 = vpop.permute.xlu1 %283 }
 0x15a   :  { %v440_v13 = vmul.f32 %v5809_v38, %v284_v61 }
 0x15c   :  { %v509_v7 = vadd.f32 %v5822_v43, %v440_v13 }
 0x15d   :  { %v294_v58 = vpop.permute.xlu1 %293 }
 0x15e   :  { %v891_v24 = vadd.f32 %v828_v18, %v509_v7  ;;  %v442_v52 = vmul.f32 %v5809_v38, %v294_v58 }
 0x15f   :  { %v4756_v33 = vpop.eup %4755 }
 0x160   :  { %v995_v37 = vpack.c.bf16 %v4756_v33, %v4754_v35  ;;  %v4758_v11 = vpop.eup %4757  ;;  %4761 = vtanh.f32 %v891_v24  ;;  %v511_v14 = vadd.f32 %v5822_v43, %v442_v52 }
 0x161   :  { %v299_v15 = vpop.permute.xlu1 %298 }
 0x162   :  { %v443_v55 = vmul.f32 %v5809_v38, %v299_v15  ;;  %4167 = vmatprep.mubr.bf16.mxu0 %v995_v37  ;;  %v726_v37 = vpop.permute.xlu0 %725 }
 0x163   :  { %v4760_v40 = vpop.eup %4759  ;;  %v836_v59 = vmul.f32 %v5815_v41, %v726_v37 }
 0x164   :  { %v996_v4 = vpack.c.bf16 %v4758_v11, %v4760_v40  ;;  %v512_v1 = vadd.f32 %v5822_v43, %v443_v55  ;;  %v449_v40 = vmul.f32 %v5809_v38, %v5811_v39 }
 0x166   :  { %v698_v44 = vpop.permute.xlu1 %697  ;;  %4168 = vmatmul.mubr.bf16.gmra.mrb[36].mxu0 %v996_v4  ;;  %v894_v30 = vadd.f32 %v831_v53, %v512_v1 }
 0x167   :  { %v829_v31 = vmul.f32 %v5815_v41, %v698_v44  ;;  %v518_v44 = vadd.f32 %v5822_v43, %v449_v40 }
 0x169   :  { %v892_v42 = vadd.f32 %v829_v31, %v510_v17  ;;  %v738_v17 = vpop.permute.xlu0 %737 }
 0x16a   :  { %v702_v34 = vpop.permute.xlu1 %701  ;;  %v4762_v23 = vpop.eup %4761  ;;  %v839_v31 = vmul.f32 %v5815_v41, %v738_v17 }
 0x16b   :  { %4763 = vtanh.f32 %v892_v42  ;;  %v830_v32 = vmul.f32 %v5815_v41, %v702_v34 }
 0x16c   :  { %4765 = vtanh.f32 %v894_v30  ;;  %v6115_v30 = vld [vmem:[%s6913_s2] ss:$0 sm:$0xff] }
 0x16d   :  { %v893_v3 = vadd.f32 %v830_v32, %v511_v14 }
 0x16f   :  { %4767 = vtanh.f32 %v893_v3  ;;  %v304_v5 = vpop.permute.xlu1 %303 }
 0x170   :  { %v444_v60 = vmul.f32 %v5809_v38, %v304_v5 }
 0x172   :  { %v513_v12 = vadd.f32 %v5822_v43, %v444_v60 }
 0x173   :  { %v314_v50 = vpop.permute.xlu1 %313 }
 0x174   :  { %v895_v21 = vadd.f32 %v832_v54, %v513_v12  ;;  %v446_v2 = vmul.f32 %v5809_v38, %v314_v50 }
 0x175   :  { %v4764_v62 = vpop.eup %4763 }
 0x176   :  { %v997_v49 = vpack.c.bf16 %v4764_v62, %v4762_v23  ;;  %v4766_v22 = vpop.eup %4765  ;;  %4769 = vtanh.f32 %v895_v21  ;;  %v515_v48 = vadd.f32 %v5822_v43, %v446_v2  ;;  %v742_v23 = vpop.permute.xlu0 %741 }
 0x177   :  { %v319_v19 = vpop.permute.xlu1 %318 }
 0x178   :  { %v447_v56 = vmul.f32 %v5809_v38, %v319_v19  ;;  %4171 = vmatprep.mubr.bf16.mxu0 %v997_v49 }
 0x179   :  { %v4768_v0 = vpop.eup %4767 }
 0x17a   :  { %v998_v27 = vpack.c.bf16 %v4766_v22, %v4768_v0  ;;  %v516_v16 = vadd.f32 %v5822_v43, %v447_v56  ;;  %v840_v22 = vmul.f32 %v5815_v41, %v742_v23  ;;  %v453_v0 = vmul.f32 %v5809_v38, %v5826_v45  ;;  %v754_v54 = vpop.permute.xlu0 %753 }
 0x17c   :  { %v714_v28 = vpop.permute.xlu1 %713  ;;  %4172 = vmatmul.mubr.bf16.gmra.mrb[40].mxu0 %v998_v27  ;;  %v898_v36 = vadd.f32 %v835_v20, %v516_v16 }
 0x17d   :  { %v833_v47 = vmul.f32 %v5815_v41, %v714_v28 }
 0x17f   :  { %v896_v26 = vadd.f32 %v833_v47, %v514_v8  ;;  %v522_v47 = vadd.f32 %v6115_v30, %v453_v0 }
 0x180   :  { %v718_v25 = vpop.permute.xlu1 %717  ;;  %v4770_v58 = vpop.eup %4769 }
 0x181   :  { %4771 = vtanh.f32 %v896_v26  ;;  %v834_v9 = vmul.f32 %v5815_v41, %v718_v25  ;;  %v843_v25 = vmul.f32 %v5815_v41, %v754_v54 }
 0x182   :  { %4773 = vtanh.f32 %v898_v36 }
 0x183   :  { %v897_v57 = vadd.f32 %v834_v9, %v515_v48 }
 0x185   :  { %4775 = vtanh.f32 %v897_v57  ;;  %v324_v6 = vpop.permute.xlu1 %323 }
 0x186   :  { %v448_v35 = vmul.f32 %v5809_v38, %v324_v6 }
 0x188   :  { %v517_v11 = vadd.f32 %v5822_v43, %v448_v35 }
 0x189   :  { %v334_v61 = vpop.permute.xlu1 %333 }
 0x18a   :  { %v899_v4 = vadd.f32 %v836_v59, %v517_v11  ;;  %v450_v46 = vmul.f32 %v5809_v38, %v334_v61  ;;  %v758_v61 = vpop.permute.xlu0 %757 }
 0x18b   :  { %v4772_v13 = vpop.eup %4771 }
 0x18c   :  { %v999_v33 = vpack.c.bf16 %v4772_v13, %v4770_v58  ;;  %v4774_v15 = vpop.eup %4773  ;;  %4777 = vtanh.f32 %v899_v4  ;;  %v519_v34 = vadd.f32 %v6115_v30, %v450_v46 }
 0x18d   :  { %v339_v63 = vpop.permute.xlu1 %338 }
 0x18e   :  { %v451_v7 = vmul.f32 %v5809_v38, %v339_v63  ;;  %4175 = vmatprep.mubr.bf16.mxu0 %v999_v33  ;;  %v770_v59 = vpop.permute.xlu0 %769 }
 0x18f   :  { %v4776_v55 = vpop.eup %4775  ;;  %v847_v54 = vmul.f32 %v5815_v41, %v770_v59 }
 0x190   :  { %v1000_v18 = vpack.c.bf16 %v4774_v15, %v4776_v55  ;;  %v520_v24 = vadd.f32 %v5822_v43, %v451_v7 }
 0x192   :  { %v730_v1 = vpop.permute.xlu1 %729  ;;  %4176 = vmatmul.mubr.bf16.gmra.mrb[44].mxu0 %v1000_v18  ;;  %v902_v39 = vadd.f32 %v839_v31, %v520_v24  ;;  %v369_v31 = vpop.permute.xlu0 %368 }
 0x193   :  { %v837_v52 = vmul.f32 %v5815_v41, %v730_v1 }
 0x195   :  { %v900_v53 = vadd.f32 %v837_v52, %v518_v44 }
 0x196   :  { %v734_v42 = vpop.permute.xlu1 %733  ;;  %v4778_v50 = vpop.eup %4777 }
 0x197   :  { %4779 = vtanh.f32 %v900_v53  ;;  %v838_v43 = vmul.f32 %v5815_v41, %v734_v42 }
 0x198   :  { %4781 = vtanh.f32 %v902_v39 }
 0x199   :  { %v901_v14 = vadd.f32 %v838_v43, %v519_v34 }
 0x19b   :  { %4783 = vtanh.f32 %v901_v14  ;;  %v344_v32 = vpop.permute.xlu1 %343 }
 0x19c   :  { %v452_v3 = vmul.f32 %v5809_v38, %v344_v32 }
 0x19e   :  { %v521_v62 = vadd.f32 %v6115_v30, %v452_v3 }
 0x19f   :  { %v354_v5 = vpop.permute.xlu1 %353 }
 0x1a0   :  { %v903_v27 = vadd.f32 %v840_v22, %v521_v62  ;;  %v454_v45 = vmul.f32 %v5809_v38, %v354_v5  ;;  %v844_v5 = vmul.f32 %v5815_v41, %v758_v61 }
 0x1a1   :  { %v4780_v60 = vpop.eup %4779 }
 0x1a2   :  { %v1001_v49 = vpack.c.bf16 %v4780_v60, %v4778_v50  ;;  %v4782_v19 = vpop.eup %4781  ;;  %4785 = vtanh.f32 %v903_v27  ;;  %v523_v13 = vadd.f32 %v6115_v30, %v454_v45 }
 0x1a3   :  { %v359_v10 = vpop.permute.xlu1 %358 }
 0x1a4   :  { %v455_v12 = vmul.f32 %v5809_v38, %v359_v10  ;;  %4179 = vmatprep.mubr.bf16.mxu0 %v1001_v49  ;;  %v457_v49 = vmul.f32 %v5809_v38, %v369_v31 }
 0x1a5   :  { %v4784_v56 = vpop.eup %4783 }
 0x1a6   :  { %v1002_v21 = vpack.c.bf16 %v4782_v19, %v4784_v56  ;;  %v524_v28 = vadd.f32 %v6115_v30, %v455_v12 }
 0x1a7   :  { %v4133_v16 = vpop.f32.mrb[0].mxu0 }
 0x1a8   :  { %v1125_v8 = vadd.f32 %v4133_v16, %v6128_v29  ;;  %v746_v51 = vpop.permute.xlu1 %745  ;;  %v1116_v2 = vpop.f32.mrb[1].mxu0  ;;  %4180 = vmatmul.mubr.bf16.gmra.mrb[48].mxu0 %v1002_v21  ;;  %v906_v58 = vadd.f32 %v843_v25, %v524_v28 }
 0x1a9   :  { %v841_v20 = vmul.f32 %v5815_v41, %v746_v51  ;;  %v1117_v26 = vadd.f32 %v6128_v29, %v1116_v2  ;;  %v4134_v36 = vpop.f32.mrb[2].mxu0  ;;  %v526_v2 = vadd.f32 %v6115_v30, %v457_v49 }
 0x1aa   :  { %v1128_v48 = vadd.f32 %v4134_v36, %v6128_v29  ;;  %v1119_v9 = vpop.f32.mrb[3].mxu0  ;;  %4787 = vtanh.f32 %v1125_v8 }
 0x1ab   :  { %v904_v57 = vadd.f32 %v841_v20, %v522_v47  ;;  %v1120_v6 = vadd.f32 %v6128_v29, %v1119_v9  ;;  %4789 = vtanh.f32 %v1117_v26 }
 0x1ac   :  { %v750_v35 = vpop.permute.xlu1 %749  ;;  %v4786_v1 = vpop.eup %4785 }
 0x1ad   :  { %4791 = vtanh.f32 %v904_v57  ;;  %v842_v33 = vmul.f32 %v5815_v41, %v750_v35 }
 0x1ae   :  { %4793 = vtanh.f32 %v1128_v48 }
 0x1af   :  { %4795 = vtanh.f32 %v1120_v6  ;;  %v905_v37 = vadd.f32 %v842_v33, %v523_v13  ;;  %v4137_v63 = vpop.f32.mrb[4].mxu0 }
 0x1b0   :  { %4797 = vtanh.f32 %v906_v58  ;;  %v1141_v15 = vadd.f32 %v4137_v63, %v6128_v29  ;;  %v1132_v11 = vpop.f32.mrb[5].mxu0 }
 0x1b1   :  { %4799 = vtanh.f32 %v905_v37  ;;  %v1133_v7 = vadd.f32 %v6128_v29, %v1132_v11  ;;  %v364_v55 = vpop.permute.xlu1 %363  ;;  %v4138_v40 = vpop.f32.mrb[6].mxu0 }
 0x1b2   :  { %4801 = vtanh.f32 %v1141_v15  ;;  %v1144_v18 = vadd.f32 %v4138_v40, %v6128_v29  ;;  %v1135_v4 = vpop.f32.mrb[7].mxu0  ;;  %v456_v44 = vmul.f32 %v5809_v38, %v364_v55  ;;  %v389_v55 = vpop.permute.xlu0 %388 }
 0x1b3   :  { %4803 = vtanh.f32 %v1133_v7  ;;  %v1136_v24 = vadd.f32 %v6128_v29, %v1135_v4 }
 0x1b4   :  { %4805 = vtanh.f32 %v1144_v18  ;;  %v4788_v17 = vpop.eup %4787  ;;  %v525_v34 = vadd.f32 %v6115_v30, %v456_v44 }
 0x1b5   :  { %4807 = vtanh.f32 %v1136_v24  ;;  %v374_v46 = vpop.permute.xlu1 %373  ;;  %v4790_v52 = vpop.eup %4789 }
 0x1b6   :  { %v907_v16 = vadd.f32 %v844_v5, %v525_v34  ;;  %v458_v36 = vmul.f32 %v5809_v38, %v374_v46 }
 0x1b7   :  { %v4792_v53 = vpop.eup %4791  ;;  %v4141_v39 = vpop.f32.mrb[8].mxu0 }
 0x1b8   :  { %v4794_v42 = vpop.eup %4793  ;;  %v1157_v43 = vadd.f32 %v4141_v39, %v6128_v29  ;;  %v1148_v14 = vpop.f32.mrb[9].mxu0  ;;  %v1003_v32 = vpack.c.bf16 %v4792_v53, %v4786_v1  ;;  %v527_v15 = vadd.f32 %v6115_v30, %v458_v36 }
 0x1b9   :  { %v4796_v3 = vpop.eup %4795  ;;  %v1149_v50 = vadd.f32 %v6128_v29, %v1148_v14  ;;  %v379_v23 = vpop.permute.xlu1 %378  ;;  %v1434_v62 = vpack.c.bf16 %v4794_v42, %v4788_v17  ;;  %v461_v17 = vmul.f32 %v5809_v38, %v389_v55 }
 0x1ba   :  { %v4142_v60 = vpop.f32.mrb[10].mxu0  ;;  %v4798_v10 = vpop.eup %4797  ;;  %4809 = vtanh.f32 %v1157_v43  ;;  %v459_v19 = vmul.f32 %v5809_v38, %v379_v23  ;;  %4183 = vmatprep.mubr.bf16.mxu0 %v1003_v32  ;;  %v1433_v56 = vpack.c.bf16 %v4796_v3, %v4790_v52 }
 0x1bb   :  { %v1160_v22 = vadd.f32 %v4142_v60, %v6128_v29  ;;  %v1151_v12 = vpop.f32.mrb[11].mxu0  ;;  %v4800_v0 = vpop.eup %4799  ;;  %4811 = vtanh.f32 %v1149_v50  ;;  %v530_v14 = vadd.f32 %v6115_v30, %v461_v17 }
 0x1bc   :  { %v1152_v27 = vadd.f32 %v6128_v29, %v1151_v12  ;;  %v4802_v21 = vpop.eup %4801  ;;  %v528_v28 = vadd.f32 %v6115_v30, %v459_v19  ;;  %4211 = vmatprep.mubr.bf16.mxu1 %v1433_v56  ;;  %v1004_v8 = vpack.c.bf16 %v4798_v10, %v4800_v0  ;;  %v778_v52 = vpop.permute.xlu0 %777 }
 0x1bd   :  { %4813 = vtanh.f32 %v1160_v22  ;;  %v4804_v51 = vpop.eup %4803  ;;  %4212 = vmatmul.mubr.bf16.vlgmr.msra.gmra.mrb[0].mxu1 %v1434_v62  ;;  %v849_v3 = vmul.f32 %v5815_v41, %v778_v52 }
 0x1be   :  { %4815 = vtanh.f32 %v1152_v27  ;;  %v4806_v47 = vpop.eup %4805  ;;  %v910_v45 = vadd.f32 %v847_v54, %v528_v28  ;;  %v762_v20 = vpop.permute.xlu1 %761  ;;  %4184 = vmatmul.mubr.bf16.gmra.mrb[52].mxu0 %v1004_v8 }
 0x1bf   :  { %v4808_v26 = vpop.eup %4807  ;;  %v845_v25 = vmul.f32 %v5815_v41, %v762_v20  ;;  %v4145_v48 = vpop.f32.mrb[12].mxu0  ;;  %v1436_v9 = vpack.c.bf16 %v4806_v47, %v4802_v21  ;;  %4817 = vtanh.f32 %v907_v16  ;;  %v912_v54 = vadd.f32 %v849_v3, %v530_v14  ;;  %v4651_v3 = vld [vmem:[%s6912_s1 + $0xd0] sm:$0xff]  }
 0x1c0   :  { %v1173_v57 = vadd.f32 %v4145_v48, %v6128_v29  ;;  %v1164_v6 = vpop.f32.mrb[13].mxu0  ;;  %v1435_v61 = vpack.c.bf16 %v4808_v26, %v4804_v51  ;;  %4819 = vtanh.f32 %v910_v45 }
 0x1c1   :  { %v908_v58 = vadd.f32 %v845_v25, %v526_v2  ;;  %v1165_v35 = vadd.f32 %v6128_v29, %v1164_v6  ;;  %v4146_v13 = vpop.f32.mrb[14].mxu0 }
 0x1c2   :  { %4821 = vtanh.f32 %v1173_v57  ;;  %v1176_v33 = vadd.f32 %v4146_v13, %v6128_v29  ;;  %v766_v37 = vpop.permute.xlu1 %765  ;;  %v1167_v63 = vpop.f32.mrb[15].mxu0  ;;  %4215 = vmatprep.mubr.bf16.mxu1 %v1435_v61 }
 0x1c3   :  { %4823 = vtanh.f32 %v908_v58  ;;  %v846_v11 = vmul.f32 %v5815_v41, %v766_v37  ;;  %v1168_v7 = vadd.f32 %v6128_v29, %v1167_v63 }
 0x1c4   :  { %v4810_v40 = vpop.eup %4809  ;;  %4825 = vtanh.f32 %v1165_v35 }
 0x1c5   :  { %v4812_v59 = vpop.eup %4811  ;;  %4827 = vtanh.f32 %v1176_v33  ;;  %v909_v18 = vadd.f32 %v846_v11, %v527_v15  ;;  %4216 = vmatmul.mubr.bf16.gmra.mrb[4].mxu1 %v1436_v9 }
 0x1c6   :  { %4829 = vtanh.f32 %v1168_v7 }
 0x1c7   :  { %v4814_v4 = vpop.eup %4813  ;;  %4831 = vtanh.f32 %v909_v18  ;;  %v384_v1 = vpop.permute.xlu1 %383 }
 0x1c8   :  { %v4816_v24 = vpop.eup %4815  ;;  %v1438_v44 = vpack.c.bf16 %v4814_v4, %v4810_v40  ;;  %v460_v43 = vmul.f32 %v5809_v38, %v384_v1 }
 0x1c9   :  { %v1437_v46 = vpack.c.bf16 %v4816_v24, %v4812_v59  ;;  %v4818_v31 = vpop.eup %4817 }
 0x1ca   :  { %v4820_v53 = vpop.eup %4819  ;;  %v529_v0 = vadd.f32 %v6115_v30, %v460_v43  ;;  %v4650_v43 = vld [vmem:[%s6912_s1 + $0xc8] sm:$0xff]  }
 0x1cb   :  { %4219 = vmatprep.mubr.bf16.mxu1 %v1437_v46  ;;  %v394_v39 = vpop.permute.xlu1 %393  ;;  %v4149_v42 = vpop.f32.mrb[16].mxu0 }
 0x1cc   :  { %v4822_v34 = vpop.eup %4821  ;;  %v1189_v32 = vadd.f32 %v4149_v42, %v6128_v29  ;;  %v1180_v5 = vpop.f32.mrb[17].mxu0  ;;  %v462_v28 = vmul.f32 %v5809_v38, %v394_v39 }
 0x1cd   :  { %v4824_v50 = vpop.eup %4823  ;;  %4220 = vmatmul.mubr.bf16.gmra.mrb[8].mxu1 %v1438_v44  ;;  %v1181_v23 = vadd.f32 %v6128_v29, %v1180_v5  ;;  %v4150_v60 = vpop.f32.mrb[18].mxu0 }
 0x1ce   :  { %v4826_v62 = vpop.eup %4825  ;;  %4833 = vtanh.f32 %v1189_v32  ;;  %v1192_v49 = vadd.f32 %v4150_v60, %v6128_v29  ;;  %v1183_v10 = vpop.f32.mrb[19].mxu0  ;;  %v1005_v19 = vpack.c.bf16 %v4824_v50, %v4818_v31  ;;  %v531_v20 = vadd.f32 %v6115_v30, %v462_v28 }
 0x1cf   :  { %v4828_v22 = vpop.eup %4827  ;;  %4835 = vtanh.f32 %v1181_v23  ;;  %v1184_v12 = vadd.f32 %v6128_v29, %v1183_v10 }
 0x1d0   :  { %v4830_v56 = vpop.eup %4829  ;;  %4837 = vtanh.f32 %v1192_v49  ;;  %v774_v27 = vpop.permute.xlu1 %773  ;;  %4187 = vmatprep.mubr.bf16.mxu0 %v1005_v19  ;;  %v1440_v21 = vpack.c.bf16 %v4828_v22, %v4822_v34  ;;  %v4649_v34 = vld [vmem:[%s6912_s1 + $0xc0] sm:$0xff]   ;;  %v4652_v19 = vld [vmem:[%s6912_s1 + $0xd8] sm:$0xff]  }
 0x1d1   :  { %v4832_v16 = vpop.eup %4831  ;;  %4839 = vtanh.f32 %v1184_v12  ;;  %v848_v8 = vmul.f32 %v5815_v41, %v774_v27  ;;  %v1439_v51 = vpack.c.bf16 %v4830_v56, %v4826_v62  ;;  %4275 = vmatprep.subr.bf16.mxu0 %v4649_v34  ;;  %v4653_v27 = vld [vmem:[%s6912_s1 + $0xe0] sm:$0xff]  }
 0x1d2   :  { %v1006_v2 = vpack.c.bf16 %v4820_v53, %v4832_v16  ;;  %4841 = vtanh.f32 %v912_v54  ;;  %4276 = vmatpush3.bf16.msra.mxu0 %v4649_v34 }
 0x1d3   :  { %v911_v47 = vadd.f32 %v848_v8, %v529_v0  ;;  %4223 = vmatprep.mubr.bf16.mxu1 %v1439_v51  ;;  %4277 = vmatprep.subr.bf16.mxu0 %v4650_v43  ;;  %v4655_v8 = vld [vmem:[%s6912_s1 + $0xf0] sm:$0xff]  }
 0x1d4   :  { %v782_v45 = vpop.permute.xlu1 %781  ;;  %4188 = vmatmul.mubr.bf16.gmra.mrb[56].mxu0 %v1006_v2 }
 0x1d5   :  { %4843 = vtanh.f32 %v911_v47  ;;  %4224 = vmatmul.mubr.bf16.gmra.mrb[12].mxu1 %v1440_v21  ;;  %v850_v26 = vmul.f32 %v5815_v41, %v782_v45  ;;  %v4654_v21 = vld [vmem:[%s6912_s1 + $0xe8] sm:$0xff]  }
 0x1d6   :  { %4278 = vmatpush3.bf16.msra.mxu0 %v4650_v43 }
 0x1d7   :  { %v913_v36 = vadd.f32 %v850_v26, %v531_v20  ;;  %4279 = vmatprep.subr.bf16.mxu0 %v4651_v3  ;;  %v4656_v20 = vld [vmem:[%s6912_s1 + $0xf8] sm:$0xff]  }
 0x1d8   :  { %v4834_v25 = vpop.eup %4833 }
 0x1d9   :  { %v4836_v48 = vpop.eup %4835  ;;  %4845 = vtanh.f32 %v913_v36 }
 0x1da   :  { %v4838_v38 = vpop.eup %4837  ;;  %4280 = vmatpush3.bf16.msra.mxu0 %v4651_v3 }
 0x1db   :  { %v4840_v9 = vpop.eup %4839  ;;  %v1442_v57 = vpack.c.bf16 %v4838_v38, %v4834_v25  ;;  %4281 = vmatprep.subr.bf16.mxu0 %v4652_v19 }
 0x1dc   :  { %v1441_v6 = vpack.c.bf16 %v4840_v9, %v4836_v48  ;;  %v4842_v61 = vpop.eup %4841 }
 0x1de   :  { %4227 = vmatprep.mubr.bf16.mxu1 %v1441_v6  ;;  %4282 = vmatpush3.bf16.msra.mxu0 %v4652_v19 }
 0x1df   :  { %v4844_v58 = vpop.eup %4843  ;;  %4228 = vmatmul.mubr.bf16.gmra.mrb[16].mxu1 %v1442_v57  ;;  %4283 = vmatprep.subr.bf16.mxu0 %v4653_v27 }
 0x1e0   :  { %v1007_v35 = vpack.c.bf16 %v4842_v61, %v4844_v58 }
 0x1e1   :  { %v4153_v13 = vpop.f32.mrb[20].mxu0 }
 0x1e2   :  { %v1205_v30 = vadd.f32 %v4153_v13, %v6128_v29  ;;  %v1196_v33 = vpop.f32.mrb[21].mxu0  ;;  %4191 = vmatprep.mubr.bf16.mxu0 %v1007_v35  ;;  %4284 = vmatpush3.bf16.msra.mxu0 %v4653_v27 }
 0x1e3   :  { %v4846_v37 = vpop.eup %4845  ;;  %v1197_v41 = vadd.f32 %v6128_v29, %v1196_v33  ;;  %v4154_v63 = vpop.f32.mrb[22].mxu0  ;;  %4285 = vmatprep.subr.bf16.mxu0 %v4654_v21 }
 0x1e4   :  { %4847 = vtanh.f32 %v1205_v30  ;;  %v1208_v15 = vadd.f32 %v4154_v63, %v6128_v29  ;;  %v1199_v11 = vpop.f32.mrb[23].mxu0  ;;  %v1008_v7 = vpack.c.bf16 %v4846_v37, %v4846_v37 }
 0x1e5   :  { %4849 = vtanh.f32 %v1197_v41  ;;  %v1200_v55 = vadd.f32 %v6128_v29, %v1199_v11 }
 0x1e6   :  { %4851 = vtanh.f32 %v1208_v15  ;;  %4192 = vmatmul.mubr.bf16.gmra.mrb[60].mxu0 %v1008_v7 }
 0x1e7   :  { %4853 = vtanh.f32 %v1200_v55  ;;  %4286 = vmatpush3.bf16.msra.mxu0 %v4654_v21 }
 0x1e8   :  { %4287 = vmatprep.subr.bf16.mxu0 %v4655_v8 }
 0x1eb   :  { %4288 = vmatpush3.bf16.msra.mxu0 %v4655_v8 }
 0x1ec   :  { %4289 = vmatprep.subr.bf16.mxu0 %v4656_v20 }
 0x1ee   :  { %v4848_v40 = vpop.eup %4847 }
 0x1ef   :  { %v4850_v59 = vpop.eup %4849  ;;  %4290 = vmatpush3.bf16.msra.mxu0 %v4656_v20 }
 0x1f0   :  { %v4852_v18 = vpop.eup %4851 }
 0x1f1   :  { %v4854_v4 = vpop.eup %4853  ;;  %v1444_v24 = vpack.c.bf16 %v4852_v18, %v4848_v40 }
 0x1f2   :  { %v1443_v1 = vpack.c.bf16 %v4854_v4, %v4850_v59 }
 0x1f4   :  { %4231 = vmatprep.mubr.bf16.mxu1 %v1443_v1 }
 0x1f5   :  { %4232 = vmatmul.mubr.bf16.gmra.mrb[20].mxu1 %v1444_v24 }
 0x1f7   :  { %v4157_v44 = vpop.f32.mrb[24].mxu0 }
 0x1f8   :  { %v1221_v17 = vadd.f32 %v4157_v44, %v6128_v29  ;;  %v1212_v46 = vpop.f32.mrb[25].mxu0 }
 0x1f9   :  { %v1213_v52 = vadd.f32 %v6128_v29, %v1212_v46  ;;  %v4158_v31 = vpop.f32.mrb[26].mxu0 }
 0x1fa   :  { %4855 = vtanh.f32 %v1221_v17  ;;  %v1224_v53 = vadd.f32 %v4158_v31, %v6128_v29  ;;  %v1215_v39 = vpop.f32.mrb[27].mxu0 }
 0x1fb   :  { %4857 = vtanh.f32 %v1213_v52  ;;  %v1216_v42 = vadd.f32 %v6128_v29, %v1215_v39 }
 0x1fc   :  { %4859 = vtanh.f32 %v1224_v53 }
 0x1fd   :  { %4861 = vtanh.f32 %v1216_v42 }
 0x204   :  { %v4856_v14 = vpop.eup %4855 }
 0x205   :  { %v4858_v32 = vpop.eup %4857 }
 0x206   :  { %v4860_v5 = vpop.eup %4859 }
 0x207   :  { %v4862_v50 = vpop.eup %4861  ;;  %v1446_v23 = vpack.c.bf16 %v4860_v5, %v4856_v14 }
 0x208   :  { %v1445_v60 = vpack.c.bf16 %v4862_v50, %v4858_v32 }
 0x20a   :  { %4235 = vmatprep.mubr.bf16.mxu1 %v1445_v60 }
 0x20b   :  { %4236 = vmatmul.mubr.bf16.gmra.mrb[24].mxu1 %v1446_v23 }
 0x20d   :  { %v4161_v62 = vpop.f32.mrb[28].mxu0 }
 0x20e   :  { %v1237_v49 = vadd.f32 %v4161_v62, %v6128_v29  ;;  %v1228_v10 = vpop.f32.mrb[29].mxu0 }
 0x20f   :  { %v1229_v22 = vadd.f32 %v6128_v29, %v1228_v10  ;;  %v4162_v12 = vpop.f32.mrb[30].mxu0 }
 0x210   :  { %4863 = vtanh.f32 %v1237_v49  ;;  %v1240_v56 = vadd.f32 %v4162_v12, %v6128_v29  ;;  %v1231_v0 = vpop.f32.mrb[31].mxu0 }
 0x211   :  { %4865 = vtanh.f32 %v1229_v22  ;;  %v1232_v54 = vadd.f32 %v6128_v29, %v1231_v0 }
 0x212   :  { %4867 = vtanh.f32 %v1240_v56 }
 0x213   :  { %4869 = vtanh.f32 %v1232_v54 }
 0x21a   :  { %v4864_v16 = vpop.eup %4863 }
 0x21b   :  { %v4866_v28 = vpop.eup %4865 }
 0x21c   :  { %v4868_v51 = vpop.eup %4867 }
 0x21d   :  { %v4870_v2 = vpop.eup %4869  ;;  %v1448_v47 = vpack.c.bf16 %v4868_v51, %v4864_v16 }
 0x21e   :  { %v1447_v45 = vpack.c.bf16 %v4870_v2, %v4866_v28 }
 0x220   :  { %4239 = vmatprep.mubr.bf16.mxu1 %v1447_v45 }
 0x221   :  { %4240 = vmatmul.mubr.bf16.gmra.mrb[28].mxu1 %v1448_v47 }
 0x223   :  { %v4165_v26 = vpop.f32.mrb[32].mxu0 }
 0x224   :  { %v1253_v36 = vadd.f32 %v4165_v26, %v6128_v29  ;;  %v1244_v25 = vpop.f32.mrb[33].mxu0 }
 0x225   :  { %v1245_v48 = vadd.f32 %v6128_v29, %v1244_v25  ;;  %v4166_v38 = vpop.f32.mrb[34].mxu0 }
 0x226   :  { %4871 = vtanh.f32 %v1253_v36  ;;  %v1256_v9 = vadd.f32 %v4166_v38, %v6128_v29  ;;  %v1247_v57 = vpop.f32.mrb[35].mxu0 }
 0x227   :  { %4873 = vtanh.f32 %v1245_v48  ;;  %v1248_v6 = vadd.f32 %v6128_v29, %v1247_v57 }
 0x228   :  { %4875 = vtanh.f32 %v1256_v9 }
 0x229   :  { %4877 = vtanh.f32 %v1248_v6  ;;  %v6237_v6 = vld [vmem:[%s6913_s2 + $0x2] ss:$0 sm:$0xff] }
 0x230   :  { %v4872_v61 = vpop.eup %4871 }
 0x231   :  { %v4874_v58 = vpop.eup %4873 }
 0x232   :  { %v4876_v35 = vpop.eup %4875 }
 0x233   :  { %v4878_v13 = vpop.eup %4877  ;;  %v1450_v30 = vpack.c.bf16 %v4876_v35, %v4872_v61 }
 0x234   :  { %v1449_v33 = vpack.c.bf16 %v4878_v13, %v4874_v58 }
 0x236   :  { %4243 = vmatprep.mubr.bf16.mxu1 %v1449_v33 }
 0x237   :  { %4244 = vmatmul.mubr.bf16.gmra.mrb[32].mxu1 %v1450_v30 }
 0x239   :  { %v4169_v37 = vpop.f32.mrb[36].mxu0 }
 0x23a   :  { %v1269_v41 = vadd.f32 %v4169_v37, %v6128_v29  ;;  %v1260_v63 = vpop.f32.mrb[37].mxu0 }
 0x23b   :  { %v1261_v15 = vadd.f32 %v6128_v29, %v1260_v63  ;;  %v4170_v11 = vpop.f32.mrb[38].mxu0 }
 0x23c   :  { %4879 = vtanh.f32 %v1269_v41  ;;  %v1272_v7 = vadd.f32 %v4170_v11, %v6128_v29  ;;  %v1263_v55 = vpop.f32.mrb[39].mxu0 }
 0x23d   :  { %4881 = vtanh.f32 %v1261_v15  ;;  %v1264_v40 = vadd.f32 %v6128_v29, %v1263_v55 }
 0x23e   :  { %4883 = vtanh.f32 %v1272_v7 }
 0x23f   :  { %4885 = vtanh.f32 %v1264_v40 }
 0x246   :  { %v4880_v59 = vpop.eup %4879 }
 0x247   :  { %v4882_v18 = vpop.eup %4881 }
 0x248   :  { %v4884_v4 = vpop.eup %4883 }
 0x249   :  { %v4886_v24 = vpop.eup %4885  ;;  %v1452_v1 = vpack.c.bf16 %v4884_v4, %v4880_v59 }
 0x24a   :  { %v1451_v44 = vpack.c.bf16 %v4886_v24, %v4882_v18 }
 0x24c   :  { %4247 = vmatprep.mubr.bf16.mxu1 %v1451_v44 }
 0x24d   :  { %4248 = vmatmul.mubr.bf16.gmra.mrb[36].mxu1 %v1452_v1 }
 0x24f   :  { %v4173_v17 = vpop.f32.mrb[40].mxu0 }
 0x250   :  { %v1285_v46 = vadd.f32 %v4173_v17, %v6128_v29  ;;  %v1276_v52 = vpop.f32.mrb[41].mxu0 }
 0x251   :  { %v1277_v31 = vadd.f32 %v6128_v29, %v1276_v52  ;;  %v4174_v53 = vpop.f32.mrb[42].mxu0 }
 0x252   :  { %4887 = vtanh.f32 %v1285_v46  ;;  %v1288_v39 = vadd.f32 %v4174_v53, %v6128_v29  ;;  %v1279_v42 = vpop.f32.mrb[43].mxu0 }
 0x253   :  { %4889 = vtanh.f32 %v1277_v31  ;;  %v1280_v34 = vadd.f32 %v6128_v29, %v1279_v42 }
 0x254   :  { %4891 = vtanh.f32 %v1288_v39 }
 0x255   :  { %4893 = vtanh.f32 %v1280_v34 }
 0x25c   :  { %v4888_v43 = vpop.eup %4887 }
 0x25d   :  { %v4890_v14 = vpop.eup %4889 }
 0x25e   :  { %v4892_v32 = vpop.eup %4891 }
 0x25f   :  { %v4894_v3 = vpop.eup %4893  ;;  %v1454_v5 = vpack.c.bf16 %v4892_v32, %v4888_v43 }
 0x260   :  { %v1453_v50 = vpack.c.bf16 %v4894_v3, %v4890_v14 }
 0x262   :  { %4251 = vmatprep.mubr.bf16.mxu1 %v1453_v50 }
 0x263   :  { %4252 = vmatmul.mubr.bf16.gmra.mrb[40].mxu1 %v1454_v5 }
 0x265   :  { %v4177_v23 = vpop.f32.mrb[44].mxu0 }
 0x266   :  { %v1301_v60 = vadd.f32 %v4177_v23, %v6128_v29  ;;  %v1292_v62 = vpop.f32.mrb[45].mxu0 }
 0x267   :  { %v1293_v49 = vadd.f32 %v6128_v29, %v1292_v62  ;;  %v4178_v10 = vpop.f32.mrb[46].mxu0 }
 0x268   :  { %4895 = vtanh.f32 %v1301_v60  ;;  %v1304_v19 = vadd.f32 %v4178_v10, %v6128_v29  ;;  %v1295_v22 = vpop.f32.mrb[47].mxu0 }
 0x269   :  { %4897 = vtanh.f32 %v1293_v49  ;;  %v1296_v12 = vadd.f32 %v6128_v29, %v1295_v22 }
 0x26a   :  { %4899 = vtanh.f32 %v1304_v19 }
 0x26b   :  { %4901 = vtanh.f32 %v1296_v12 }
 0x272   :  { %v4896_v56 = vpop.eup %4895 }
 0x273   :  { %v4898_v0 = vpop.eup %4897 }
 0x274   :  { %v4900_v54 = vpop.eup %4899 }
 0x275   :  { %v4902_v27 = vpop.eup %4901  ;;  %v1456_v21 = vpack.c.bf16 %v4900_v54, %v4896_v56 }
 0x276   :  { %v1455_v16 = vpack.c.bf16 %v4902_v27, %v4898_v0 }
 0x278   :  { %4255 = vmatprep.mubr.bf16.mxu1 %v1455_v16 }
 0x279   :  { %4256 = vmatmul.mubr.bf16.gmra.mrb[44].mxu1 %v1456_v21 }
 0x27b   :  { %v4181_v28 = vpop.f32.mrb[48].mxu0 }
 0x27c   :  { %v1317_v8 = vadd.f32 %v4181_v28, %v6128_v29  ;;  %v1308_v51 = vpop.f32.mrb[49].mxu0 }
 0x27d   :  { %v1309_v2 = vadd.f32 %v6128_v29, %v1308_v51  ;;  %v4182_v47 = vpop.f32.mrb[50].mxu0 }
 0x27e   :  { %4903 = vtanh.f32 %v1317_v8  ;;  %v1320_v45 = vadd.f32 %v4182_v47, %v6128_v29  ;;  %v1311_v20 = vpop.f32.mrb[51].mxu0 }
 0x27f   :  { %4905 = vtanh.f32 %v1309_v2  ;;  %v1312_v26 = vadd.f32 %v6128_v29, %v1311_v20 }
 0x280   :  { %4907 = vtanh.f32 %v1320_v45 }
 0x281   :  { %4909 = vtanh.f32 %v1312_v26 }
 0x288   :  { %v4904_v36 = vpop.eup %4903 }
 0x289   :  { %v4906_v25 = vpop.eup %4905 }
 0x28a   :  { %v4908_v48 = vpop.eup %4907 }
 0x28b   :  { %v4910_v38 = vpop.eup %4909  ;;  %v1458_v9 = vpack.c.bf16 %v4908_v48, %v4904_v36 }
 0x28c   :  { %v1457_v57 = vpack.c.bf16 %v4910_v38, %v4906_v25 }
 0x28e   :  { %4259 = vmatprep.mubr.bf16.mxu1 %v1457_v57 }
 0x28f   :  { %4260 = vmatmul.mubr.bf16.gmra.mrb[48].mxu1 %v1458_v9 }
 0x290   :  { %v4213_v61 = vpop.f32.mrb[0].mxu1 }
 0x291   :  { %v1581_v58 = vadd.f32 %v4213_v61, %v6237_v6  ;;  %v1572_v35 = vpop.f32.mrb[1].mxu1  ;;  %v4185_v13 = vpop.f32.mrb[52].mxu0 }
 0x292   :  { %v1573_v30 = vadd.f32 %v6237_v6, %v1572_v35  ;;  %v4214_v33 = vpop.f32.mrb[2].mxu1  ;;  %v1333_v37 = vadd.f32 %v4185_v13, %v6128_v29  ;;  %v1324_v41 = vpop.f32.mrb[53].mxu0 }
 0x293   :  { %4911 = vtanh.f32 %v1581_v58  ;;  %v1584_v63 = vadd.f32 %v4214_v33, %v6237_v6  ;;  %v1575_v15 = vpop.f32.mrb[3].mxu1  ;;  %v4186_v11 = vpop.f32.mrb[54].mxu0  ;;  %v1325_v55 = vadd.f32 %v6128_v29, %v1324_v41 }
 0x294   :  { %4913 = vtanh.f32 %v1573_v30  ;;  %v1576_v7 = vadd.f32 %v6237_v6, %v1575_v15  ;;  %v1327_v40 = vpop.f32.mrb[55].mxu0  ;;  %v1336_v59 = vadd.f32 %v4186_v11, %v6128_v29 }
 0x295   :  { %4915 = vtanh.f32 %v1584_v63  ;;  %v1328_v18 = vadd.f32 %v6128_v29, %v1327_v40 }
 0x296   :  { %4917 = vtanh.f32 %v1333_v37 }
 0x297   :  { %4919 = vtanh.f32 %v1576_v7 }
 0x298   :  { %4921 = vtanh.f32 %v1325_v55  ;;  %v4217_v4 = vpop.f32.mrb[4].mxu1 }
 0x299   :  { %4923 = vtanh.f32 %v1336_v59  ;;  %v1597_v24 = vadd.f32 %v4217_v4, %v6237_v6  ;;  %v1588_v1 = vpop.f32.mrb[5].mxu1 }
 0x29a   :  { %4925 = vtanh.f32 %v1328_v18  ;;  %v1589_v44 = vadd.f32 %v6237_v6, %v1588_v1  ;;  %v4218_v17 = vpop.f32.mrb[6].mxu1 }
 0x29b   :  { %4927 = vtanh.f32 %v1597_v24  ;;  %v1600_v46 = vadd.f32 %v4218_v17, %v6237_v6  ;;  %v1591_v52 = vpop.f32.mrb[7].mxu1 }
 0x29c   :  { %4929 = vtanh.f32 %v1589_v44  ;;  %v1592_v31 = vadd.f32 %v6237_v6, %v1591_v52 }
 0x29d   :  { %v4912_v53 = vpop.eup %4911  ;;  %4931 = vtanh.f32 %v1600_v46 }
 0x29e   :  { %v4914_v39 = vpop.eup %4913  ;;  %4933 = vtanh.f32 %v1592_v31 }
 0x29f   :  { %v4916_v42 = vpop.eup %4915 }
 0x2a0   :  { %v4918_v34 = vpop.eup %4917  ;;  %v4221_v43 = vpop.f32.mrb[8].mxu1  ;;  %v1890_v14 = vpack.c.bf16 %v4916_v42, %v4912_v53 }
 0x2a1   :  { %v4920_v32 = vpop.eup %4919  ;;  %v1613_v3 = vadd.f32 %v4221_v43, %v6237_v6  ;;  %v1604_v5 = vpop.f32.mrb[9].mxu1 }
 0x2a2   :  { %v4922_v50 = vpop.eup %4921  ;;  %v1605_v23 = vadd.f32 %v6237_v6, %v1604_v5  ;;  %v4222_v60 = vpop.f32.mrb[10].mxu1  ;;  %v1889_v62 = vpack.c.bf16 %v4920_v32, %v4914_v39 }
 0x2a3   :  { %v4924_v49 = vpop.eup %4923  ;;  %4935 = vtanh.f32 %v1613_v3  ;;  %v1616_v10 = vadd.f32 %v4222_v60, %v6237_v6  ;;  %v1607_v19 = vpop.f32.mrb[11].mxu1 }
 0x2a4   :  { %v4926_v22 = vpop.eup %4925  ;;  %4937 = vtanh.f32 %v1605_v23  ;;  %v1608_v12 = vadd.f32 %v6237_v6, %v1607_v19  ;;  %4291 = vmatprep.mubr.bf16.mxu0 %v1889_v62  ;;  %v1460_v56 = vpack.c.bf16 %v4924_v49, %v4918_v34  ;;  %v5438_v62 = vld [vmem:[%s6913_s2 + $0x1] ss:$0 sm:$0xff] }
 0x2a5   :  { %v4928_v0 = vpop.eup %4927  ;;  %4939 = vtanh.f32 %v1616_v10  ;;  %4292 = vmatmul.mubr.bf16.vlgmr.msra.gmra.mrb[64].mxu0 %v1890_v14  ;;  %v1459_v54 = vpack.c.bf16 %v4926_v22, %v4922_v50 }
 0x2a6   :  { %v4930_v27 = vpop.eup %4929  ;;  %4941 = vtanh.f32 %v1608_v12 }
 0x2a7   :  { %v4932_v21 = vpop.eup %4931  ;;  %4263 = vmatprep.mubr.bf16.mxu1 %v1459_v54  ;;  %v4189_v16 = vpop.f32.mrb[56].mxu0 }
 0x2a8   :  { %v4934_v28 = vpop.eup %4933  ;;  %4264 = vmatmul.mubr.bf16.gmra.mrb[52].mxu1 %v1460_v56  ;;  %v4225_v8 = vpop.f32.mrb[12].mxu1  ;;  %v1349_v51 = vadd.f32 %v4189_v16, %v6128_v29  ;;  %v1892_v47 = vpack.c.bf16 %v4932_v21, %v4928_v0 }
 0x2a9   :  { %v1340_v2 = vpop.f32.mrb[57].mxu0  ;;  %v1629_v45 = vadd.f32 %v4225_v8, %v6237_v6  ;;  %v1620_v20 = vpop.f32.mrb[13].mxu1  ;;  %v1891_v25 = vpack.c.bf16 %v4934_v28, %v4930_v27 }
 0x2aa   :  { %v1341_v26 = vadd.f32 %v6128_v29, %v1340_v2  ;;  %v4190_v36 = vpop.f32.mrb[58].mxu0  ;;  %4943 = vtanh.f32 %v1349_v51  ;;  %v1621_v48 = vadd.f32 %v6237_v6, %v1620_v20  ;;  %v4226_v38 = vpop.f32.mrb[14].mxu1 }
 0x2ab   :  { %v1343_v9 = vpop.f32.mrb[59].mxu0  ;;  %4945 = vtanh.f32 %v1629_v45  ;;  %v1632_v57 = vadd.f32 %v4226_v38, %v6237_v6  ;;  %v1352_v61 = vadd.f32 %v4190_v36, %v6128_v29  ;;  %v1623_v58 = vpop.f32.mrb[15].mxu1  ;;  %4295 = vmatprep.mubr.bf16.mxu0 %v1891_v25 }
 0x2ac   :  { %4947 = vtanh.f32 %v1621_v48  ;;  %v1624_v35 = vadd.f32 %v6237_v6, %v1623_v58  ;;  %v1344_v30 = vadd.f32 %v6128_v29, %v1343_v9 }
 0x2ad   :  { %v4936_v13 = vpop.eup %4935  ;;  %4949 = vtanh.f32 %v1341_v26  ;;  %4296 = vmatmul.mubr.bf16.gmra.mrb[68].mxu0 %v1892_v47 }
 0x2ae   :  { %v4938_v33 = vpop.eup %4937  ;;  %4951 = vtanh.f32 %v1632_v57 }
 0x2af   :  { %v4940_v37 = vpop.eup %4939  ;;  %4953 = vtanh.f32 %v1352_v61 }
 0x2b0   :  { %v4942_v41 = vpop.eup %4941  ;;  %4955 = vtanh.f32 %v1624_v35  ;;  %v1894_v63 = vpack.c.bf16 %v4940_v37, %v4936_v13 }
 0x2b1   :  { %4957 = vtanh.f32 %v1344_v30  ;;  %v1893_v15 = vpack.c.bf16 %v4942_v41, %v4938_v33 }
 0x2b2   :  { %v4229_v11 = vpop.f32.mrb[16].mxu1 }
 0x2b3   :  { %4299 = vmatprep.mubr.bf16.mxu0 %v1893_v15  ;;  %v1645_v7 = vadd.f32 %v4229_v11, %v6237_v6  ;;  %v1636_v55 = vpop.f32.mrb[17].mxu1  ;;  %v4658_v15 = vld [vmem:[%s6912_s1 + $0x108] sm:$0xff]  }
 0x2b4   :  { %v4944_v40 = vpop.eup %4943  ;;  %v1637_v59 = vadd.f32 %v6237_v6, %v1636_v55  ;;  %v4230_v18 = vpop.f32.mrb[18].mxu1  ;;  %v4659_v55 = vld [vmem:[%s6912_s1 + $0x110] sm:$0xff]  }
 0x2b5   :  { %v4946_v4 = vpop.eup %4945  ;;  %4959 = vtanh.f32 %v1645_v7  ;;  %4300 = vmatmul.mubr.bf16.gmra.mrb[72].mxu0 %v1894_v63  ;;  %v1648_v24 = vadd.f32 %v4230_v18, %v6237_v6  ;;  %v1639_v1 = vpop.f32.mrb[19].mxu1  ;;  %v4657_v63 = vld [vmem:[%s6912_s1 + $0x100] sm:$0xff]  }
 0x2b6   :  { %v4948_v44 = vpop.eup %4947  ;;  %4961 = vtanh.f32 %v1637_v59  ;;  %v1640_v17 = vadd.f32 %v6237_v6, %v1639_v1  ;;  %4355 = vmatprep.subr.bf16.mxu1 %v4657_v63 }
 0x2b7   :  { %v4950_v46 = vpop.eup %4949  ;;  %4963 = vtanh.f32 %v1648_v24  ;;  %4356 = vmatpush3.bf16.msra.mxu1 %v4657_v63 }
 0x2b8   :  { %v4952_v52 = vpop.eup %4951  ;;  %4965 = vtanh.f32 %v1640_v17  ;;  %4357 = vmatprep.subr.bf16.mxu1 %v4658_v15 }
 0x2b9   :  { %v4954_v31 = vpop.eup %4953  ;;  %v4193_v53 = vpop.f32.mrb[60].mxu0  ;;  %v1896_v39 = vpack.c.bf16 %v4952_v52, %v4946_v4 }
 0x2ba   :  { %v4956_v42 = vpop.eup %4955  ;;  %v1365_v34 = vadd.f32 %v4193_v53, %v6128_v29  ;;  %v1356_v43 = vpop.f32.mrb[61].mxu0  ;;  %v1462_v14 = vpack.c.bf16 %v4954_v31, %v4944_v40  ;;  %v4660_v53 = vld [vmem:[%s6912_s1 + $0x118] sm:$0xff]  }
 0x2bb   :  { %v4958_v32 = vpop.eup %4957  ;;  %v1895_v3 = vpack.c.bf16 %v4956_v42, %v4948_v44  ;;  %v1357_v5 = vadd.f32 %v6128_v29, %v1356_v43  ;;  %v4194_v50 = vpop.f32.mrb[62].mxu0  ;;  %4358 = vmatpush3.bf16.msra.mxu1 %v4658_v15  ;;  %v4661_v42 = vld [vmem:[%s6912_s1 + $0x120] sm:$0xff]  }
 0x2bc   :  { %v1461_v23 = vpack.c.bf16 %v4958_v32, %v4950_v46  ;;  %v1359_v60 = vpop.f32.mrb[63].mxu0  ;;  %4967 = vtanh.f32 %v1365_v34  ;;  %4359 = vmatprep.subr.bf16.mxu1 %v4659_v55  ;;  %v4662_v34 = vld [vmem:[%s6912_s1 + $0x128] sm:$0xff]  }
 0x2bd   :  { %4303 = vmatprep.mubr.bf16.mxu0 %v1895_v3  ;;  %v1360_v49 = vadd.f32 %v5438_v62, %v1359_v60  ;;  %4969 = vtanh.f32 %v1357_v5  ;;  %v4663_v3 = vld [vmem:[%s6912_s1 + $0x130] sm:$0xff]   ;;  %v4664_v60 = vld [vmem:[%s6912_s1 + $0x138] sm:$0xff]  }
 0x2be   :  { %4267 = vmatprep.mubr.bf16.mxu1 %v1461_v23  ;;  %4304 = vmatmul.mubr.bf16.gmra.mrb[76].mxu0 %v1896_v39 }
 0x2bf   :  { %v4960_v10 = vpop.eup %4959  ;;  %4268 = vmatmul.mubr.bf16.gmra.mrb[56].mxu1 %v1462_v14  ;;  %4971 = vtanh.f32 %v1360_v49 }
 0x2c0   :  { %v4962_v19 = vpop.eup %4961  ;;  %4360 = vmatpush3.bf16.msra.mxu1 %v4659_v55 }
 0x2c1   :  { %v4964_v22 = vpop.eup %4963  ;;  %4361 = vmatprep.subr.bf16.mxu1 %v4660_v53 }
 0x2c2   :  { %v4966_v12 = vpop.eup %4965  ;;  %v1898_v29 = vpack.c.bf16 %v4964_v22, %v4960_v10 }
 0x2c3   :  { %v1897_v56 = vpack.c.bf16 %v4966_v12, %v4962_v19 }
 0x2c4   :  { %4362 = vmatpush3.bf16.msra.mxu1 %v4660_v53 }
 0x2c5   :  { %4307 = vmatprep.mubr.bf16.mxu0 %v1897_v56  ;;  %4363 = vmatprep.subr.bf16.mxu1 %v4661_v42 }
 0x2c6   :  { %4308 = vmatmul.mubr.bf16.gmra.mrb[80].mxu0 %v1898_v29  ;;  %v4968_v0 = vpop.eup %4967 }
 0x2c7   :  { %v4970_v54 = vpop.eup %4969  ;;  %v1464_v47 = vpack.c.bf16 %v4968_v0, %v4968_v0 }
 0x2c8   :  { %v4233_v27 = vpop.f32.mrb[20].mxu1  ;;  %4364 = vmatpush3.bf16.msra.mxu1 %v4661_v42 }
 0x2c9   :  { %v4972_v21 = vpop.eup %4971  ;;  %v1661_v16 = vadd.f32 %v4233_v27, %v6237_v6  ;;  %v1652_v28 = vpop.f32.mrb[21].mxu1  ;;  %4365 = vmatprep.subr.bf16.mxu1 %v4662_v34 }
 0x2ca   :  { %v1653_v8 = vadd.f32 %v6237_v6, %v1652_v28  ;;  %v4234_v51 = vpop.f32.mrb[22].mxu1  ;;  %v1463_v2 = vpack.c.bf16 %v4972_v21, %v4970_v54 }
 0x2cb   :  { %4973 = vtanh.f32 %v1661_v16  ;;  %v1664_v45 = vadd.f32 %v4234_v51, %v6237_v6  ;;  %v1655_v20 = vpop.f32.mrb[23].mxu1 }
 0x2cc   :  { %4975 = vtanh.f32 %v1653_v8  ;;  %v1656_v26 = vadd.f32 %v6237_v6, %v1655_v20  ;;  %4271 = vmatprep.mubr.bf16.mxu1 %v1463_v2  ;;  %4366 = vmatpush3.bf16.msra.mxu1 %v4662_v34 }
 0x2cd   :  { %4977 = vtanh.f32 %v1664_v45  ;;  %4272 = vmatmul.mubr.bf16.gmra.mrb[60].mxu1 %v1464_v47  ;;  %4367 = vmatprep.subr.bf16.mxu1 %v4663_v3 }
 0x2ce   :  { %4979 = vtanh.f32 %v1656_v26 }
 0x2d0   :  { %4368 = vmatpush3.bf16.msra.mxu1 %v4663_v3 }
 0x2d1   :  { %4369 = vmatprep.subr.bf16.mxu1 %v4664_v60 }
 0x2d4   :  { %4370 = vmatpush3.bf16.msra.mxu1 %v4664_v60 }
 0x2d5   :  { %v4974_v36 = vpop.eup %4973 }
 0x2d6   :  { %v4976_v25 = vpop.eup %4975 }
 0x2d7   :  { %v4978_v48 = vpop.eup %4977 }
 0x2d8   :  { %v4980_v38 = vpop.eup %4979  ;;  %v1900_v9 = vpack.c.bf16 %v4978_v48, %v4974_v36 }
 0x2d9   :  { %v1899_v57 = vpack.c.bf16 %v4980_v38, %v4976_v25 }
 0x2db   :  { %4311 = vmatprep.mubr.bf16.mxu0 %v1899_v57 }
 0x2dc   :  { %4312 = vmatmul.mubr.bf16.gmra.mrb[84].mxu0 %v1900_v9 }
 0x2de   :  { %v4237_v61 = vpop.f32.mrb[24].mxu1 }
 0x2df   :  { %v1677_v58 = vadd.f32 %v4237_v61, %v6237_v6  ;;  %v1668_v35 = vpop.f32.mrb[25].mxu1 }
 0x2e0   :  { %v1669_v13 = vadd.f32 %v6237_v6, %v1668_v35  ;;  %v4238_v30 = vpop.f32.mrb[26].mxu1 }
 0x2e1   :  { %4981 = vtanh.f32 %v1677_v58  ;;  %v1680_v33 = vadd.f32 %v4238_v30, %v6237_v6  ;;  %v1671_v37 = vpop.f32.mrb[27].mxu1 }
 0x2e2   :  { %4983 = vtanh.f32 %v1669_v13  ;;  %v1672_v41 = vadd.f32 %v6237_v6, %v1671_v37 }
 0x2e3   :  { %4985 = vtanh.f32 %v1680_v33 }
 0x2e4   :  { %4987 = vtanh.f32 %v1672_v41 }
 0x2eb   :  { %v4982_v11 = vpop.eup %4981 }
 0x2ec   :  { %v4984_v7 = vpop.eup %4983 }
 0x2ed   :  { %v4986_v40 = vpop.eup %4985 }
 0x2ee   :  { %v4988_v59 = vpop.eup %4987  ;;  %v1902_v18 = vpack.c.bf16 %v4986_v40, %v4982_v11 }
 0x2ef   :  { %v1901_v4 = vpack.c.bf16 %v4988_v59, %v4984_v7 }
 0x2f1   :  { %4315 = vmatprep.mubr.bf16.mxu0 %v1901_v4 }
 0x2f2   :  { %4316 = vmatmul.mubr.bf16.gmra.mrb[88].mxu0 %v1902_v18 }
 0x2f4   :  { %v4241_v24 = vpop.f32.mrb[28].mxu1 }
 0x2f5   :  { %v1693_v1 = vadd.f32 %v4241_v24, %v6237_v6  ;;  %v1684_v44 = vpop.f32.mrb[29].mxu1 }
 0x2f6   :  { %v1685_v17 = vadd.f32 %v6237_v6, %v1684_v44  ;;  %v4242_v46 = vpop.f32.mrb[30].mxu1 }
 0x2f7   :  { %4989 = vtanh.f32 %v1693_v1  ;;  %v1696_v52 = vadd.f32 %v4242_v46, %v6237_v6  ;;  %v1687_v31 = vpop.f32.mrb[31].mxu1 }
 0x2f8   :  { %4991 = vtanh.f32 %v1685_v17  ;;  %v1688_v39 = vadd.f32 %v6237_v6, %v1687_v31 }
 0x2f9   :  { %4993 = vtanh.f32 %v1696_v52 }
 0x2fa   :  { %4995 = vtanh.f32 %v1688_v39 }
 0x301   :  { %v4990_v43 = vpop.eup %4989 }
 0x302   :  { %v4992_v14 = vpop.eup %4991 }
 0x303   :  { %v4994_v32 = vpop.eup %4993 }
 0x304   :  { %v4996_v5 = vpop.eup %4995  ;;  %v1904_v50 = vpack.c.bf16 %v4994_v32, %v4990_v43 }
 0x305   :  { %v1903_v23 = vpack.c.bf16 %v4996_v5, %v4992_v14 }
 0x307   :  { %4319 = vmatprep.mubr.bf16.mxu0 %v1903_v23 }
 0x308   :  { %4320 = vmatmul.mubr.bf16.gmra.mrb[92].mxu0 %v1904_v50 }
 0x30a   :  { %v4245_v62 = vpop.f32.mrb[32].mxu1 }
 0x30b   :  { %v1709_v49 = vadd.f32 %v4245_v62, %v6237_v6  ;;  %v1700_v10 = vpop.f32.mrb[33].mxu1 }
 0x30c   :  { %v1701_v19 = vadd.f32 %v6237_v6, %v1700_v10  ;;  %v4246_v22 = vpop.f32.mrb[34].mxu1 }
 0x30d   :  { %4997 = vtanh.f32 %v1709_v49  ;;  %v1712_v12 = vadd.f32 %v4246_v22, %v6237_v6  ;;  %v1703_v29 = vpop.f32.mrb[35].mxu1 }
 0x30e   :  { %4999 = vtanh.f32 %v1701_v19  ;;  %v1704_v56 = vadd.f32 %v6237_v6, %v1703_v29 }
 0x30f   :  { %5001 = vtanh.f32 %v1712_v12 }
 0x310   :  { %5003 = vtanh.f32 %v1704_v56  ;;  %v6331_v56 = vld [vmem:[%s6913_s2 + $0x3] ss:$0 sm:$0xff] }
 0x317   :  { %v4998_v0 = vpop.eup %4997 }
 0x318   :  { %v5000_v54 = vpop.eup %4999 }
 0x319   :  { %v5002_v27 = vpop.eup %5001 }
 0x31a   :  { %v5004_v21 = vpop.eup %5003  ;;  %v1906_v16 = vpack.c.bf16 %v5002_v27, %v4998_v0 }
 0x31b   :  { %v1905_v28 = vpack.c.bf16 %v5004_v21, %v5000_v54 }
 0x31d   :  { %4323 = vmatprep.mubr.bf16.mxu0 %v1905_v28 }
 0x31e   :  { %4324 = vmatmul.mubr.bf16.gmra.mrb[96].mxu0 %v1906_v16 }
 0x320   :  { %v4249_v8 = vpop.f32.mrb[36].mxu1 }
 0x321   :  { %v1725_v51 = vadd.f32 %v4249_v8, %v6237_v6  ;;  %v1716_v2 = vpop.f32.mrb[37].mxu1 }
 0x322   :  { %v1717_v47 = vadd.f32 %v6237_v6, %v1716_v2  ;;  %v4250_v45 = vpop.f32.mrb[38].mxu1 }
 0x323   :  { %5005 = vtanh.f32 %v1725_v51  ;;  %v1728_v20 = vadd.f32 %v4250_v45, %v6237_v6  ;;  %v1719_v26 = vpop.f32.mrb[39].mxu1 }
 0x324   :  { %5007 = vtanh.f32 %v1717_v47  ;;  %v1720_v36 = vadd.f32 %v6237_v6, %v1719_v26 }
 0x325   :  { %5009 = vtanh.f32 %v1728_v20 }
 0x326   :  { %5011 = vtanh.f32 %v1720_v36 }
 0x32d   :  { %v5006_v25 = vpop.eup %5005 }
 0x32e   :  { %v5008_v48 = vpop.eup %5007 }
 0x32f   :  { %v5010_v38 = vpop.eup %5009 }
 0x330   :  { %v5012_v9 = vpop.eup %5011  ;;  %v1908_v57 = vpack.c.bf16 %v5010_v38, %v5006_v25 }
 0x331   :  { %v1907_v61 = vpack.c.bf16 %v5012_v9, %v5008_v48 }
 0x333   :  { %4327 = vmatprep.mubr.bf16.mxu0 %v1907_v61 }
 0x334   :  { %4328 = vmatmul.mubr.bf16.gmra.mrb[100].mxu0 %v1908_v57 }
 0x336   :  { %v4253_v58 = vpop.f32.mrb[40].mxu1 }
 0x337   :  { %v1741_v35 = vadd.f32 %v4253_v58, %v6237_v6  ;;  %v1732_v13 = vpop.f32.mrb[41].mxu1 }
 0x338   :  { %v1733_v30 = vadd.f32 %v6237_v6, %v1732_v13  ;;  %v4254_v33 = vpop.f32.mrb[42].mxu1 }
 0x339   :  { %5013 = vtanh.f32 %v1741_v35  ;;  %v1744_v37 = vadd.f32 %v4254_v33, %v6237_v6  ;;  %v1735_v41 = vpop.f32.mrb[43].mxu1 }
 0x33a   :  { %5015 = vtanh.f32 %v1733_v30  ;;  %v1736_v63 = vadd.f32 %v6237_v6, %v1735_v41 }
 0x33b   :  { %5017 = vtanh.f32 %v1744_v37 }
 0x33c   :  { %5019 = vtanh.f32 %v1736_v63 }
 0x343   :  { %v5014_v15 = vpop.eup %5013 }
 0x344   :  { %v5016_v11 = vpop.eup %5015 }
 0x345   :  { %v5018_v7 = vpop.eup %5017 }
 0x346   :  { %v5020_v55 = vpop.eup %5019  ;;  %v1910_v40 = vpack.c.bf16 %v5018_v7, %v5014_v15 }
 0x347   :  { %v1909_v59 = vpack.c.bf16 %v5020_v55, %v5016_v11 }
 0x349   :  { %4331 = vmatprep.mubr.bf16.mxu0 %v1909_v59 }
 0x34a   :  { %4332 = vmatmul.mubr.bf16.gmra.mrb[104].mxu0 %v1910_v40 }
 0x34c   :  { %v4257_v18 = vpop.f32.mrb[44].mxu1 }
 0x34d   :  { %v1757_v4 = vadd.f32 %v4257_v18, %v6237_v6  ;;  %v1748_v24 = vpop.f32.mrb[45].mxu1 }
 0x34e   :  { %v1749_v1 = vadd.f32 %v6237_v6, %v1748_v24  ;;  %v4258_v44 = vpop.f32.mrb[46].mxu1 }
 0x34f   :  { %5021 = vtanh.f32 %v1757_v4  ;;  %v1760_v17 = vadd.f32 %v4258_v44, %v6237_v6  ;;  %v1751_v46 = vpop.f32.mrb[47].mxu1 }
 0x350   :  { %5023 = vtanh.f32 %v1749_v1  ;;  %v1752_v52 = vadd.f32 %v6237_v6, %v1751_v46 }
 0x351   :  { %5025 = vtanh.f32 %v1760_v17 }
 0x352   :  { %5027 = vtanh.f32 %v1752_v52 }
 0x359   :  { %v5022_v31 = vpop.eup %5021 }
 0x35a   :  { %v5024_v53 = vpop.eup %5023 }
 0x35b   :  { %v5026_v39 = vpop.eup %5025 }
 0x35c   :  { %v5028_v42 = vpop.eup %5027  ;;  %v1912_v34 = vpack.c.bf16 %v5026_v39, %v5022_v31 }
 0x35d   :  { %v1911_v43 = vpack.c.bf16 %v5028_v42, %v5024_v53 }
 0x35f   :  { %4335 = vmatprep.mubr.bf16.mxu0 %v1911_v43 }
 0x360   :  { %4336 = vmatmul.mubr.bf16.gmra.mrb[108].mxu0 %v1912_v34 }
 0x362   :  { %v4261_v14 = vpop.f32.mrb[48].mxu1 }
 0x363   :  { %v1773_v32 = vadd.f32 %v4261_v14, %v6237_v6  ;;  %v1764_v3 = vpop.f32.mrb[49].mxu1 }
 0x364   :  { %v1765_v5 = vadd.f32 %v6237_v6, %v1764_v3  ;;  %v4262_v50 = vpop.f32.mrb[50].mxu1 }
 0x365   :  { %5029 = vtanh.f32 %v1773_v32  ;;  %v1776_v23 = vadd.f32 %v4262_v50, %v6237_v6  ;;  %v1767_v60 = vpop.f32.mrb[51].mxu1 }
 0x366   :  { %5031 = vtanh.f32 %v1765_v5  ;;  %v1768_v62 = vadd.f32 %v6237_v6, %v1767_v60 }
 0x367   :  { %5033 = vtanh.f32 %v1776_v23 }
 0x368   :  { %5035 = vtanh.f32 %v1768_v62 }
 0x36f   :  { %v5030_v49 = vpop.eup %5029 }
 0x370   :  { %v5032_v10 = vpop.eup %5031 }
 0x371   :  { %v5034_v19 = vpop.eup %5033 }
 0x372   :  { %v5036_v22 = vpop.eup %5035  ;;  %v1914_v12 = vpack.c.bf16 %v5034_v19, %v5030_v49 }
 0x373   :  { %v1913_v29 = vpack.c.bf16 %v5036_v22, %v5032_v10 }
 0x375   :  { %4339 = vmatprep.mubr.bf16.mxu0 %v1913_v29 }
 0x376   :  { %4340 = vmatmul.mubr.bf16.gmra.mrb[112].mxu0 %v1914_v12 }
 0x378   :  { %v4293_v0 = vpop.f32.mrb[64].mxu0 }
 0x379   :  { %v2037_v54 = vadd.f32 %v4293_v0, %v6331_v56  ;;  %v2028_v27 = vpop.f32.mrb[65].mxu0 }
 0x37a   :  { %v2029_v21 = vadd.f32 %v6331_v56, %v2028_v27  ;;  %v4294_v16 = vpop.f32.mrb[66].mxu0 }
 0x37b   :  { %5037 = vtanh.f32 %v2037_v54  ;;  %v2040_v28 = vadd.f32 %v4294_v16, %v6331_v56  ;;  %v4265_v8 = vpop.f32.mrb[52].mxu1  ;;  %v2031_v51 = vpop.f32.mrb[67].mxu0 }
 0x37c   :  { %5039 = vtanh.f32 %v2029_v21  ;;  %v1789_v2 = vadd.f32 %v4265_v8, %v6237_v6  ;;  %v2032_v47 = vadd.f32 %v6331_v56, %v2031_v51  ;;  %v1780_v45 = vpop.f32.mrb[53].mxu1 }
 0x37d   :  { %5041 = vtanh.f32 %v2040_v28  ;;  %v1781_v20 = vadd.f32 %v6237_v6, %v1780_v45  ;;  %v4266_v26 = vpop.f32.mrb[54].mxu1 }
 0x37e   :  { %5043 = vtanh.f32 %v1789_v2  ;;  %v1792_v36 = vadd.f32 %v4266_v26, %v6237_v6  ;;  %v1783_v25 = vpop.f32.mrb[55].mxu1 }
 0x37f   :  { %5045 = vtanh.f32 %v2032_v47  ;;  %v1784_v48 = vadd.f32 %v6237_v6, %v1783_v25 }
 0x380   :  { %5047 = vtanh.f32 %v1781_v20  ;;  %v4297_v38 = vpop.f32.mrb[68].mxu0 }
 0x381   :  { %5049 = vtanh.f32 %v1792_v36  ;;  %v2053_v9 = vadd.f32 %v4297_v38, %v6331_v56  ;;  %v2044_v57 = vpop.f32.mrb[69].mxu0 }
 0x382   :  { %5051 = vtanh.f32 %v1784_v48  ;;  %v2045_v61 = vadd.f32 %v6331_v56, %v2044_v57  ;;  %v4298_v58 = vpop.f32.mrb[70].mxu0 }
 0x383   :  { %5053 = vtanh.f32 %v2053_v9  ;;  %v2056_v35 = vadd.f32 %v4298_v58, %v6331_v56  ;;  %v2047_v13 = vpop.f32.mrb[71].mxu0 }
 0x384   :  { %5055 = vtanh.f32 %v2045_v61  ;;  %v2048_v30 = vadd.f32 %v6331_v56, %v2047_v13 }
 0x385   :  { %v5038_v33 = vpop.eup %5037  ;;  %5057 = vtanh.f32 %v2056_v35 }
 0x386   :  { %v5040_v37 = vpop.eup %5039  ;;  %5059 = vtanh.f32 %v2048_v30 }
 0x387   :  { %v5042_v41 = vpop.eup %5041 }
 0x388   :  { %v5044_v63 = vpop.eup %5043  ;;  %v4301_v15 = vpop.f32.mrb[72].mxu0  ;;  %v2346_v11 = vpack.c.bf16 %v5042_v41, %v5038_v33 }
 0x389   :  { %v5046_v7 = vpop.eup %5045  ;;  %v2069_v55 = vadd.f32 %v4301_v15, %v6331_v56  ;;  %v2060_v40 = vpop.f32.mrb[73].mxu0 }
 0x38a   :  { %v5048_v59 = vpop.eup %5047  ;;  %v2061_v18 = vadd.f32 %v6331_v56, %v2060_v40  ;;  %v4302_v4 = vpop.f32.mrb[74].mxu0  ;;  %v2345_v24 = vpack.c.bf16 %v5046_v7, %v5040_v37 }
 0x38b   :  { %v5050_v1 = vpop.eup %5049  ;;  %5061 = vtanh.f32 %v2069_v55  ;;  %v2072_v44 = vadd.f32 %v4302_v4, %v6331_v56  ;;  %v2063_v17 = vpop.f32.mrb[75].mxu0 }
 0x38c   :  { %v5052_v46 = vpop.eup %5051  ;;  %5063 = vtanh.f32 %v2061_v18  ;;  %v2064_v52 = vadd.f32 %v6331_v56, %v2063_v17  ;;  %4371 = vmatprep.mubr.bf16.mxu1 %v2345_v24  ;;  %v1916_v31 = vpack.c.bf16 %v5050_v1, %v5044_v63 }
 0x38d   :  { %v5054_v53 = vpop.eup %5053  ;;  %5065 = vtanh.f32 %v2072_v44  ;;  %4372 = vmatmul.mubr.bf16.vlgmr.msra.gmra.mrb[64].mxu1 %v2346_v11  ;;  %v1915_v39 = vpack.c.bf16 %v5052_v46, %v5048_v59 }
 0x38e   :  { %v5056_v42 = vpop.eup %5055  ;;  %5067 = vtanh.f32 %v2064_v52 }
 0x38f   :  { %v5058_v34 = vpop.eup %5057  ;;  %4343 = vmatprep.mubr.bf16.mxu0 %v1915_v39 }
 0x390   :  { %v5060_v43 = vpop.eup %5059  ;;  %4344 = vmatmul.mubr.bf16.gmra.mrb[116].mxu0 %v1916_v31  ;;  %v2348_v14 = vpack.c.bf16 %v5058_v34, %v5054_v53 }
 0x391   :  { %v4305_v32 = vpop.f32.mrb[76].mxu0  ;;  %v2347_v3 = vpack.c.bf16 %v5060_v43, %v5056_v42 }
 0x392   :  { %v2085_v5 = vadd.f32 %v4305_v32, %v6331_v56  ;;  %v4269_v50 = vpop.f32.mrb[56].mxu1  ;;  %v2076_v23 = vpop.f32.mrb[77].mxu0 }
 0x393   :  { %v1805_v60 = vadd.f32 %v4269_v50, %v6237_v6  ;;  %v2077_v62 = vadd.f32 %v6331_v56, %v2076_v23  ;;  %v1796_v49 = vpop.f32.mrb[57].mxu1  ;;  %v4306_v10 = vpop.f32.mrb[78].mxu0  ;;  %4375 = vmatprep.mubr.bf16.mxu1 %v2347_v3 }
 0x394   :  { %5069 = vtanh.f32 %v2085_v5  ;;  %v1797_v19 = vadd.f32 %v6237_v6, %v1796_v49  ;;  %v2088_v22 = vadd.f32 %v4306_v10, %v6331_v56  ;;  %v4270_v12 = vpop.f32.mrb[58].mxu1  ;;  %v2079_v29 = vpop.f32.mrb[79].mxu0 }
 0x395   :  { %v5062_v0 = vpop.eup %5061  ;;  %5071 = vtanh.f32 %v1805_v60  ;;  %v1808_v54 = vadd.f32 %v4270_v12, %v6237_v6  ;;  %v1799_v27 = vpop.f32.mrb[59].mxu1  ;;  %4376 = vmatmul.mubr.bf16.gmra.mrb[68].mxu1 %v2348_v14  ;;  %v2080_v16 = vadd.f32 %v6331_v56, %v2079_v29 }
 0x396   :  { %v5064_v21 = vpop.eup %5063  ;;  %5073 = vtanh.f32 %v2077_v62  ;;  %v1800_v8 = vadd.f32 %v6237_v6, %v1799_v27 }
 0x397   :  { %v5066_v28 = vpop.eup %5065  ;;  %5075 = vtanh.f32 %v1797_v19 }
 0x398   :  { %v5068_v51 = vpop.eup %5067  ;;  %5077 = vtanh.f32 %v2088_v22  ;;  %v2350_v2 = vpack.c.bf16 %v5066_v28, %v5062_v0 }
 0x399   :  { %5079 = vtanh.f32 %v1808_v54  ;;  %v2349_v47 = vpack.c.bf16 %v5068_v51, %v5064_v21  ;;  %v4309_v45 = vpop.f32.mrb[80].mxu0  ;;  %v4665_v51 = vld [vmem:[%s6912_s1 + $0x140] sm:$0xff]  }
 0x39a   :  { %5081 = vtanh.f32 %v2080_v16  ;;  %v2101_v20 = vadd.f32 %v4309_v45, %v6331_v56  ;;  %v2092_v26 = vpop.f32.mrb[81].mxu0  ;;  %4435 = vmatprep.subr.bf16.mxu0 %v4665_v51 }
 0x39b   :  { %5083 = vtanh.f32 %v1800_v8  ;;  %4379 = vmatprep.mubr.bf16.mxu1 %v2349_v47  ;;  %v2093_v36 = vadd.f32 %v6331_v56, %v2092_v26  ;;  %v4310_v25 = vpop.f32.mrb[82].mxu0  ;;  %4436 = vmatpush3.bf16.msra.mxu0 %v4665_v51 }
 0x39c   :  { %5085 = vtanh.f32 %v2101_v20  ;;  %v2104_v48 = vadd.f32 %v4310_v25, %v6331_v56  ;;  %v2095_v38 = vpop.f32.mrb[83].mxu0  ;;  %v4667_v20 = vld [vmem:[%s6912_s1 + $0x150] sm:$0xff]  }
 0x39d   :  { %4380 = vmatmul.mubr.bf16.gmra.mrb[72].mxu1 %v2350_v2  ;;  %5087 = vtanh.f32 %v2093_v36  ;;  %v2096_v9 = vadd.f32 %v6331_v56, %v2095_v38  ;;  %v4666_v2 = vld [vmem:[%s6912_s1 + $0x148] sm:$0xff]  }
 0x39e   :  { %v5070_v57 = vpop.eup %5069  ;;  %5089 = vtanh.f32 %v2104_v48  ;;  %4437 = vmatprep.subr.bf16.mxu0 %v4666_v2 }
 0x39f   :  { %v5072_v61 = vpop.eup %5071  ;;  %5091 = vtanh.f32 %v2096_v9  ;;  %4438 = vmatpush3.bf16.msra.mxu0 %v4666_v2 }
 0x3a0   :  { %v5074_v58 = vpop.eup %5073  ;;  %v4273_v35 = vpop.f32.mrb[60].mxu1  ;;  %4439 = vmatprep.subr.bf16.mxu0 %v4667_v20 }
 0x3a1   :  { %v5076_v13 = vpop.eup %5075  ;;  %v1821_v30 = vadd.f32 %v4273_v35, %v6237_v6  ;;  %v1812_v33 = vpop.f32.mrb[61].mxu1 }
 0x3a2   :  { %v5078_v37 = vpop.eup %5077  ;;  %v1813_v41 = vadd.f32 %v6237_v6, %v1812_v33  ;;  %v4274_v63 = vpop.f32.mrb[62].mxu1  ;;  %v4668_v33 = vld [vmem:[%s6912_s1 + $0x158] sm:$0xff]  }
 0x3a3   :  { %v5080_v15 = vpop.eup %5079  ;;  %v2352_v11 = vpack.c.bf16 %v5078_v37, %v5070_v57  ;;  %v1815_v7 = vpop.f32.mrb[63].mxu1  ;;  %5093 = vtanh.f32 %v1821_v30  ;;  %4440 = vmatpush3.bf16.msra.mxu0 %v4667_v20  ;;  %v4669_v37 = vld [vmem:[%s6912_s1 + $0x160] sm:$0xff]  }
 0x3a4   :  { %v5082_v55 = vpop.eup %5081  ;;  %v1918_v40 = vpack.c.bf16 %v5080_v15, %v5072_v61  ;;  %v1816_v59 = vadd.f32 %v6237_v6, %v1815_v7  ;;  %5095 = vtanh.f32 %v1813_v41  ;;  %4441 = vmatprep.subr.bf16.mxu0 %v4668_v33  ;;  %v4670_v15 = vld [vmem:[%s6912_s1 + $0x168] sm:$0xff]  }
 0x3a5   :  { %v5084_v18 = vpop.eup %5083  ;;  %v2351_v4 = vpack.c.bf16 %v5082_v55, %v5074_v58 }
 0x3a6   :  { %v5086_v24 = vpop.eup %5085  ;;  %v1917_v1 = vpack.c.bf16 %v5084_v18, %v5076_v13  ;;  %5097 = vtanh.f32 %v1816_v59  ;;  %v4671_v59 = vld [vmem:[%s6912_s1 + $0x170] sm:$0xff]  }
 0x3a7   :  { %v5088_v44 = vpop.eup %5087  ;;  %4383 = vmatprep.mubr.bf16.mxu1 %v2351_v4  ;;  %4442 = vmatpush3.bf16.msra.mxu0 %v4668_v33  ;;  %v4672_v4 = vld [vmem:[%s6912_s1 + $0x178] sm:$0xff]  }
 0x3a8   :  { %v5090_v17 = vpop.eup %5089  ;;  %4347 = vmatprep.mubr.bf16.mxu0 %v1917_v1  ;;  %4384 = vmatmul.mubr.bf16.gmra.mrb[76].mxu1 %v2352_v11 }
 0x3a9   :  { %v5092_v46 = vpop.eup %5091  ;;  %4348 = vmatmul.mubr.bf16.gmra.mrb[120].mxu0 %v1918_v40  ;;  %v2354_v52 = vpack.c.bf16 %v5090_v17, %v5086_v24  ;;  %4443 = vmatprep.subr.bf16.mxu0 %v4669_v37 }
 0x3aa   :  { %v2353_v31 = vpack.c.bf16 %v5092_v46, %v5088_v44 }
 0x3ab   :  { %4444 = vmatpush3.bf16.msra.mxu0 %v4669_v37 }
 0x3ac   :  { %4387 = vmatprep.mubr.bf16.mxu1 %v2353_v31  ;;  %4445 = vmatprep.subr.bf16.mxu0 %v4670_v15 }
 0x3ad   :  { %v5094_v53 = vpop.eup %5093 }
 0x3ae   :  { %v5096_v39 = vpop.eup %5095  ;;  %v1920_v5 = vpack.c.bf16 %v5094_v53, %v5094_v53 }
 0x3af   :  { %v4313_v42 = vpop.f32.mrb[84].mxu0  ;;  %4446 = vmatpush3.bf16.msra.mxu0 %v4670_v15 }
 0x3b0   :  { %v5098_v6 = vpop.eup %5097  ;;  %4388 = vmatmul.mubr.bf16.gmra.mrb[80].mxu1 %v2354_v52  ;;  %v2117_v34 = vadd.f32 %v4313_v42, %v6331_v56  ;;  %v2108_v43 = vpop.f32.mrb[85].mxu0  ;;  %4447 = vmatprep.subr.bf16.mxu0 %v4671_v59 }
 0x3b1   :  { %v2109_v14 = vadd.f32 %v6331_v56, %v2108_v43  ;;  %v4314_v32 = vpop.f32.mrb[86].mxu0  ;;  %v1919_v3 = vpack.c.bf16 %v5098_v6, %v5096_v39 }
 0x3b2   :  { %5099 = vtanh.f32 %v2117_v34  ;;  %v2120_v50 = vadd.f32 %v4314_v32, %v6331_v56  ;;  %v2111_v23 = vpop.f32.mrb[87].mxu0 }
 0x3b3   :  { %5101 = vtanh.f32 %v2109_v14  ;;  %v2112_v60 = vadd.f32 %v6331_v56, %v2111_v23  ;;  %4351 = vmatprep.mubr.bf16.mxu0 %v1919_v3  ;;  %4448 = vmatpush3.bf16.msra.mxu0 %v4671_v59 }
 0x3b4   :  { %5103 = vtanh.f32 %v2120_v50  ;;  %4352 = vmatmul.mubr.bf16.gmra.mrb[124].mxu0 %v1920_v5  ;;  %4449 = vmatprep.subr.bf16.mxu0 %v4672_v4 }
 0x3b5   :  { %5105 = vtanh.f32 %v2112_v60 }
 0x3b7   :  { %4450 = vmatpush3.bf16.msra.mxu0 %v4672_v4 }
 0x3bc   :  { %v5100_v62 = vpop.eup %5099 }
 0x3bd   :  { %v5102_v49 = vpop.eup %5101 }
 0x3be   :  { %v5104_v10 = vpop.eup %5103 }
 0x3bf   :  { %v5106_v19 = vpop.eup %5105  ;;  %v2356_v22 = vpack.c.bf16 %v5104_v10, %v5100_v62 }
 0x3c0   :  { %v2355_v12 = vpack.c.bf16 %v5106_v19, %v5102_v49 }
 0x3c2   :  { %4391 = vmatprep.mubr.bf16.mxu1 %v2355_v12 }
 0x3c3   :  { %4392 = vmatmul.mubr.bf16.gmra.mrb[84].mxu1 %v2356_v22 }
 0x3c5   :  { %v4317_v29 = vpop.f32.mrb[88].mxu0 }
 0x3c6   :  { %v2133_v0 = vadd.f32 %v4317_v29, %v6331_v56  ;;  %v2124_v54 = vpop.f32.mrb[89].mxu0 }
 0x3c7   :  { %v2125_v27 = vadd.f32 %v6331_v56, %v2124_v54  ;;  %v4318_v21 = vpop.f32.mrb[90].mxu0 }
 0x3c8   :  { %5107 = vtanh.f32 %v2133_v0  ;;  %v2136_v16 = vadd.f32 %v4318_v21, %v6331_v56  ;;  %v2127_v28 = vpop.f32.mrb[91].mxu0 }
 0x3c9   :  { %5109 = vtanh.f32 %v2125_v27  ;;  %v2128_v8 = vadd.f32 %v6331_v56, %v2127_v28 }
 0x3ca   :  { %5111 = vtanh.f32 %v2136_v16 }
 0x3cb   :  { %5113 = vtanh.f32 %v2128_v8 }
 0x3d2   :  { %v5108_v47 = vpop.eup %5107 }
 0x3d3   :  { %v5110_v45 = vpop.eup %5109 }
 0x3d4   :  { %v5112_v26 = vpop.eup %5111 }
 0x3d5   :  { %v5114_v36 = vpop.eup %5113  ;;  %v2358_v25 = vpack.c.bf16 %v5112_v26, %v5108_v47 }
 0x3d6   :  { %v2357_v48 = vpack.c.bf16 %v5114_v36, %v5110_v45 }
 0x3d8   :  { %4395 = vmatprep.mubr.bf16.mxu1 %v2357_v48 }
 0x3d9   :  { %4396 = vmatmul.mubr.bf16.gmra.mrb[88].mxu1 %v2358_v25 }
 0x3db   :  { %v4321_v38 = vpop.f32.mrb[92].mxu0 }
 0x3dc   :  { %v2149_v9 = vadd.f32 %v4321_v38, %v6331_v56  ;;  %v2140_v57 = vpop.f32.mrb[93].mxu0 }
 0x3dd   :  { %v2141_v61 = vadd.f32 %v6331_v56, %v2140_v57  ;;  %v4322_v58 = vpop.f32.mrb[94].mxu0 }
 0x3de   :  { %5115 = vtanh.f32 %v2149_v9  ;;  %v2152_v35 = vadd.f32 %v4322_v58, %v6331_v56  ;;  %v2143_v13 = vpop.f32.mrb[95].mxu0 }
 0x3df   :  { %5117 = vtanh.f32 %v2141_v61  ;;  %v2144_v30 = vadd.f32 %v6331_v56, %v2143_v13 }
 0x3e0   :  { %5119 = vtanh.f32 %v2152_v35 }
 0x3e1   :  { %5121 = vtanh.f32 %v2144_v30 }
 0x3e8   :  { %v5116_v41 = vpop.eup %5115 }
 0x3e9   :  { %v5118_v63 = vpop.eup %5117 }
 0x3ea   :  { %v5120_v11 = vpop.eup %5119 }
 0x3eb   :  { %v5122_v7 = vpop.eup %5121  ;;  %v2360_v55 = vpack.c.bf16 %v5120_v11, %v5116_v41 }
 0x3ec   :  { %v2359_v40 = vpack.c.bf16 %v5122_v7, %v5118_v63 }
 0x3ee   :  { %4399 = vmatprep.mubr.bf16.mxu1 %v2359_v40 }
 0x3ef   :  { %4400 = vmatmul.mubr.bf16.gmra.mrb[92].mxu1 %v2360_v55 }
 0x3f1   :  { %v4325_v18 = vpop.f32.mrb[96].mxu0 }
 0x3f2   :  { %v2165_v24 = vadd.f32 %v4325_v18, %v6331_v56  ;;  %v2156_v1 = vpop.f32.mrb[97].mxu0 }
 0x3f3   :  { %v2157_v44 = vadd.f32 %v6331_v56, %v2156_v1  ;;  %v4326_v17 = vpop.f32.mrb[98].mxu0 }
 0x3f4   :  { %5123 = vtanh.f32 %v2165_v24  ;;  %v2168_v46 = vadd.f32 %v4326_v17, %v6331_v56  ;;  %v2159_v52 = vpop.f32.mrb[99].mxu0 }
 0x3f5   :  { %5125 = vtanh.f32 %v2157_v44  ;;  %v2160_v31 = vadd.f32 %v6331_v56, %v2159_v52 }
 0x3f6   :  { %5127 = vtanh.f32 %v2168_v46 }
 0x3f7   :  { %5129 = vtanh.f32 %v2160_v31  ;;  %v6423_v31 = vld [vmem:[%s6913_s2 + $0x4] ss:$0 sm:$0xff] }
 0x3fe   :  { %v5124_v53 = vpop.eup %5123 }
 0x3ff   :  { %v5126_v39 = vpop.eup %5125 }
 0x400   :  { %v5128_v42 = vpop.eup %5127 }
 0x401   :  { %v5130_v6 = vpop.eup %5129  ;;  %v2362_v34 = vpack.c.bf16 %v5128_v42, %v5124_v53 }
 0x402   :  { %v2361_v43 = vpack.c.bf16 %v5130_v6, %v5126_v39 }
 0x404   :  { %4403 = vmatprep.mubr.bf16.mxu1 %v2361_v43 }
 0x405   :  { %4404 = vmatmul.mubr.bf16.gmra.mrb[96].mxu1 %v2362_v34 }
 0x407   :  { %v4329_v14 = vpop.f32.mrb[100].mxu0 }
 0x408   :  { %v2181_v32 = vadd.f32 %v4329_v14, %v6331_v56  ;;  %v2172_v3 = vpop.f32.mrb[101].mxu0 }
 0x409   :  { %v2173_v5 = vadd.f32 %v6331_v56, %v2172_v3  ;;  %v4330_v50 = vpop.f32.mrb[102].mxu0 }
 0x40a   :  { %5131 = vtanh.f32 %v2181_v32  ;;  %v2184_v23 = vadd.f32 %v4330_v50, %v6331_v56  ;;  %v2175_v60 = vpop.f32.mrb[103].mxu0 }
 0x40b   :  { %5133 = vtanh.f32 %v2173_v5  ;;  %v2176_v62 = vadd.f32 %v6331_v56, %v2175_v60 }
 0x40c   :  { %5135 = vtanh.f32 %v2184_v23 }
 0x40d   :  { %5137 = vtanh.f32 %v2176_v62 }
 0x414   :  { %v5132_v49 = vpop.eup %5131 }
 0x415   :  { %v5134_v10 = vpop.eup %5133 }
 0x416   :  { %v5136_v19 = vpop.eup %5135 }
 0x417   :  { %v5138_v22 = vpop.eup %5137  ;;  %v2364_v12 = vpack.c.bf16 %v5136_v19, %v5132_v49 }
 0x418   :  { %v2363_v29 = vpack.c.bf16 %v5138_v22, %v5134_v10 }
 0x41a   :  { %4407 = vmatprep.mubr.bf16.mxu1 %v2363_v29 }
 0x41b   :  { %4408 = vmatmul.mubr.bf16.gmra.mrb[100].mxu1 %v2364_v12 }
 0x41d   :  { %v4333_v0 = vpop.f32.mrb[104].mxu0 }
 0x41e   :  { %v2197_v54 = vadd.f32 %v4333_v0, %v6331_v56  ;;  %v2188_v27 = vpop.f32.mrb[105].mxu0 }
 0x41f   :  { %v2189_v21 = vadd.f32 %v6331_v56, %v2188_v27  ;;  %v4334_v16 = vpop.f32.mrb[106].mxu0 }
 0x420   :  { %5139 = vtanh.f32 %v2197_v54  ;;  %v2200_v28 = vadd.f32 %v4334_v16, %v6331_v56  ;;  %v2191_v8 = vpop.f32.mrb[107].mxu0 }
 0x421   :  { %5141 = vtanh.f32 %v2189_v21  ;;  %v2192_v51 = vadd.f32 %v6331_v56, %v2191_v8 }
 0x422   :  { %5143 = vtanh.f32 %v2200_v28 }
 0x423   :  { %5145 = vtanh.f32 %v2192_v51 }
 0x42a   :  { %v5140_v2 = vpop.eup %5139 }
 0x42b   :  { %v5142_v47 = vpop.eup %5141 }
 0x42c   :  { %v5144_v45 = vpop.eup %5143 }
 0x42d   :  { %v5146_v20 = vpop.eup %5145  ;;  %v2366_v26 = vpack.c.bf16 %v5144_v45, %v5140_v2 }
 0x42e   :  { %v2365_v36 = vpack.c.bf16 %v5146_v20, %v5142_v47 }
 0x430   :  { %4411 = vmatprep.mubr.bf16.mxu1 %v2365_v36 }
 0x431   :  { %4412 = vmatmul.mubr.bf16.gmra.mrb[104].mxu1 %v2366_v26 }
 0x433   :  { %v4337_v25 = vpop.f32.mrb[108].mxu0 }
 0x434   :  { %v2213_v48 = vadd.f32 %v4337_v25, %v6331_v56  ;;  %v2204_v38 = vpop.f32.mrb[109].mxu0 }
 0x435   :  { %v2205_v9 = vadd.f32 %v6331_v56, %v2204_v38  ;;  %v4338_v57 = vpop.f32.mrb[110].mxu0 }
 0x436   :  { %5147 = vtanh.f32 %v2213_v48  ;;  %v2216_v61 = vadd.f32 %v4338_v57, %v6331_v56  ;;  %v2207_v58 = vpop.f32.mrb[111].mxu0 }
 0x437   :  { %5149 = vtanh.f32 %v2205_v9  ;;  %v2208_v35 = vadd.f32 %v6331_v56, %v2207_v58 }
 0x438   :  { %5151 = vtanh.f32 %v2216_v61 }
 0x439   :  { %5153 = vtanh.f32 %v2208_v35 }
 0x440   :  { %v5148_v13 = vpop.eup %5147 }
 0x441   :  { %v5150_v30 = vpop.eup %5149 }
 0x442   :  { %v5152_v33 = vpop.eup %5151 }
 0x443   :  { %v5154_v37 = vpop.eup %5153  ;;  %v2368_v41 = vpack.c.bf16 %v5152_v33, %v5148_v13 }
 0x444   :  { %v2367_v63 = vpack.c.bf16 %v5154_v37, %v5150_v30 }
 0x446   :  { %4415 = vmatprep.mubr.bf16.mxu1 %v2367_v63 }
 0x447   :  { %4416 = vmatmul.mubr.bf16.gmra.mrb[108].mxu1 %v2368_v41 }
 0x449   :  { %v4341_v15 = vpop.f32.mrb[112].mxu0 }
 0x44a   :  { %v2229_v11 = vadd.f32 %v4341_v15, %v6331_v56  ;;  %v2220_v7 = vpop.f32.mrb[113].mxu0 }
 0x44b   :  { %v2221_v55 = vadd.f32 %v6331_v56, %v2220_v7  ;;  %v4342_v40 = vpop.f32.mrb[114].mxu0 }
 0x44c   :  { %5155 = vtanh.f32 %v2229_v11  ;;  %v2232_v59 = vadd.f32 %v4342_v40, %v6331_v56  ;;  %v2223_v18 = vpop.f32.mrb[115].mxu0 }
 0x44d   :  { %5157 = vtanh.f32 %v2221_v55  ;;  %v2224_v4 = vadd.f32 %v6331_v56, %v2223_v18 }
 0x44e   :  { %5159 = vtanh.f32 %v2232_v59 }
 0x44f   :  { %5161 = vtanh.f32 %v2224_v4 }
 0x456   :  { %v5156_v24 = vpop.eup %5155 }
 0x457   :  { %v5158_v1 = vpop.eup %5157 }
 0x458   :  { %v5160_v44 = vpop.eup %5159 }
 0x459   :  { %v5162_v17 = vpop.eup %5161  ;;  %v2370_v46 = vpack.c.bf16 %v5160_v44, %v5156_v24 }
 0x45a   :  { %v2369_v52 = vpack.c.bf16 %v5162_v17, %v5158_v1 }
 0x45c   :  { %4419 = vmatprep.mubr.bf16.mxu1 %v2369_v52 }
 0x45d   :  { %4420 = vmatmul.mubr.bf16.gmra.mrb[112].mxu1 %v2370_v46 }
 0x460   :  { %v4373_v53 = vpop.f32.mrb[64].mxu1 }
 0x461   :  { %v2493_v39 = vadd.f32 %v4373_v53, %v6423_v31  ;;  %v2484_v42 = vpop.f32.mrb[65].mxu1 }
 0x462   :  { %v2485_v6 = vadd.f32 %v6423_v31, %v2484_v42  ;;  %v4374_v34 = vpop.f32.mrb[66].mxu1 }
 0x463   :  { %5163 = vtanh.f32 %v2493_v39  ;;  %v2496_v43 = vadd.f32 %v4374_v34, %v6423_v31  ;;  %v4345_v14 = vpop.f32.mrb[116].mxu0  ;;  %v2487_v32 = vpop.f32.mrb[67].mxu1 }
 0x464   :  { %5165 = vtanh.f32 %v2485_v6  ;;  %v2245_v3 = vadd.f32 %v4345_v14, %v6331_v56  ;;  %v2488_v5 = vadd.f32 %v6423_v31, %v2487_v32  ;;  %v2236_v50 = vpop.f32.mrb[117].mxu0 }
 0x465   :  { %5167 = vtanh.f32 %v2496_v43  ;;  %v2237_v23 = vadd.f32 %v6331_v56, %v2236_v50  ;;  %v4346_v60 = vpop.f32.mrb[118].mxu0 }
 0x466   :  { %5169 = vtanh.f32 %v2245_v3  ;;  %v2248_v62 = vadd.f32 %v4346_v60, %v6331_v56  ;;  %v2239_v49 = vpop.f32.mrb[119].mxu0 }
 0x467   :  { %5171 = vtanh.f32 %v2488_v5  ;;  %v2240_v10 = vadd.f32 %v6331_v56, %v2239_v49 }
 0x468   :  { %5173 = vtanh.f32 %v2237_v23  ;;  %v4377_v19 = vpop.f32.mrb[68].mxu1 }
 0x469   :  { %5175 = vtanh.f32 %v2248_v62  ;;  %v2509_v22 = vadd.f32 %v4377_v19, %v6423_v31  ;;  %v2500_v12 = vpop.f32.mrb[69].mxu1 }
 0x46a   :  { %5177 = vtanh.f32 %v2240_v10  ;;  %v2501_v29 = vadd.f32 %v6423_v31, %v2500_v12  ;;  %v4378_v0 = vpop.f32.mrb[70].mxu1 }
 0x46b   :  { %5179 = vtanh.f32 %v2509_v22  ;;  %v2512_v54 = vadd.f32 %v4378_v0, %v6423_v31  ;;  %v2503_v27 = vpop.f32.mrb[71].mxu1 }
 0x46c   :  { %5181 = vtanh.f32 %v2501_v29  ;;  %v2504_v21 = vadd.f32 %v6423_v31, %v2503_v27 }
 0x46d   :  { %v5164_v16 = vpop.eup %5163  ;;  %5183 = vtanh.f32 %v2512_v54 }
 0x46e   :  { %v5166_v28 = vpop.eup %5165  ;;  %5185 = vtanh.f32 %v2504_v21 }
 0x46f   :  { %v5168_v8 = vpop.eup %5167 }
 0x470   :  { %v5170_v51 = vpop.eup %5169  ;;  %v4381_v2 = vpop.f32.mrb[72].mxu1  ;;  %v2802_v47 = vpack.c.bf16 %v5168_v8, %v5164_v16 }
 0x471   :  { %v5172_v45 = vpop.eup %5171  ;;  %v2525_v20 = vadd.f32 %v4381_v2, %v6423_v31  ;;  %v2516_v26 = vpop.f32.mrb[73].mxu1 }
 0x472   :  { %v5174_v36 = vpop.eup %5173  ;;  %v2517_v25 = vadd.f32 %v6423_v31, %v2516_v26  ;;  %v4382_v48 = vpop.f32.mrb[74].mxu1  ;;  %v2801_v38 = vpack.c.bf16 %v5172_v45, %v5166_v28 }
 0x473   :  { %v5176_v9 = vpop.eup %5175  ;;  %5187 = vtanh.f32 %v2525_v20  ;;  %v2528_v57 = vadd.f32 %v4382_v48, %v6423_v31  ;;  %v2519_v61 = vpop.f32.mrb[75].mxu1 }
 0x474   :  { %v5178_v58 = vpop.eup %5177  ;;  %5189 = vtanh.f32 %v2517_v25  ;;  %v2520_v35 = vadd.f32 %v6423_v31, %v2519_v61  ;;  %4451 = vmatprep.mubr.bf16.mxu0 %v2801_v38  ;;  %v2372_v13 = vpack.c.bf16 %v5176_v9, %v5170_v51 }
 0x475   :  { %v5180_v30 = vpop.eup %5179  ;;  %5191 = vtanh.f32 %v2528_v57  ;;  %4452 = vmatmul.mubr.bf16.vlgmr.msra.gmra.mrb[128].mxu0 %v2802_v47  ;;  %v2371_v33 = vpack.c.bf16 %v5178_v58, %v5174_v36 }
 0x476   :  { %v5182_v37 = vpop.eup %5181  ;;  %5193 = vtanh.f32 %v2520_v35 }
 0x477   :  { %v5184_v41 = vpop.eup %5183  ;;  %4423 = vmatprep.mubr.bf16.mxu1 %v2371_v33 }
 0x478   :  { %v5186_v63 = vpop.eup %5185  ;;  %4424 = vmatmul.mubr.bf16.gmra.mrb[116].mxu1 %v2372_v13  ;;  %v2804_v15 = vpack.c.bf16 %v5184_v41, %v5180_v30 }
 0x479   :  { %v2803_v11 = vpack.c.bf16 %v5186_v63, %v5182_v37 }
 0x47b   :  { %v4385_v7 = vpop.f32.mrb[76].mxu1  ;;  %4455 = vmatprep.mubr.bf16.mxu0 %v2803_v11 }
 0x47c   :  { %v2541_v55 = vadd.f32 %v4385_v7, %v6423_v31  ;;  %v4349_v40 = vpop.f32.mrb[120].mxu0  ;;  %v2532_v59 = vpop.f32.mrb[77].mxu1 }
 0x47d   :  { %v5188_v18 = vpop.eup %5187  ;;  %v2261_v4 = vadd.f32 %v4349_v40, %v6331_v56  ;;  %v2533_v24 = vadd.f32 %v6423_v31, %v2532_v59  ;;  %v2252_v1 = vpop.f32.mrb[121].mxu0  ;;  %4456 = vmatmul.mubr.bf16.gmra.mrb[132].mxu0 %v2804_v15 }
 0x47e   :  { %v4386_v44 = vpop.f32.mrb[78].mxu1  ;;  %v5190_v17 = vpop.eup %5189  ;;  %5195 = vtanh.f32 %v2541_v55  ;;  %v2253_v46 = vadd.f32 %v6331_v56, %v2252_v1 }
 0x47f   :  { %v2544_v52 = vadd.f32 %v4386_v44, %v6423_v31  ;;  %v4350_v53 = vpop.f32.mrb[122].mxu0  ;;  %v2535_v39 = vpop.f32.mrb[79].mxu1  ;;  %5197 = vtanh.f32 %v2261_v4 }
 0x480   :  { %v5192_v42 = vpop.eup %5191  ;;  %v2264_v6 = vadd.f32 %v4350_v53, %v6331_v56  ;;  %v2255_v34 = vpop.f32.mrb[123].mxu0  ;;  %5199 = vtanh.f32 %v2533_v24  ;;  %v2536_v14 = vadd.f32 %v6423_v31, %v2535_v39 }
 0x481   :  { %v5194_v43 = vpop.eup %5193  ;;  %v2806_v32 = vpack.c.bf16 %v5192_v42, %v5188_v18  ;;  %5201 = vtanh.f32 %v2253_v46  ;;  %v2256_v3 = vadd.f32 %v6331_v56, %v2255_v34 }
 0x482   :  { %v2805_v5 = vpack.c.bf16 %v5194_v43, %v5190_v17  ;;  %5203 = vtanh.f32 %v2544_v52 }
 0x483   :  { %5205 = vtanh.f32 %v2264_v6  ;;  %v4389_v50 = vpop.f32.mrb[80].mxu1 }
 0x484   :  { %4459 = vmatprep.mubr.bf16.mxu0 %v2805_v5  ;;  %5207 = vtanh.f32 %v2536_v14  ;;  %v2557_v23 = vadd.f32 %v4389_v50, %v6423_v31  ;;  %v2548_v60 = vpop.f32.mrb[81].mxu1 }
 0x485   :  { %5209 = vtanh.f32 %v2256_v3  ;;  %4460 = vmatmul.mubr.bf16.gmra.mrb[136].mxu0 %v2806_v32  ;;  %v2549_v62 = vadd.f32 %v6423_v31, %v2548_v60  ;;  %v4390_v49 = vpop.f32.mrb[82].mxu1  ;;  %v4673_v32 = vld [vmem:[%s6912_s1 + $0x180] sm:$0xff]   ;;  %v4674_v3 = vld [vmem:[%s6912_s1 + $0x188] sm:$0xff]  }
 0x486   :  { %5211 = vtanh.f32 %v2557_v23  ;;  %v2560_v10 = vadd.f32 %v4390_v49, %v6423_v31  ;;  %v2551_v19 = vpop.f32.mrb[83].mxu1  ;;  %4515 = vmatprep.subr.bf16.mxu1 %v4673_v32  ;;  %v4675_v23 = vld [vmem:[%s6912_s1 + $0x190] sm:$0xff]  }
 0x487   :  { %5213 = vtanh.f32 %v2549_v62  ;;  %v2552_v22 = vadd.f32 %v6423_v31, %v2551_v19  ;;  %v4353_v12 = vpop.f32.mrb[124].mxu0  ;;  %4516 = vmatpush3.bf16.msra.mxu1 %v4673_v32 }
 0x488   :  { %v5196_v29 = vpop.eup %5195  ;;  %5215 = vtanh.f32 %v2560_v10  ;;  %v2277_v0 = vadd.f32 %v4353_v12, %v6331_v56  ;;  %v2268_v54 = vpop.f32.mrb[125].mxu0  ;;  %4517 = vmatprep.subr.bf16.mxu1 %v4674_v3 }
 0x489   :  { %v5198_v27 = vpop.eup %5197  ;;  %5217 = vtanh.f32 %v2552_v22  ;;  %v2269_v21 = vadd.f32 %v6331_v56, %v2268_v54  ;;  %v4354_v16 = vpop.f32.mrb[126].mxu0 }
 0x48a   :  { %v5200_v28 = vpop.eup %5199  ;;  %v2271_v8 = vpop.f32.mrb[127].mxu0  ;;  %5219 = vtanh.f32 %v2277_v0  ;;  %v4676_v16 = vld [vmem:[%s6912_s1 + $0x198] sm:$0xff]  }
 0x48b   :  { %v5202_v51 = vpop.eup %5201  ;;  %v2272_v2 = vadd.f32 %v6331_v56, %v2271_v8  ;;  %5221 = vtanh.f32 %v2269_v21  ;;  %4518 = vmatpush3.bf16.msra.mxu1 %v4674_v3  ;;  %v4677_v8 = vld [vmem:[%s6912_s1 + $0x1a0] sm:$0xff]  }
 0x48c   :  { %v5204_v47 = vpop.eup %5203  ;;  %4519 = vmatprep.subr.bf16.mxu1 %v4675_v23 }
 0x48d   :  { %v5206_v45 = vpop.eup %5205  ;;  %v2808_v20 = vpack.c.bf16 %v5204_v47, %v5196_v29  ;;  %5223 = vtanh.f32 %v2272_v2 }
 0x48e   :  { %v5208_v26 = vpop.eup %5207  ;;  %v2374_v36 = vpack.c.bf16 %v5206_v45, %v5198_v27 }
 0x48f   :  { %v5210_v25 = vpop.eup %5209  ;;  %v2807_v48 = vpack.c.bf16 %v5208_v26, %v5200_v28  ;;  %4520 = vmatpush3.bf16.msra.mxu1 %v4675_v23  ;;  %v4678_v26 = vld [vmem:[%s6912_s1 + $0x1a8] sm:$0xff]  }
 0x490   :  { %v5212_v38 = vpop.eup %5211  ;;  %v2373_v9 = vpack.c.bf16 %v5210_v25, %v5202_v51  ;;  %4521 = vmatprep.subr.bf16.mxu1 %v4676_v16 }
 0x491   :  { %v5214_v57 = vpop.eup %5213  ;;  %4463 = vmatprep.mubr.bf16.mxu0 %v2807_v48 }
 0x492   :  { %v5216_v61 = vpop.eup %5215  ;;  %4427 = vmatprep.mubr.bf16.mxu1 %v2373_v9  ;;  %4464 = vmatmul.mubr.bf16.gmra.mrb[140].mxu0 %v2808_v20 }
 0x493   :  { %v5218_v58 = vpop.eup %5217  ;;  %4428 = vmatmul.mubr.bf16.gmra.mrb[120].mxu1 %v2374_v36  ;;  %v2810_v35 = vpack.c.bf16 %v5216_v61, %v5212_v38  ;;  %v4679_v36 = vld [vmem:[%s6912_s1 + $0x1b0] sm:$0xff]  }
 0x494   :  { %v2809_v56 = vpack.c.bf16 %v5218_v58, %v5214_v57  ;;  %v5220_v13 = vpop.eup %5219  ;;  %4522 = vmatpush3.bf16.msra.mxu1 %v4676_v16 }
 0x495   :  { %v5222_v30 = vpop.eup %5221  ;;  %v2376_v55 = vpack.c.bf16 %v5220_v13, %v5220_v13  ;;  %4523 = vmatprep.subr.bf16.mxu1 %v4677_v8 }
 0x496   :  { %4467 = vmatprep.mubr.bf16.mxu0 %v2809_v56  ;;  %v4393_v33 = vpop.f32.mrb[84].mxu1 }
 0x497   :  { %v5224_v37 = vpop.eup %5223  ;;  %v2573_v41 = vadd.f32 %v4393_v33, %v6423_v31  ;;  %v2564_v63 = vpop.f32.mrb[85].mxu1 }
 0x498   :  { %v2565_v15 = vadd.f32 %v6423_v31, %v2564_v63  ;;  %v4394_v11 = vpop.f32.mrb[86].mxu1  ;;  %v2375_v7 = vpack.c.bf16 %v5224_v37, %v5222_v30  ;;  %4524 = vmatpush3.bf16.msra.mxu1 %v4677_v8 }
 0x499   :  { %5225 = vtanh.f32 %v2573_v41  ;;  %v2576_v40 = vadd.f32 %v4394_v11, %v6423_v31  ;;  %v2567_v59 = vpop.f32.mrb[87].mxu1  ;;  %4525 = vmatprep.subr.bf16.mxu1 %v4678_v26 }
 0x49a   :  { %4468 = vmatmul.mubr.bf16.gmra.mrb[144].mxu0 %v2810_v35  ;;  %5227 = vtanh.f32 %v2565_v15  ;;  %v2568_v18 = vadd.f32 %v6423_v31, %v2567_v59  ;;  %4431 = vmatprep.mubr.bf16.mxu1 %v2375_v7  ;;  %v4680_v35 = vld [vmem:[%s6912_s1 + $0x1b8] sm:$0xff]  }
 0x49b   :  { %5229 = vtanh.f32 %v2576_v40  ;;  %4432 = vmatmul.mubr.bf16.gmra.mrb[124].mxu1 %v2376_v55 }
 0x49c   :  { %5231 = vtanh.f32 %v2568_v18  ;;  %4526 = vmatpush3.bf16.msra.mxu1 %v4678_v26 }
 0x49d   :  { %4527 = vmatprep.subr.bf16.mxu1 %v4679_v36 }
 0x4a0   :  { %4528 = vmatpush3.bf16.msra.mxu1 %v4679_v36 }
 0x4a1   :  { %4529 = vmatprep.subr.bf16.mxu1 %v4680_v35 }
 0x4a3   :  { %v5226_v4 = vpop.eup %5225 }
 0x4a4   :  { %v5228_v24 = vpop.eup %5227  ;;  %4530 = vmatpush3.bf16.msra.mxu1 %v4680_v35 }
 0x4a5   :  { %v5230_v1 = vpop.eup %5229 }
 0x4a6   :  { %v5232_v44 = vpop.eup %5231  ;;  %v2812_v17 = vpack.c.bf16 %v5230_v1, %v5226_v4 }
 0x4a7   :  { %v2811_v46 = vpack.c.bf16 %v5232_v44, %v5228_v24 }
 0x4a9   :  { %4471 = vmatprep.mubr.bf16.mxu0 %v2811_v46 }
 0x4aa   :  { %4472 = vmatmul.mubr.bf16.gmra.mrb[148].mxu0 %v2812_v17 }
 0x4ac   :  { %v4397_v52 = vpop.f32.mrb[88].mxu1 }
 0x4ad   :  { %v2589_v53 = vadd.f32 %v4397_v52, %v6423_v31  ;;  %v2580_v39 = vpop.f32.mrb[89].mxu1 }
 0x4ae   :  { %v2581_v42 = vadd.f32 %v6423_v31, %v2580_v39  ;;  %v4398_v6 = vpop.f32.mrb[90].mxu1 }
 0x4af   :  { %5233 = vtanh.f32 %v2589_v53  ;;  %v2592_v34 = vadd.f32 %v4398_v6, %v6423_v31  ;;  %v2583_v43 = vpop.f32.mrb[91].mxu1 }
 0x4b0   :  { %5235 = vtanh.f32 %v2581_v42  ;;  %v2584_v14 = vadd.f32 %v6423_v31, %v2583_v43 }
 0x4b1   :  { %5237 = vtanh.f32 %v2592_v34 }
 0x4b2   :  { %5239 = vtanh.f32 %v2584_v14 }
 0x4b9   :  { %v5234_v5 = vpop.eup %5233 }
 0x4ba   :  { %v5236_v50 = vpop.eup %5235 }
 0x4bb   :  { %v5238_v60 = vpop.eup %5237 }
 0x4bc   :  { %v5240_v62 = vpop.eup %5239  ;;  %v2814_v49 = vpack.c.bf16 %v5238_v60, %v5234_v5 }
 0x4bd   :  { %v2813_v10 = vpack.c.bf16 %v5240_v62, %v5236_v50 }
 0x4bf   :  { %4475 = vmatprep.mubr.bf16.mxu0 %v2813_v10 }
 0x4c0   :  { %4476 = vmatmul.mubr.bf16.gmra.mrb[152].mxu0 %v2814_v49 }
 0x4c2   :  { %v4401_v19 = vpop.f32.mrb[92].mxu1 }
 0x4c3   :  { %v2605_v22 = vadd.f32 %v4401_v19, %v6423_v31  ;;  %v2596_v12 = vpop.f32.mrb[93].mxu1 }
 0x4c4   :  { %v2597_v29 = vadd.f32 %v6423_v31, %v2596_v12  ;;  %v4402_v0 = vpop.f32.mrb[94].mxu1 }
 0x4c5   :  { %5241 = vtanh.f32 %v2605_v22  ;;  %v2608_v54 = vadd.f32 %v4402_v0, %v6423_v31  ;;  %v2599_v27 = vpop.f32.mrb[95].mxu1 }
 0x4c6   :  { %5243 = vtanh.f32 %v2597_v29  ;;  %v2600_v21 = vadd.f32 %v6423_v31, %v2599_v27 }
 0x4c7   :  { %5245 = vtanh.f32 %v2608_v54 }
 0x4c8   :  { %5247 = vtanh.f32 %v2600_v21 }
 0x4cf   :  { %v5242_v28 = vpop.eup %5241 }
 0x4d0   :  { %v5244_v51 = vpop.eup %5243 }
 0x4d1   :  { %v5246_v2 = vpop.eup %5245 }
 0x4d2   :  { %v5248_v47 = vpop.eup %5247  ;;  %v2816_v45 = vpack.c.bf16 %v5246_v2, %v5242_v28 }
 0x4d3   :  { %v2815_v20 = vpack.c.bf16 %v5248_v47, %v5244_v51 }
 0x4d5   :  { %4479 = vmatprep.mubr.bf16.mxu0 %v2815_v20 }
 0x4d6   :  { %4480 = vmatmul.mubr.bf16.gmra.mrb[156].mxu0 %v2816_v45 }
 0x4d8   :  { %v4405_v25 = vpop.f32.mrb[96].mxu1 }
 0x4d9   :  { %v2621_v48 = vadd.f32 %v4405_v25, %v6423_v31  ;;  %v2612_v38 = vpop.f32.mrb[97].mxu1 }
 0x4da   :  { %v2613_v9 = vadd.f32 %v6423_v31, %v2612_v38  ;;  %v4406_v57 = vpop.f32.mrb[98].mxu1 }
 0x4db   :  { %5249 = vtanh.f32 %v2621_v48  ;;  %v2624_v61 = vadd.f32 %v4406_v57, %v6423_v31  ;;  %v2615_v58 = vpop.f32.mrb[99].mxu1 }
 0x4dc   :  { %5251 = vtanh.f32 %v2613_v9  ;;  %v2616_v56 = vadd.f32 %v6423_v31, %v2615_v58 }
 0x4dd   :  { %5253 = vtanh.f32 %v2624_v61 }
 0x4de   :  { %5255 = vtanh.f32 %v2616_v56  ;;  %v6515_v56 = vld [vmem:[%s6913_s2 + $0x5] ss:$0 sm:$0xff] }
 0x4e5   :  { %v5250_v13 = vpop.eup %5249 }
 0x4e6   :  { %v5252_v30 = vpop.eup %5251 }
 0x4e7   :  { %v5254_v33 = vpop.eup %5253 }
 0x4e8   :  { %v5256_v37 = vpop.eup %5255  ;;  %v2818_v41 = vpack.c.bf16 %v5254_v33, %v5250_v13 }
 0x4e9   :  { %v2817_v63 = vpack.c.bf16 %v5256_v37, %v5252_v30 }
 0x4eb   :  { %4483 = vmatprep.mubr.bf16.mxu0 %v2817_v63 }
 0x4ec   :  { %4484 = vmatmul.mubr.bf16.gmra.mrb[160].mxu0 %v2818_v41 }
 0x4ee   :  { %v4409_v15 = vpop.f32.mrb[100].mxu1 }
 0x4ef   :  { %v2637_v11 = vadd.f32 %v4409_v15, %v6423_v31  ;;  %v2628_v7 = vpop.f32.mrb[101].mxu1 }
 0x4f0   :  { %v2629_v55 = vadd.f32 %v6423_v31, %v2628_v7  ;;  %v4410_v40 = vpop.f32.mrb[102].mxu1 }
 0x4f1   :  { %5257 = vtanh.f32 %v2637_v11  ;;  %v2640_v59 = vadd.f32 %v4410_v40, %v6423_v31  ;;  %v2631_v18 = vpop.f32.mrb[103].mxu1 }
 0x4f2   :  { %5259 = vtanh.f32 %v2629_v55  ;;  %v2632_v4 = vadd.f32 %v6423_v31, %v2631_v18 }
 0x4f3   :  { %5261 = vtanh.f32 %v2640_v59 }
 0x4f4   :  { %5263 = vtanh.f32 %v2632_v4 }
 0x4fb   :  { %v5258_v24 = vpop.eup %5257 }
 0x4fc   :  { %v5260_v1 = vpop.eup %5259 }
 0x4fd   :  { %v5262_v44 = vpop.eup %5261 }
 0x4fe   :  { %v5264_v17 = vpop.eup %5263  ;;  %v2820_v46 = vpack.c.bf16 %v5262_v44, %v5258_v24 }
 0x4ff   :  { %v2819_v52 = vpack.c.bf16 %v5264_v17, %v5260_v1 }
 0x501   :  { %4487 = vmatprep.mubr.bf16.mxu0 %v2819_v52 }
 0x502   :  { %4488 = vmatmul.mubr.bf16.gmra.mrb[164].mxu0 %v2820_v46 }
 0x504   :  { %v4413_v53 = vpop.f32.mrb[104].mxu1 }
 0x505   :  { %v2653_v39 = vadd.f32 %v4413_v53, %v6423_v31  ;;  %v2644_v42 = vpop.f32.mrb[105].mxu1 }
 0x506   :  { %v2645_v6 = vadd.f32 %v6423_v31, %v2644_v42  ;;  %v4414_v34 = vpop.f32.mrb[106].mxu1 }
 0x507   :  { %5265 = vtanh.f32 %v2653_v39  ;;  %v2656_v43 = vadd.f32 %v4414_v34, %v6423_v31  ;;  %v2647_v14 = vpop.f32.mrb[107].mxu1 }
 0x508   :  { %5267 = vtanh.f32 %v2645_v6  ;;  %v2648_v32 = vadd.f32 %v6423_v31, %v2647_v14 }
 0x509   :  { %5269 = vtanh.f32 %v2656_v43 }
 0x50a   :  { %5271 = vtanh.f32 %v2648_v32 }
 0x511   :  { %v5266_v3 = vpop.eup %5265 }
 0x512   :  { %v5268_v5 = vpop.eup %5267 }
 0x513   :  { %v5270_v50 = vpop.eup %5269 }
 0x514   :  { %v5272_v23 = vpop.eup %5271  ;;  %v2822_v60 = vpack.c.bf16 %v5270_v50, %v5266_v3 }
 0x515   :  { %v2821_v62 = vpack.c.bf16 %v5272_v23, %v5268_v5 }
 0x517   :  { %4491 = vmatprep.mubr.bf16.mxu0 %v2821_v62 }
 0x518   :  { %4492 = vmatmul.mubr.bf16.gmra.mrb[168].mxu0 %v2822_v60 }
 0x51a   :  { %v4417_v49 = vpop.f32.mrb[108].mxu1 }
 0x51b   :  { %v2669_v10 = vadd.f32 %v4417_v49, %v6423_v31  ;;  %v2660_v19 = vpop.f32.mrb[109].mxu1 }
 0x51c   :  { %v2661_v22 = vadd.f32 %v6423_v31, %v2660_v19  ;;  %v4418_v12 = vpop.f32.mrb[110].mxu1 }
 0x51d   :  { %5273 = vtanh.f32 %v2669_v10  ;;  %v2672_v29 = vadd.f32 %v4418_v12, %v6423_v31  ;;  %v2663_v0 = vpop.f32.mrb[111].mxu1 }
 0x51e   :  { %5275 = vtanh.f32 %v2661_v22  ;;  %v2664_v54 = vadd.f32 %v6423_v31, %v2663_v0 }
 0x51f   :  { %5277 = vtanh.f32 %v2672_v29 }
 0x520   :  { %5279 = vtanh.f32 %v2664_v54 }
 0x527   :  { %v5274_v27 = vpop.eup %5273 }
 0x528   :  { %v5276_v21 = vpop.eup %5275 }
 0x529   :  { %v5278_v16 = vpop.eup %5277 }
 0x52a   :  { %v5280_v28 = vpop.eup %5279  ;;  %v2824_v8 = vpack.c.bf16 %v5278_v16, %v5274_v27 }
 0x52b   :  { %v2823_v51 = vpack.c.bf16 %v5280_v28, %v5276_v21 }
 0x52d   :  { %4495 = vmatprep.mubr.bf16.mxu0 %v2823_v51 }
 0x52e   :  { %4496 = vmatmul.mubr.bf16.gmra.mrb[172].mxu0 %v2824_v8 }
 0x530   :  { %v4421_v2 = vpop.f32.mrb[112].mxu1 }
 0x531   :  { %v2685_v47 = vadd.f32 %v4421_v2, %v6423_v31  ;;  %v2676_v45 = vpop.f32.mrb[113].mxu1 }
 0x532   :  { %v2677_v20 = vadd.f32 %v6423_v31, %v2676_v45  ;;  %v4422_v26 = vpop.f32.mrb[114].mxu1 }
 0x533   :  { %5281 = vtanh.f32 %v2685_v47  ;;  %v2688_v36 = vadd.f32 %v4422_v26, %v6423_v31  ;;  %v2679_v25 = vpop.f32.mrb[115].mxu1 }
 0x534   :  { %5283 = vtanh.f32 %v2677_v20  ;;  %v2680_v48 = vadd.f32 %v6423_v31, %v2679_v25 }
 0x535   :  { %5285 = vtanh.f32 %v2688_v36 }
 0x536   :  { %5287 = vtanh.f32 %v2680_v48 }
 0x53d   :  { %v5282_v38 = vpop.eup %5281 }
 0x53e   :  { %v5284_v9 = vpop.eup %5283 }
 0x53f   :  { %v5286_v57 = vpop.eup %5285 }
 0x540   :  { %v5288_v61 = vpop.eup %5287  ;;  %v2826_v58 = vpack.c.bf16 %v5286_v57, %v5282_v38 }
 0x541   :  { %v2825_v35 = vpack.c.bf16 %v5288_v61, %v5284_v9 }
 0x543   :  { %4499 = vmatprep.mubr.bf16.mxu0 %v2825_v35 }
 0x544   :  { %4500 = vmatmul.mubr.bf16.gmra.mrb[176].mxu0 %v2826_v58 }
 0x548   :  { %v4453_v13 = vpop.f32.mrb[128].mxu0 }
 0x549   :  { %v2949_v30 = vadd.f32 %v4453_v13, %v6515_v56  ;;  %v2940_v33 = vpop.f32.mrb[129].mxu0 }
 0x54a   :  { %v2941_v37 = vadd.f32 %v6515_v56, %v2940_v33  ;;  %v4454_v41 = vpop.f32.mrb[130].mxu0 }
 0x54b   :  { %5289 = vtanh.f32 %v2949_v30  ;;  %v2952_v63 = vadd.f32 %v4454_v41, %v6515_v56  ;;  %v4425_v15 = vpop.f32.mrb[116].mxu1  ;;  %v2943_v11 = vpop.f32.mrb[131].mxu0 }
 0x54c   :  { %5291 = vtanh.f32 %v2941_v37  ;;  %v2701_v7 = vadd.f32 %v4425_v15, %v6423_v31  ;;  %v2944_v55 = vadd.f32 %v6515_v56, %v2943_v11  ;;  %v2692_v40 = vpop.f32.mrb[117].mxu1 }
 0x54d   :  { %5293 = vtanh.f32 %v2952_v63  ;;  %v2693_v59 = vadd.f32 %v6423_v31, %v2692_v40  ;;  %v4426_v18 = vpop.f32.mrb[118].mxu1 }
 0x54e   :  { %5295 = vtanh.f32 %v2701_v7  ;;  %v2704_v4 = vadd.f32 %v4426_v18, %v6423_v31  ;;  %v2695_v24 = vpop.f32.mrb[119].mxu1 }
 0x54f   :  { %5297 = vtanh.f32 %v2944_v55  ;;  %v2696_v1 = vadd.f32 %v6423_v31, %v2695_v24 }
 0x550   :  { %5299 = vtanh.f32 %v2693_v59  ;;  %v4457_v44 = vpop.f32.mrb[132].mxu0 }
 0x551   :  { %5301 = vtanh.f32 %v2704_v4  ;;  %v2965_v17 = vadd.f32 %v4457_v44, %v6515_v56  ;;  %v2956_v46 = vpop.f32.mrb[133].mxu0 }
 0x552   :  { %5303 = vtanh.f32 %v2696_v1  ;;  %v2957_v52 = vadd.f32 %v6515_v56, %v2956_v46  ;;  %v4458_v53 = vpop.f32.mrb[134].mxu0 }
 0x553   :  { %5305 = vtanh.f32 %v2965_v17  ;;  %v2968_v39 = vadd.f32 %v4458_v53, %v6515_v56  ;;  %v2959_v42 = vpop.f32.mrb[135].mxu0 }
 0x554   :  { %5307 = vtanh.f32 %v2957_v52  ;;  %v2960_v6 = vadd.f32 %v6515_v56, %v2959_v42 }
 0x555   :  { %v5290_v34 = vpop.eup %5289  ;;  %5309 = vtanh.f32 %v2968_v39 }
 0x556   :  { %v5292_v43 = vpop.eup %5291  ;;  %5311 = vtanh.f32 %v2960_v6 }
 0x557   :  { %v5294_v14 = vpop.eup %5293 }
 0x558   :  { %v5296_v32 = vpop.eup %5295  ;;  %v4461_v3 = vpop.f32.mrb[136].mxu0  ;;  %v3258_v5 = vpack.c.bf16 %v5294_v14, %v5290_v34 }
 0x559   :  { %v5298_v50 = vpop.eup %5297  ;;  %v2981_v23 = vadd.f32 %v4461_v3, %v6515_v56  ;;  %v2972_v60 = vpop.f32.mrb[137].mxu0 }
 0x55a   :  { %v5300_v62 = vpop.eup %5299  ;;  %v2973_v49 = vadd.f32 %v6515_v56, %v2972_v60  ;;  %v4462_v10 = vpop.f32.mrb[138].mxu0  ;;  %v3257_v19 = vpack.c.bf16 %v5298_v50, %v5292_v43 }
 0x55b   :  { %v5302_v22 = vpop.eup %5301  ;;  %5313 = vtanh.f32 %v2981_v23  ;;  %v2984_v12 = vadd.f32 %v4462_v10, %v6515_v56  ;;  %v2975_v29 = vpop.f32.mrb[139].mxu0 }
 0x55c   :  { %v5304_v0 = vpop.eup %5303  ;;  %5315 = vtanh.f32 %v2973_v49  ;;  %v2976_v54 = vadd.f32 %v6515_v56, %v2975_v29  ;;  %4531 = vmatprep.mubr.bf16.mxu1 %v3257_v19  ;;  %v2828_v27 = vpack.c.bf16 %v5302_v22, %v5296_v32 }
 0x55d   :  { %v5306_v21 = vpop.eup %5305  ;;  %5317 = vtanh.f32 %v2984_v12  ;;  %4532 = vmatmul.mubr.bf16.vlgmr.msra.gmra.mrb[128].mxu1 %v3258_v5  ;;  %v2827_v16 = vpack.c.bf16 %v5304_v0, %v5300_v62 }
 0x55e   :  { %v5308_v28 = vpop.eup %5307  ;;  %5319 = vtanh.f32 %v2976_v54 }
 0x55f   :  { %v5310_v8 = vpop.eup %5309  ;;  %4503 = vmatprep.mubr.bf16.mxu0 %v2827_v16 }
 0x560   :  { %v5312_v51 = vpop.eup %5311  ;;  %4504 = vmatmul.mubr.bf16.gmra.mrb[180].mxu0 %v2828_v27  ;;  %v3260_v2 = vpack.c.bf16 %v5310_v8, %v5306_v21 }
 0x561   :  { %v3259_v47 = vpack.c.bf16 %v5312_v51, %v5308_v28 }
 0x563   :  { %4535 = vmatprep.mubr.bf16.mxu1 %v3259_v47 }
 0x565   :  { %v5314_v45 = vpop.eup %5313  ;;  %v4465_v20 = vpop.f32.mrb[140].mxu0  ;;  %4536 = vmatmul.mubr.bf16.gmra.mrb[132].mxu1 %v3260_v2 }
 0x566   :  { %v5316_v26 = vpop.eup %5315  ;;  %v2997_v36 = vadd.f32 %v4465_v20, %v6515_v56  ;;  %v4429_v25 = vpop.f32.mrb[120].mxu1 }
 0x567   :  { %v2988_v48 = vpop.f32.mrb[141].mxu0  ;;  %v5318_v38 = vpop.eup %5317  ;;  %v2717_v9 = vadd.f32 %v4429_v25, %v6423_v31 }
 0x568   :  { %v2989_v57 = vadd.f32 %v6515_v56, %v2988_v48  ;;  %v2708_v61 = vpop.f32.mrb[121].mxu1  ;;  %v4466_v58 = vpop.f32.mrb[142].mxu0  ;;  %5321 = vtanh.f32 %v2997_v36  ;;  %v3262_v41 = vpack.c.bf16 %v5318_v38, %v5314_v45 }
 0x569   :  { %v5320_v35 = vpop.eup %5319  ;;  %v2709_v13 = vadd.f32 %v6423_v31, %v2708_v61  ;;  %v3000_v30 = vadd.f32 %v4466_v58, %v6515_v56  ;;  %v4430_v33 = vpop.f32.mrb[122].mxu1  ;;  %5323 = vtanh.f32 %v2717_v9 }
 0x56a   :  { %v2991_v37 = vpop.f32.mrb[143].mxu0  ;;  %v2720_v63 = vadd.f32 %v4430_v33, %v6423_v31  ;;  %v2711_v15 = vpop.f32.mrb[123].mxu1  ;;  %v3261_v11 = vpack.c.bf16 %v5320_v35, %v5316_v26  ;;  %5325 = vtanh.f32 %v2989_v57 }
 0x56b   :  { %v2992_v7 = vadd.f32 %v6515_v56, %v2991_v37  ;;  %5327 = vtanh.f32 %v2709_v13  ;;  %v2712_v55 = vadd.f32 %v6423_v31, %v2711_v15 }
 0x56c   :  { %4539 = vmatprep.mubr.bf16.mxu1 %v3261_v11  ;;  %5329 = vtanh.f32 %v3000_v30 }
 0x56d   :  { %5331 = vtanh.f32 %v2720_v63  ;;  %v4469_v40 = vpop.f32.mrb[144].mxu0  ;;  %4540 = vmatmul.mubr.bf16.gmra.mrb[136].mxu1 %v3262_v41 }
 0x56e   :  { %5333 = vtanh.f32 %v2992_v7  ;;  %v3013_v59 = vadd.f32 %v4469_v40, %v6515_v56  ;;  %v3004_v18 = vpop.f32.mrb[145].mxu0  ;;  %v4433_v4 = vpop.f32.mrb[124].mxu1 }
 0x56f   :  { %5335 = vtanh.f32 %v2712_v55  ;;  %v3005_v24 = vadd.f32 %v6515_v56, %v3004_v18  ;;  %v4470_v1 = vpop.f32.mrb[146].mxu0  ;;  %v2724_v44 = vpop.f32.mrb[125].mxu1  ;;  %v2733_v52 = vadd.f32 %v4433_v4, %v6423_v31 }
 0x570   :  { %5337 = vtanh.f32 %v3013_v59  ;;  %v3016_v17 = vadd.f32 %v4470_v1, %v6515_v56  ;;  %v3007_v46 = vpop.f32.mrb[147].mxu0  ;;  %v4434_v53 = vpop.f32.mrb[126].mxu1  ;;  %v2725_v42 = vadd.f32 %v6423_v31, %v2724_v44 }
 0x571   :  { %5339 = vtanh.f32 %v3005_v24  ;;  %v3008_v39 = vadd.f32 %v6515_v56, %v3007_v46  ;;  %v2727_v6 = vpop.f32.mrb[127].mxu1 }
 0x572   :  { %v5322_v34 = vpop.eup %5321  ;;  %5341 = vtanh.f32 %v3016_v17  ;;  %v2728_v43 = vadd.f32 %v6423_v31, %v2727_v6 }
 0x573   :  { %v5324_v14 = vpop.eup %5323  ;;  %5343 = vtanh.f32 %v3008_v39 }
 0x574   :  { %v5326_v32 = vpop.eup %5325  ;;  %5345 = vtanh.f32 %v2733_v52 }
 0x575   :  { %v5328_v3 = vpop.eup %5327  ;;  %5347 = vtanh.f32 %v2725_v42 }
 0x576   :  { %v5330_v5 = vpop.eup %5329  ;;  %5349 = vtanh.f32 %v2728_v43 }
 0x577   :  { %v5332_v50 = vpop.eup %5331  ;;  %v3264_v23 = vpack.c.bf16 %v5330_v5, %v5322_v34 }
 0x578   :  { %v5334_v60 = vpop.eup %5333  ;;  %v2830_v62 = vpack.c.bf16 %v5332_v50, %v5324_v14 }
 0x579   :  { %v5336_v49 = vpop.eup %5335  ;;  %v3263_v10 = vpack.c.bf16 %v5334_v60, %v5326_v32 }
 0x57a   :  { %v5338_v19 = vpop.eup %5337  ;;  %v2829_v22 = vpack.c.bf16 %v5336_v49, %v5328_v3 }
 0x57b   :  { %v5340_v12 = vpop.eup %5339  ;;  %4543 = vmatprep.mubr.bf16.mxu1 %v3263_v10 }
 0x57c   :  { %v5342_v29 = vpop.eup %5341  ;;  %4507 = vmatprep.mubr.bf16.mxu0 %v2829_v22  ;;  %4544 = vmatmul.mubr.bf16.gmra.mrb[140].mxu1 %v3264_v23 }
 0x57d   :  { %v5344_v31 = vpop.eup %5343  ;;  %4508 = vmatmul.mubr.bf16.gmra.mrb[184].mxu0 %v2830_v62  ;;  %v3266_v0 = vpack.c.bf16 %v5342_v29, %v5338_v19  ;;  %v4473_v54 = vpop.f32.mrb[148].mxu0 }
 0x57e   :  { %v5346_v27 = vpop.eup %5345  ;;  %v3265_v21 = vpack.c.bf16 %v5344_v31, %v5340_v12  ;;  %v3029_v16 = vadd.f32 %v4473_v54, %v6515_v56  ;;  %v3020_v28 = vpop.f32.mrb[149].mxu0 }
 0x57f   :  { %v5348_v8 = vpop.eup %5347  ;;  %v3021_v51 = vadd.f32 %v6515_v56, %v3020_v28  ;;  %v4474_v2 = vpop.f32.mrb[150].mxu0  ;;  %v2832_v25 = vpack.c.bf16 %v5346_v27, %v5346_v27 }
 0x580   :  { %v5350_v47 = vpop.eup %5349  ;;  %4547 = vmatprep.mubr.bf16.mxu1 %v3265_v21  ;;  %5351 = vtanh.f32 %v3029_v16  ;;  %v3032_v45 = vadd.f32 %v4474_v2, %v6515_v56  ;;  %v3023_v20 = vpop.f32.mrb[151].mxu0 }
 0x581   :  { %5353 = vtanh.f32 %v3021_v51  ;;  %v3024_v26 = vadd.f32 %v6515_v56, %v3023_v20  ;;  %v2831_v36 = vpack.c.bf16 %v5350_v47, %v5348_v8 }
 0x582   :  { %5355 = vtanh.f32 %v3032_v45 }
 0x583   :  { %5357 = vtanh.f32 %v3024_v26  ;;  %4511 = vmatprep.mubr.bf16.mxu0 %v2831_v36 }
 0x584   :  { %4548 = vmatmul.mubr.bf16.gmra.mrb[144].mxu1 %v3266_v0 }
 0x585   :  { %4512 = vmatmul.mubr.bf16.gmra.mrb[188].mxu0 %v2832_v25 }
 0x58a   :  { %v5352_v48 = vpop.eup %5351 }
 0x58b   :  { %v5354_v38 = vpop.eup %5353 }
 0x58c   :  { %v5356_v9 = vpop.eup %5355 }
 0x58d   :  { %v5358_v57 = vpop.eup %5357  ;;  %v3268_v61 = vpack.c.bf16 %v5356_v9, %v5352_v48 }
 0x58e   :  { %v3267_v58 = vpack.c.bf16 %v5358_v57, %v5354_v38 }
 0x590   :  { %4551 = vmatprep.mubr.bf16.mxu1 %v3267_v58 }
 0x591   :  { %4552 = vmatmul.mubr.bf16.gmra.mrb[148].mxu1 %v3268_v61 }
 0x593   :  { %v4477_v35 = vpop.f32.mrb[152].mxu0 }
 0x594   :  { %v3045_v13 = vadd.f32 %v4477_v35, %v6515_v56  ;;  %v3036_v30 = vpop.f32.mrb[153].mxu0 }
 0x595   :  { %v3037_v33 = vadd.f32 %v6515_v56, %v3036_v30  ;;  %v4478_v37 = vpop.f32.mrb[154].mxu0 }
 0x596   :  { %5359 = vtanh.f32 %v3045_v13  ;;  %v3048_v41 = vadd.f32 %v4478_v37, %v6515_v56  ;;  %v3039_v63 = vpop.f32.mrb[155].mxu0 }
 0x597   :  { %5361 = vtanh.f32 %v3037_v33  ;;  %v3040_v15 = vadd.f32 %v6515_v56, %v3039_v63 }
 0x598   :  { %5363 = vtanh.f32 %v3048_v41 }
 0x599   :  { %5365 = vtanh.f32 %v3040_v15 }
 0x5a0   :  { %v5360_v11 = vpop.eup %5359 }
 0x5a1   :  { %v5362_v7 = vpop.eup %5361 }
 0x5a2   :  { %v5364_v55 = vpop.eup %5363 }
 0x5a3   :  { %v5366_v40 = vpop.eup %5365  ;;  %v3270_v59 = vpack.c.bf16 %v5364_v55, %v5360_v11 }
 0x5a4   :  { %v3269_v18 = vpack.c.bf16 %v5366_v40, %v5362_v7 }
 0x5a6   :  { %4555 = vmatprep.mubr.bf16.mxu1 %v3269_v18 }
 0x5a7   :  { %4556 = vmatmul.mubr.bf16.gmra.mrb[152].mxu1 %v3270_v59 }
 0x5a9   :  { %v4481_v4 = vpop.f32.mrb[156].mxu0 }
 0x5aa   :  { %v3061_v24 = vadd.f32 %v4481_v4, %v6515_v56  ;;  %v3052_v1 = vpop.f32.mrb[157].mxu0 }
 0x5ab   :  { %v3053_v44 = vadd.f32 %v6515_v56, %v3052_v1  ;;  %v4482_v17 = vpop.f32.mrb[158].mxu0 }
 0x5ac   :  { %5367 = vtanh.f32 %v3061_v24  ;;  %v3064_v46 = vadd.f32 %v4482_v17, %v6515_v56  ;;  %v3055_v52 = vpop.f32.mrb[159].mxu0 }
 0x5ad   :  { %5369 = vtanh.f32 %v3053_v44  ;;  %v3056_v53 = vadd.f32 %v6515_v56, %v3055_v52 }
 0x5ae   :  { %5371 = vtanh.f32 %v3064_v46 }
 0x5af   :  { %5373 = vtanh.f32 %v3056_v53 }
 0x5b6   :  { %v5368_v39 = vpop.eup %5367 }
 0x5b7   :  { %v5370_v42 = vpop.eup %5369 }
 0x5b8   :  { %v5372_v6 = vpop.eup %5371 }
 0x5b9   :  { %v5374_v34 = vpop.eup %5373  ;;  %v3272_v43 = vpack.c.bf16 %v5372_v6, %v5368_v39 }
 0x5ba   :  { %v3271_v14 = vpack.c.bf16 %v5374_v34, %v5370_v42 }
 0x5bc   :  { %4559 = vmatprep.mubr.bf16.mxu1 %v3271_v14 }
 0x5bd   :  { %4560 = vmatmul.mubr.bf16.gmra.mrb[156].mxu1 %v3272_v43 }
 0x5bf   :  { %v4485_v32 = vpop.f32.mrb[160].mxu0 }
 0x5c0   :  { %v3077_v3 = vadd.f32 %v4485_v32, %v6515_v56  ;;  %v3068_v5 = vpop.f32.mrb[161].mxu0 }
 0x5c1   :  { %v3069_v50 = vadd.f32 %v6515_v56, %v3068_v5  ;;  %v4486_v23 = vpop.f32.mrb[162].mxu0 }
 0x5c2   :  { %5375 = vtanh.f32 %v3077_v3  ;;  %v3080_v60 = vadd.f32 %v4486_v23, %v6515_v56  ;;  %v3071_v62 = vpop.f32.mrb[163].mxu0 }
 0x5c3   :  { %5377 = vtanh.f32 %v3069_v50  ;;  %v3072_v49 = vadd.f32 %v6515_v56, %v3071_v62 }
 0x5c4   :  { %5379 = vtanh.f32 %v3080_v60 }
 0x5c5   :  { %5381 = vtanh.f32 %v3072_v49  ;;  %v6583_v49 = vld [vmem:[%s6913_s2 + $0x6] ss:$0 sm:$0xff] }
 0x5cc   :  { %v5376_v10 = vpop.eup %5375 }
 0x5cd   :  { %v5378_v19 = vpop.eup %5377 }
 0x5ce   :  { %v5380_v22 = vpop.eup %5379 }
 0x5cf   :  { %v5382_v12 = vpop.eup %5381  ;;  %v3274_v29 = vpack.c.bf16 %v5380_v22, %v5376_v10 }
 0x5d0   :  { %v3273_v31 = vpack.c.bf16 %v5382_v12, %v5378_v19 }
 0x5d2   :  { %4563 = vmatprep.mubr.bf16.mxu1 %v3273_v31 }
 0x5d3   :  { %4564 = vmatmul.mubr.bf16.gmra.mrb[160].mxu1 %v3274_v29 }
 0x5d5   :  { %v4489_v0 = vpop.f32.mrb[164].mxu0 }
 0x5d6   :  { %v3093_v54 = vadd.f32 %v4489_v0, %v6515_v56  ;;  %v3084_v27 = vpop.f32.mrb[165].mxu0 }
 0x5d7   :  { %v3085_v21 = vadd.f32 %v6515_v56, %v3084_v27  ;;  %v4490_v16 = vpop.f32.mrb[166].mxu0 }
 0x5d8   :  { %5383 = vtanh.f32 %v3093_v54  ;;  %v3096_v28 = vadd.f32 %v4490_v16, %v6515_v56  ;;  %v3087_v8 = vpop.f32.mrb[167].mxu0 }
 0x5d9   :  { %5385 = vtanh.f32 %v3085_v21  ;;  %v3088_v51 = vadd.f32 %v6515_v56, %v3087_v8 }
 0x5da   :  { %5387 = vtanh.f32 %v3096_v28 }
 0x5db   :  { %5389 = vtanh.f32 %v3088_v51 }
 0x5e2   :  { %v5384_v2 = vpop.eup %5383 }
 0x5e3   :  { %v5386_v47 = vpop.eup %5385 }
 0x5e4   :  { %v5388_v45 = vpop.eup %5387 }
 0x5e5   :  { %v5390_v20 = vpop.eup %5389  ;;  %v3276_v26 = vpack.c.bf16 %v5388_v45, %v5384_v2 }
 0x5e6   :  { %v3275_v36 = vpack.c.bf16 %v5390_v20, %v5386_v47 }
 0x5e8   :  { %4567 = vmatprep.mubr.bf16.mxu1 %v3275_v36 }
 0x5e9   :  { %4568 = vmatmul.mubr.bf16.gmra.mrb[164].mxu1 %v3276_v26 }
 0x5eb   :  { %v4493_v25 = vpop.f32.mrb[168].mxu0 }
 0x5ec   :  { %v3109_v48 = vadd.f32 %v4493_v25, %v6515_v56  ;;  %v3100_v38 = vpop.f32.mrb[169].mxu0 }
 0x5ed   :  { %v3101_v9 = vadd.f32 %v6515_v56, %v3100_v38  ;;  %v4494_v57 = vpop.f32.mrb[170].mxu0 }
 0x5ee   :  { %5391 = vtanh.f32 %v3109_v48  ;;  %v3112_v61 = vadd.f32 %v4494_v57, %v6515_v56  ;;  %v3103_v58 = vpop.f32.mrb[171].mxu0 }
 0x5ef   :  { %5393 = vtanh.f32 %v3101_v9  ;;  %v3104_v35 = vadd.f32 %v6515_v56, %v3103_v58 }
 0x5f0   :  { %5395 = vtanh.f32 %v3112_v61 }
 0x5f1   :  { %5397 = vtanh.f32 %v3104_v35 }
 0x5f8   :  { %v5392_v13 = vpop.eup %5391 }
 0x5f9   :  { %v5394_v30 = vpop.eup %5393 }
 0x5fa   :  { %v5396_v33 = vpop.eup %5395 }
 0x5fb   :  { %v5398_v37 = vpop.eup %5397  ;;  %v3278_v41 = vpack.c.bf16 %v5396_v33, %v5392_v13 }
 0x5fc   :  { %v3277_v63 = vpack.c.bf16 %v5398_v37, %v5394_v30 }
 0x5fe   :  { %4571 = vmatprep.mubr.bf16.mxu1 %v3277_v63 }
 0x5ff   :  { %4572 = vmatmul.mubr.bf16.gmra.mrb[168].mxu1 %v3278_v41 }
 0x601   :  { %v4497_v15 = vpop.f32.mrb[172].mxu0 }
 0x602   :  { %v3125_v11 = vadd.f32 %v4497_v15, %v6515_v56  ;;  %v3116_v7 = vpop.f32.mrb[173].mxu0 }
 0x603   :  { %v3117_v55 = vadd.f32 %v6515_v56, %v3116_v7  ;;  %v4498_v40 = vpop.f32.mrb[174].mxu0 }
 0x604   :  { %5399 = vtanh.f32 %v3125_v11  ;;  %v3128_v59 = vadd.f32 %v4498_v40, %v6515_v56  ;;  %v3119_v18 = vpop.f32.mrb[175].mxu0 }
 0x605   :  { %5401 = vtanh.f32 %v3117_v55  ;;  %v3120_v4 = vadd.f32 %v6515_v56, %v3119_v18 }
 0x606   :  { %5403 = vtanh.f32 %v3128_v59 }
 0x607   :  { %5405 = vtanh.f32 %v3120_v4 }
 0x60e   :  { %v5400_v24 = vpop.eup %5399 }
 0x60f   :  { %v5402_v1 = vpop.eup %5401 }
 0x610   :  { %v5404_v44 = vpop.eup %5403 }
 0x611   :  { %v5406_v17 = vpop.eup %5405  ;;  %v3280_v46 = vpack.c.bf16 %v5404_v44, %v5400_v24 }
 0x612   :  { %v3279_v52 = vpack.c.bf16 %v5406_v17, %v5402_v1 }
 0x614   :  { %4575 = vmatprep.mubr.bf16.mxu1 %v3279_v52 }
 0x615   :  { %4576 = vmatmul.mubr.bf16.gmra.mrb[172].mxu1 %v3280_v46 }
 0x617   :  { %v4501_v53 = vpop.f32.mrb[176].mxu0 }
 0x618   :  { %v3141_v39 = vadd.f32 %v4501_v53, %v6515_v56  ;;  %v3132_v42 = vpop.f32.mrb[177].mxu0 }
 0x619   :  { %v3133_v6 = vadd.f32 %v6515_v56, %v3132_v42  ;;  %v4502_v34 = vpop.f32.mrb[178].mxu0 }
 0x61a   :  { %5407 = vtanh.f32 %v3141_v39  ;;  %v3144_v43 = vadd.f32 %v4502_v34, %v6515_v56  ;;  %v3135_v14 = vpop.f32.mrb[179].mxu0 }
 0x61b   :  { %5409 = vtanh.f32 %v3133_v6  ;;  %v3136_v32 = vadd.f32 %v6515_v56, %v3135_v14 }
 0x61c   :  { %5411 = vtanh.f32 %v3144_v43 }
 0x61d   :  { %5413 = vtanh.f32 %v3136_v32 }
 0x624   :  { %v5408_v3 = vpop.eup %5407 }
 0x625   :  { %v5410_v5 = vpop.eup %5409 }
 0x626   :  { %v5412_v50 = vpop.eup %5411 }
 0x627   :  { %v5414_v23 = vpop.eup %5413  ;;  %v3282_v60 = vpack.c.bf16 %v5412_v50, %v5408_v3 }
 0x628   :  { %v3281_v62 = vpack.c.bf16 %v5414_v23, %v5410_v5 }
 0x62a   :  { %4579 = vmatprep.mubr.bf16.mxu1 %v3281_v62 }
 0x62b   :  { %4580 = vmatmul.mubr.bf16.gmra.mrb[176].mxu1 %v3282_v60 }
 0x630   :  { %v4533_v10 = vpop.f32.mrb[128].mxu1 }
 0x631   :  { %v3405_v19 = vadd.f32 %v4533_v10, %v6583_v49  ;;  %v3396_v22 = vpop.f32.mrb[129].mxu1 }
 0x632   :  { %v3397_v12 = vadd.f32 %v6583_v49, %v3396_v22  ;;  %v4534_v29 = vpop.f32.mrb[130].mxu1 }
 0x633   :  { %3653 = vst.msk [vmem:[%s6914_s3 + $0x10] sm:$0xff] %vm3650_vm0, %v3405_v19  ;;  %v3408_v31 = vadd.f32 %v4534_v29, %v6583_v49  ;;  %v4505_v0 = vpop.f32.mrb[180].mxu0  ;;  %v3399_v54 = vpop.f32.mrb[131].mxu1 }
 0x634   :  { %3651 = vst.msk [vmem:[%s6914_s3] sm:$0xff] %vm3650_vm0, %v3397_v12  ;;  %v3157_v27 = vadd.f32 %v4505_v0, %v6515_v56  ;;  %v3400_v21 = vadd.f32 %v6583_v49, %v3399_v54  ;;  %v3148_v16 = vpop.f32.mrb[181].mxu0 }
 0x635   :  { %3654 = vst.msk [vmem:[%s6914_s3 + $0x18] sm:$0xff] %vm3650_vm0, %v3408_v31  ;;  %v3149_v28 = vadd.f32 %v6515_v56, %v3148_v16  ;;  %v4506_v8 = vpop.f32.mrb[182].mxu0 }
 0x636   :  { %5415 = vtanh.f32 %v3157_v27  ;;  %3652 = vst.msk [vmem:[%s6914_s3 + $0x8] sm:$0xff] %vm3650_vm0, %v3400_v21  ;;  %v3160_v51 = vadd.f32 %v4506_v8, %v6515_v56  ;;  %v3151_v2 = vpop.f32.mrb[183].mxu0 }
 0x637   :  { %5417 = vtanh.f32 %v3149_v28  ;;  %v3152_v47 = vadd.f32 %v6515_v56, %v3151_v2 }
 0x638   :  { %5419 = vtanh.f32 %v3160_v51  ;;  %v4537_v45 = vpop.f32.mrb[132].mxu1 }
 0x639   :  { %5421 = vtanh.f32 %v3152_v47  ;;  %v3421_v20 = vadd.f32 %v4537_v45, %v6583_v49  ;;  %v3412_v26 = vpop.f32.mrb[133].mxu1 }
 0x63a   :  { %v3413_v36 = vadd.f32 %v6583_v49, %v3412_v26  ;;  %v4538_v25 = vpop.f32.mrb[134].mxu1 }
 0x63b   :  { %3657 = vst.msk [vmem:[%s6914_s3 + $0x30] sm:$0xff] %vm3650_vm0, %v3421_v20  ;;  %v3424_v48 = vadd.f32 %v4538_v25, %v6583_v49  ;;  %v3415_v38 = vpop.f32.mrb[135].mxu1 }
 0x63c   :  { %3655 = vst.msk [vmem:[%s6914_s3 + $0x20] sm:$0xff] %vm3650_vm0, %v3413_v36  ;;  %v3416_v9 = vadd.f32 %v6583_v49, %v3415_v38 }
 0x63d   :  { %3658 = vst.msk [vmem:[%s6914_s3 + $0x38] sm:$0xff] %vm3650_vm0, %v3424_v48 }
 0x63e   :  { %3656 = vst.msk [vmem:[%s6914_s3 + $0x28] sm:$0xff] %vm3650_vm0, %v3416_v9 }
 0x640   :  { %v5416_v57 = vpop.eup %5415  ;;  %v4541_v61 = vpop.f32.mrb[136].mxu1 }
 0x641   :  { %v5418_v58 = vpop.eup %5417  ;;  %v3437_v35 = vadd.f32 %v4541_v61, %v6583_v49  ;;  %v3428_v13 = vpop.f32.mrb[137].mxu1 }
 0x642   :  { %v5420_v30 = vpop.eup %5419  ;;  %v3429_v33 = vadd.f32 %v6583_v49, %v3428_v13  ;;  %v4542_v37 = vpop.f32.mrb[138].mxu1 }
 0x643   :  { %v5422_v41 = vpop.eup %5421  ;;  %3661 = vst.msk [vmem:[%s6914_s3 + $0x50] sm:$0xff] %vm3650_vm0, %v3437_v35  ;;  %v3440_v63 = vadd.f32 %v4542_v37, %v6583_v49  ;;  %v3431_v15 = vpop.f32.mrb[139].mxu1  ;;  %v3284_v11 = vpack.c.bf16 %v5420_v30, %v5416_v57 }
 0x644   :  { %3659 = vst.msk [vmem:[%s6914_s3 + $0x40] sm:$0xff] %vm3650_vm0, %v3429_v33  ;;  %v3432_v7 = vadd.f32 %v6583_v49, %v3431_v15  ;;  %v3283_v55 = vpack.c.bf16 %v5422_v41, %v5418_v58 }
 0x645   :  { %3662 = vst.msk [vmem:[%s6914_s3 + $0x58] sm:$0xff] %vm3650_vm0, %v3440_v63 }
 0x646   :  { %3660 = vst.msk [vmem:[%s6914_s3 + $0x48] sm:$0xff] %vm3650_vm0, %v3432_v7  ;;  %4583 = vmatprep.mubr.bf16.mxu1 %v3283_v55 }
 0x647   :  { %4584 = vmatmul.mubr.bf16.gmra.mrb[180].mxu1 %v3284_v11 }
 0x64f   :  { %v4545_v40 = vpop.f32.mrb[140].mxu1 }
 0x650   :  { %v3453_v59 = vadd.f32 %v4545_v40, %v6583_v49  ;;  %v4509_v18 = vpop.f32.mrb[184].mxu0  ;;  %v3444_v4 = vpop.f32.mrb[141].mxu1 }
 0x651   :  { %v3173_v24 = vadd.f32 %v4509_v18, %v6515_v56  ;;  %v3445_v1 = vadd.f32 %v6583_v49, %v3444_v4  ;;  %v3164_v44 = vpop.f32.mrb[185].mxu0  ;;  %v4546_v17 = vpop.f32.mrb[142].mxu1 }
 0x652   :  { %3665 = vst.msk [vmem:[%s6914_s3 + $0x70] sm:$0xff] %vm3650_vm0, %v3453_v59  ;;  %v3165_v46 = vadd.f32 %v6515_v56, %v3164_v44  ;;  %v3456_v52 = vadd.f32 %v4546_v17, %v6583_v49  ;;  %v4510_v53 = vpop.f32.mrb[186].mxu0  ;;  %v3447_v39 = vpop.f32.mrb[143].mxu1 }
 0x653   :  { %5423 = vtanh.f32 %v3173_v24  ;;  %3663 = vst.msk [vmem:[%s6914_s3 + $0x60] sm:$0xff] %vm3650_vm0, %v3445_v1  ;;  %v3176_v42 = vadd.f32 %v4510_v53, %v6515_v56  ;;  %v3448_v6 = vadd.f32 %v6583_v49, %v3447_v39  ;;  %v3167_v34 = vpop.f32.mrb[187].mxu0 }
 0x654   :  { %5425 = vtanh.f32 %v3165_v46  ;;  %3666 = vst.msk [vmem:[%s6914_s3 + $0x78] sm:$0xff] %vm3650_vm0, %v3456_v52  ;;  %v3168_v43 = vadd.f32 %v6515_v56, %v3167_v34 }
 0x655   :  { %5427 = vtanh.f32 %v3176_v42  ;;  %3664 = vst.msk [vmem:[%s6914_s3 + $0x68] sm:$0xff] %vm3650_vm0, %v3448_v6 }
 0x656   :  { %5429 = vtanh.f32 %v3168_v43 }
 0x657   :  { %v4549_v14 = vpop.f32.mrb[144].mxu1 }
 0x658   :  { %v3469_v32 = vadd.f32 %v4549_v14, %v6583_v49  ;;  %v3460_v3 = vpop.f32.mrb[145].mxu1  ;;  %v4513_v5 = vpop.f32.mrb[188].mxu0 }
 0x659   :  { %v3461_v50 = vadd.f32 %v6583_v49, %v3460_v3  ;;  %v4550_v23 = vpop.f32.mrb[146].mxu1  ;;  %v3189_v60 = vadd.f32 %v4513_v5, %v6515_v56  ;;  %v3180_v62 = vpop.f32.mrb[189].mxu0 }
 0x65a   :  { %3669 = vst.msk [vmem:[%s6914_s3 + $0x90] sm:$0xff] %vm3650_vm0, %v3469_v32  ;;  %v3472_v10 = vadd.f32 %v4550_v23, %v6583_v49  ;;  %v3463_v19 = vpop.f32.mrb[147].mxu1  ;;  %v3181_v22 = vadd.f32 %v6515_v56, %v3180_v62  ;;  %v4514_v12 = vpop.f32.mrb[190].mxu0 }
 0x65b   :  { %3667 = vst.msk [vmem:[%s6914_s3 + $0x80] sm:$0xff] %vm3650_vm0, %v3461_v50  ;;  %v3464_v29 = vadd.f32 %v6583_v49, %v3463_v19  ;;  %v3183_v31 = vpop.f32.mrb[191].mxu0  ;;  %5431 = vtanh.f32 %v3189_v60 }
 0x65c   :  { %3670 = vst.msk [vmem:[%s6914_s3 + $0x98] sm:$0xff] %vm3650_vm0, %v3472_v10  ;;  %v3184_v0 = vadd.f32 %v6515_v56, %v3183_v31  ;;  %5433 = vtanh.f32 %v3181_v22 }
 0x65d   :  { %v5424_v54 = vpop.eup %5423  ;;  %3668 = vst.msk [vmem:[%s6914_s3 + $0x88] sm:$0xff] %vm3650_vm0, %v3464_v29 }
 0x65e   :  { %v5426_v27 = vpop.eup %5425  ;;  %5435 = vtanh.f32 %v3184_v0 }
 0x65f   :  { %v5428_v21 = vpop.eup %5427 }
 0x660   :  { %v5430_v16 = vpop.eup %5429  ;;  %v3286_v28 = vpack.c.bf16 %v5428_v21, %v5424_v54 }
 0x661   :  { %v3285_v8 = vpack.c.bf16 %v5430_v16, %v5426_v27 }
 0x663   :  { %4587 = vmatprep.mubr.bf16.mxu1 %v3285_v8 }
 0x664   :  { %4588 = vmatmul.mubr.bf16.gmra.mrb[184].mxu1 %v3286_v28  ;;  %v4553_v51 = vpop.f32.mrb[148].mxu1 }
 0x665   :  { %v3485_v2 = vadd.f32 %v4553_v51, %v6583_v49  ;;  %v3476_v47 = vpop.f32.mrb[149].mxu1  ;;  %v5432_v56 = vpop.eup %5431 }
 0x666   :  { %v3477_v45 = vadd.f32 %v6583_v49, %v3476_v47  ;;  %v4554_v20 = vpop.f32.mrb[150].mxu1  ;;  %v5434_v26 = vpop.eup %5433  ;;  %v3288_v57 = vpack.c.bf16 %v5432_v56, %v5432_v56 }
 0x667   :  { %3673 = vst.msk [vmem:[%s6914_s3 + $0xb0] sm:$0xff] %vm3650_vm0, %v3485_v2  ;;  %v3488_v36 = vadd.f32 %v4554_v20, %v6583_v49  ;;  %v3479_v25 = vpop.f32.mrb[151].mxu1 }
 0x668   :  { %v5436_v48 = vpop.eup %5435  ;;  %3671 = vst.msk [vmem:[%s6914_s3 + $0xa0] sm:$0xff] %vm3650_vm0, %v3477_v45  ;;  %v3480_v38 = vadd.f32 %v6583_v49, %v3479_v25 }
 0x669   :  { %3674 = vst.msk [vmem:[%s6914_s3 + $0xb8] sm:$0xff] %vm3650_vm0, %v3488_v36  ;;  %v3287_v9 = vpack.c.bf16 %v5436_v48, %v5434_v26 }
 0x66a   :  { %3672 = vst.msk [vmem:[%s6914_s3 + $0xa8] sm:$0xff] %vm3650_vm0, %v3480_v38 }
 0x66b   :  { %4591 = vmatprep.mubr.bf16.mxu1 %v3287_v9 }
 0x66c   :  { %4592 = vmatmul.mubr.bf16.gmra.mrb[188].mxu1 %v3288_v57 }
 0x67a   :  { %v4557_v61 = vpop.f32.mrb[152].mxu1 }
 0x67b   :  { %v3501_v58 = vadd.f32 %v4557_v61, %v6583_v49  ;;  %v3492_v35 = vpop.f32.mrb[153].mxu1 }
 0x67c   :  { %v3493_v13 = vadd.f32 %v6583_v49, %v3492_v35  ;;  %v4558_v30 = vpop.f32.mrb[154].mxu1 }
 0x67d   :  { %3677 = vst.msk [vmem:[%s6914_s3 + $0xd0] sm:$0xff] %vm3650_vm0, %v3501_v58  ;;  %v3504_v33 = vadd.f32 %v4558_v30, %v6583_v49  ;;  %v3495_v37 = vpop.f32.mrb[155].mxu1 }
 0x67e   :  { %3675 = vst.msk [vmem:[%s6914_s3 + $0xc0] sm:$0xff] %vm3650_vm0, %v3493_v13  ;;  %v3496_v41 = vadd.f32 %v6583_v49, %v3495_v37 }
 0x67f   :  { %3678 = vst.msk [vmem:[%s6914_s3 + $0xd8] sm:$0xff] %vm3650_vm0, %v3504_v33 }
 0x680   :  { %3676 = vst.msk [vmem:[%s6914_s3 + $0xc8] sm:$0xff] %vm3650_vm0, %v3496_v41 }
 0x690   :  { %v4561_v63 = vpop.f32.mrb[156].mxu1 }
 0x691   :  { %v3517_v15 = vadd.f32 %v4561_v63, %v6583_v49  ;;  %v3508_v11 = vpop.f32.mrb[157].mxu1 }
 0x692   :  { %v3509_v7 = vadd.f32 %v6583_v49, %v3508_v11  ;;  %v4562_v55 = vpop.f32.mrb[158].mxu1 }
 0x693   :  { %3681 = vst.msk [vmem:[%s6914_s3 + $0xf0] sm:$0xff] %vm3650_vm0, %v3517_v15  ;;  %v3520_v40 = vadd.f32 %v4562_v55, %v6583_v49  ;;  %v3511_v59 = vpop.f32.mrb[159].mxu1 }
 0x694   :  { %3679 = vst.msk [vmem:[%s6914_s3 + $0xe0] sm:$0xff] %vm3650_vm0, %v3509_v7  ;;  %v3512_v18 = vadd.f32 %v6583_v49, %v3511_v59 }
 0x695   :  { %3682 = vst.msk [vmem:[%s6914_s3 + $0xf8] sm:$0xff] %vm3650_vm0, %v3520_v40 }
 0x696   :  { %3680 = vst.msk [vmem:[%s6914_s3 + $0xe8] sm:$0xff] %vm3650_vm0, %v3512_v18 }
 0x6a6   :  { %v4565_v4 = vpop.f32.mrb[160].mxu1 }
 0x6a7   :  { %v3533_v24 = vadd.f32 %v4565_v4, %v6583_v49  ;;  %v3524_v1 = vpop.f32.mrb[161].mxu1 }
 0x6a8   :  { %v3525_v44 = vadd.f32 %v6583_v49, %v3524_v1  ;;  %v4566_v17 = vpop.f32.mrb[162].mxu1 }
 0x6a9   :  { %3685 = vst.msk [vmem:[%s6914_s3 + $0x110] sm:$0xff] %vm3650_vm0, %v3533_v24  ;;  %v3536_v46 = vadd.f32 %v4566_v17, %v6583_v49  ;;  %v3527_v52 = vpop.f32.mrb[163].mxu1 }
 0x6aa   :  { %3683 = vst.msk [vmem:[%s6914_s3 + $0x100] sm:$0xff] %vm3650_vm0, %v3525_v44  ;;  %v3528_v53 = vadd.f32 %v6583_v49, %v3527_v52 }
 0x6ab   :  { %3686 = vst.msk [vmem:[%s6914_s3 + $0x118] sm:$0xff] %vm3650_vm0, %v3536_v46 }
 0x6ac   :  { %3684 = vst.msk [vmem:[%s6914_s3 + $0x108] sm:$0xff] %vm3650_vm0, %v3528_v53 }
 0x6bc   :  { %v4569_v39 = vpop.f32.mrb[164].mxu1 }
 0x6bd   :  { %v3549_v42 = vadd.f32 %v4569_v39, %v6583_v49  ;;  %v3540_v6 = vpop.f32.mrb[165].mxu1 }
 0x6be   :  { %v3541_v34 = vadd.f32 %v6583_v49, %v3540_v6  ;;  %v4570_v43 = vpop.f32.mrb[166].mxu1 }
 0x6bf   :  { %3689 = vst.msk [vmem:[%s6914_s3 + $0x130] sm:$0xff] %vm3650_vm0, %v3549_v42  ;;  %v3552_v14 = vadd.f32 %v4570_v43, %v6583_v49  ;;  %v3543_v32 = vpop.f32.mrb[167].mxu1 }
 0x6c0   :  { %3687 = vst.msk [vmem:[%s6914_s3 + $0x120] sm:$0xff] %vm3650_vm0, %v3541_v34  ;;  %v3544_v3 = vadd.f32 %v6583_v49, %v3543_v32 }
 0x6c1   :  { %3690 = vst.msk [vmem:[%s6914_s3 + $0x138] sm:$0xff] %vm3650_vm0, %v3552_v14 }
 0x6c2   :  { %3688 = vst.msk [vmem:[%s6914_s3 + $0x128] sm:$0xff] %vm3650_vm0, %v3544_v3 }
 0x6d2   :  { %v4573_v5 = vpop.f32.mrb[168].mxu1 }
 0x6d3   :  { %v3565_v50 = vadd.f32 %v4573_v5, %v6583_v49  ;;  %v3556_v23 = vpop.f32.mrb[169].mxu1 }
 0x6d4   :  { %v3557_v60 = vadd.f32 %v6583_v49, %v3556_v23  ;;  %v4574_v62 = vpop.f32.mrb[170].mxu1 }
 0x6d5   :  { %3693 = vst.msk [vmem:[%s6914_s3 + $0x150] sm:$0xff] %vm3650_vm0, %v3565_v50  ;;  %v3568_v10 = vadd.f32 %v4574_v62, %v6583_v49  ;;  %v3559_v19 = vpop.f32.mrb[171].mxu1 }
 0x6d6   :  { %3691 = vst.msk [vmem:[%s6914_s3 + $0x140] sm:$0xff] %vm3650_vm0, %v3557_v60  ;;  %v3560_v22 = vadd.f32 %v6583_v49, %v3559_v19 }
 0x6d7   :  { %3694 = vst.msk [vmem:[%s6914_s3 + $0x158] sm:$0xff] %vm3650_vm0, %v3568_v10 }
 0x6d8   :  { %3692 = vst.msk [vmem:[%s6914_s3 + $0x148] sm:$0xff] %vm3650_vm0, %v3560_v22 }
 0x6e8   :  { %v4577_v12 = vpop.f32.mrb[172].mxu1 }
 0x6e9   :  { %v3581_v29 = vadd.f32 %v4577_v12, %v6583_v49  ;;  %v3572_v31 = vpop.f32.mrb[173].mxu1 }
 0x6ea   :  { %v3573_v0 = vadd.f32 %v6583_v49, %v3572_v31  ;;  %v4578_v54 = vpop.f32.mrb[174].mxu1 }
 0x6eb   :  { %3697 = vst.msk [vmem:[%s6914_s3 + $0x170] sm:$0xff] %vm3650_vm0, %v3581_v29  ;;  %v3584_v27 = vadd.f32 %v4578_v54, %v6583_v49  ;;  %v3575_v21 = vpop.f32.mrb[175].mxu1 }
 0x6ec   :  { %3695 = vst.msk [vmem:[%s6914_s3 + $0x160] sm:$0xff] %vm3650_vm0, %v3573_v0  ;;  %v3576_v16 = vadd.f32 %v6583_v49, %v3575_v21 }
 0x6ed   :  { %3698 = vst.msk [vmem:[%s6914_s3 + $0x178] sm:$0xff] %vm3650_vm0, %v3584_v27 }
 0x6ee   :  { %3696 = vst.msk [vmem:[%s6914_s3 + $0x168] sm:$0xff] %vm3650_vm0, %v3576_v16 }
 0x6fe   :  { %v4581_v28 = vpop.f32.mrb[176].mxu1 }
 0x6ff   :  { %v3597_v8 = vadd.f32 %v4581_v28, %v6583_v49  ;;  %v3588_v51 = vpop.f32.mrb[177].mxu1 }
 0x700   :  { %v3589_v2 = vadd.f32 %v6583_v49, %v3588_v51  ;;  %v4582_v47 = vpop.f32.mrb[178].mxu1 }
 0x701   :  { %3701 = vst.msk [vmem:[%s6914_s3 + $0x190] sm:$0xff] %vm3650_vm0, %v3597_v8  ;;  %v3600_v56 = vadd.f32 %v4582_v47, %v6583_v49  ;;  %v3591_v45 = vpop.f32.mrb[179].mxu1 }
 0x702   :  { %3699 = vst.msk [vmem:[%s6914_s3 + $0x180] sm:$0xff] %vm3650_vm0, %v3589_v2  ;;  %v3592_v20 = vadd.f32 %v6583_v49, %v3591_v45 }
 0x703   :  { %3702 = vst.msk [vmem:[%s6914_s3 + $0x198] sm:$0xff] %vm3650_vm0, %v3600_v56 }
 0x704   :  { %3700 = vst.msk [vmem:[%s6914_s3 + $0x188] sm:$0xff] %vm3650_vm0, %v3592_v20 }
 0x71a   :  { %v4585_v26 = vpop.f32.mrb[180].mxu1 }
 0x71b   :  { %v3613_v36 = vadd.f32 %v4585_v26, %v6583_v49  ;;  %v3604_v25 = vpop.f32.mrb[181].mxu1 }
 0x71c   :  { %v3605_v48 = vadd.f32 %v6583_v49, %v3604_v25  ;;  %v4586_v38 = vpop.f32.mrb[182].mxu1 }
 0x71d   :  { %3705 = vst.msk [vmem:[%s6914_s3 + $0x1b0] sm:$0xff] %vm3650_vm0, %v3613_v36  ;;  %v3616_v9 = vadd.f32 %v4586_v38, %v6583_v49  ;;  %v3607_v57 = vpop.f32.mrb[183].mxu1 }
 0x71e   :  { %3703 = vst.msk [vmem:[%s6914_s3 + $0x1a0] sm:$0xff] %vm3650_vm0, %v3605_v48  ;;  %v3608_v61 = vadd.f32 %v6583_v49, %v3607_v57 }
 0x71f   :  { %3706 = vst.msk [vmem:[%s6914_s3 + $0x1b8] sm:$0xff] %vm3650_vm0, %v3616_v9 }
 0x720   :  { %3704 = vst.msk [vmem:[%s6914_s3 + $0x1a8] sm:$0xff] %vm3650_vm0, %v3608_v61 }
 0x737   :  { %v4589_v58 = vpop.f32.mrb[184].mxu1 }
 0x738   :  { %v3629_v35 = vadd.f32 %v4589_v58, %v6583_v49  ;;  %v3620_v13 = vpop.f32.mrb[185].mxu1 }
 0x739   :  { %v3621_v30 = vadd.f32 %v6583_v49, %v3620_v13  ;;  %v4590_v33 = vpop.f32.mrb[186].mxu1 }
 0x73a   :  { %3709 = vst.msk [vmem:[%s6914_s3 + $0x1d0] sm:$0xff] %vm3650_vm0, %v3629_v35  ;;  %v3632_v37 = vadd.f32 %v4590_v33, %v6583_v49  ;;  %v3623_v41 = vpop.f32.mrb[187].mxu1 }
 0x73b   :  { %3707 = vst.msk [vmem:[%s6914_s3 + $0x1c0] sm:$0xff] %vm3650_vm0, %v3621_v30  ;;  %v3624_v63 = vadd.f32 %v6583_v49, %v3623_v41 }
 0x73c   :  { %3710 = vst.msk [vmem:[%s6914_s3 + $0x1d8] sm:$0xff] %vm3650_vm0, %v3632_v37 }
 0x73d   :  { %3708 = vst.msk [vmem:[%s6914_s3 + $0x1c8] sm:$0xff] %vm3650_vm0, %v3624_v63 }
 0x73f   :  { %v4593_v15 = vpop.f32.mrb[188].mxu1 }
 0x740   :  { %v3645_v11 = vadd.f32 %v4593_v15, %v6583_v49  ;;  %v3636_v7 = vpop.f32.mrb[189].mxu1 }
 0x741   :  { %v3637_v55 = vadd.f32 %v6583_v49, %v3636_v7  ;;  %v4594_v40 = vpop.f32.mrb[190].mxu1 }
 0x742   :  { %3713 = vst.msk [vmem:[%s6914_s3 + $0x1f0] sm:$0xff] %vm3650_vm0, %v3645_v11  ;;  %v3639_v59 = vpop.f32.mrb[191].mxu1 }
 0x743   :  { %3711 = vst.msk [vmem:[%s6914_s3 + $0x1e0] sm:$0xff] %vm3650_vm0, %v3637_v55  ;;  %v3640_v18 = vadd.f32 %v6583_v49, %v3639_v59 }
 0x745   :  { %3712 = vst.msk [vmem:[%s6914_s3 + $0x1e8] sm:$0xff] %vm3650_vm0, %v3640_v18 }

</bundles_post_ra>
